<compile_context>
chip_gen: v7x
topology: tpu7x:2x2x1
jax: 0.10.0
libtpu: 0.0.40
codegen_flags: <defaults>
</compile_context>

<pallas_src>
import jax
import jax.numpy as jnp
from jax.experimental import pallas as pl
from jax.experimental.pallas import tpu as pltpu

C_IN = 993
C_OUT = 16
KSIZE = 5
PAD = 2
L_IN = 24            # implied by Linear(192, 2): 192 = 16 * (24 // 2)
L_POOL = L_IN // 2   # 12
N_CLS = 2
NEG_SLOPE = 0.01     # nn.LeakyReLU() default
T_HALF = 16          # per-parity padded-time rows: 14 used, padded to 16
N_TAP_COL = KSIZE * C_OUT   # 80 = 5 taps x 16 output channels


# ----------------------------- kernel ---------------------------------------


def cnn_fused_kernel(e_ref, o_ref, w_ref, cb_ref, dw_ref, db_ref, out_ref,
                     ze_scr, zo_scr):
    """Fused Conv1d + bias + LeakyReLU + MaxPool1d(2) + Linear(192->2).

    e_ref : (BT, 16, 993) bf16  even padded-time rows xp[2q]  (q = 0..13, rows 14/15 zero)
    o_ref : (BT, 16, 993) bf16  odd  padded-time rows xp[2q+1]
    w_ref : (993, 80)     bf16  conv weight, column 16*k + co = conv_w[co, :, k]
    cb_ref: (1, 16)       f32   conv bias
    dw_ref: (2, 12, 16)   f32   dense weight regrouped as [class, pooled_t, channel]
    db_ref: (1, 2)        f32   dense bias
    out_ref: (BT, 2)      f32   logits
    ze_scr/zo_scr: (BT, 16, 80) f32 VMEM scratch holding per-tap partial conv sums
    """
    bt = e_ref.shape[0]
    w = w_ref[...]

    # Conv contraction (K=993) once per sample & parity; all 5 taps share one dot
    # because they are packed along the 80-wide N axis of the weight.
    for b in range(bt):
        ze_scr[b] = jnp.dot(e_ref[b], w, preferred_element_type=jnp.float32)
        zo_scr[b] = jnp.dot(o_ref[b], w, preferred_element_type=jnp.float32)

    # Polyphase tap gather.  z[b, q, 16k+co] = x_parity[b, q, :] . conv_w[co, :, k]
    # so conv output at even time 2p  = E[p]w0 + O[p]w1 + E[p+1]w2 + O[p+1]w3 + E[p+2]w4
    #    conv output at odd  time 2p+1= O[p]w0 + E[p+1]w1 + O[p+1]w2 + E[p+2]w3 + O[p+2]w4
    def tap(z_scr, r, k):
        return z_scr[:, r:r + L_POOL, 16 * k:16 * (k + 1)]   # (BT, 12, 16)

    y_even = (tap(ze_scr, 0, 0) + tap(zo_scr, 0, 1) + tap(ze_scr, 1, 2)
              + tap(zo_scr, 1, 3) + tap(ze_scr, 2, 4))
    y_odd = (tap(zo_scr, 0, 0) + tap(ze_scr, 1, 1) + tap(zo_scr, 1, 2)
             + tap(ze_scr, 2, 3) + tap(zo_scr, 2, 4))

    # MaxPool1d(2).  Bias-add and LeakyReLU commute with the max (bias identical
    # on both candidates, LeakyReLU monotone), so apply each exactly once.
    p = jnp.maximum(y_even, y_odd) + cb_ref[...]             # (BT, 12, 16)
    p = jnp.where(p > 0, p, NEG_SLOPE * p)                   # LeakyReLU
    # TODO(synk): Dropout(p=0.1) is identity at inference; training-mode masking
    # (stateful PRNG) is not implemented.

    # Linear(192 -> 2): contraction over (pooled_t, channel).  dw is pre-permuted
    # host-side to match the pooled (t, c) layout, so no in-kernel flatten needed.
    for j in range(N_CLS):
        lj = (p * dw_ref[j]).sum(axis=2, keepdims=True).sum(axis=1)   # (BT, 1)
        out_ref[:, j:j + 1] = lj + db_ref[:, j:j + 1]


# --------------------------- glue / wrapper ---------------------------------


def cnn_forward(x, conv_w, conv_b, dense_w, dense_b, *, block_b=8):
    """x: (B, 993, 24) f32 -> logits (B, 2) f32."""
    B = x.shape[0]
    nblk = -(-B // block_b)
    Bp = nblk * block_b

    # Pad batch to a multiple of block_b; pad time by the conv padding (2 + 2).
    xp = jnp.pad(x, ((0, Bp - B), (0, 0), (PAD, PAD)))               # (Bp, 993, 28)

    # Polyphase split of the padded time axis (even / odd rows), time-major and
    # channel-last so the 993-wide contraction sits on the lane axis.  14 rows
    # are padded to 16 for clean bf16 sublane tiling.  bf16 halves HBM traffic
    # of the dominant operand; accumulation stays f32 in-kernel.
    e = jnp.transpose(xp[:, :, 0::2], (0, 2, 1))                      # (Bp, 14, 993)
    o = jnp.transpose(xp[:, :, 1::2], (0, 2, 1))                      # (Bp, 14, 993)
    e = jnp.pad(e, ((0, 0), (0, T_HALF - e.shape[1]), (0, 0))).astype(jnp.bfloat16)
    o = jnp.pad(o, ((0, 0), (0, T_HALF - o.shape[1]), (0, 0))).astype(jnp.bfloat16)

    # Conv weight (co, ci, k) -> (ci, 16*k + co); conv bias -> (1, 16).
    wc = jnp.transpose(conv_w, (1, 2, 0)).reshape(C_IN, N_TAP_COL).astype(jnp.bfloat16)
    cb = conv_b.reshape(1, C_OUT).astype(jnp.float32)

    # Dense weight (2, 192) indexed [j, c*12 + t]  ->  (2, 12, 16) indexed [j, t, c]
    # (torch.flatten on (B, 16, 12) uses index c*12 + t).
    dw = jnp.transpose(dense_w.reshape(N_CLS, C_OUT, L_POOL), (0, 2, 1)).astype(jnp.float32)
    db = dense_b.reshape(1, N_CLS).astype(jnp.float32)

    out = pl.pallas_call(
        cnn_fused_kernel,
        out_shape=jax.ShapeDtypeStruct((Bp, N_CLS), jnp.float32),
        grid=(nblk,),
        in_specs=[
            pl.BlockSpec((block_b, T_HALF, C_IN), lambda i: (i, 0, 0)),
            pl.BlockSpec((block_b, T_HALF, C_IN), lambda i: (i, 0, 0)),
            pl.BlockSpec((C_IN, N_TAP_COL), lambda i: (0, 0)),
            pl.BlockSpec((1, C_OUT), lambda i: (0, 0)),
            pl.BlockSpec((N_CLS, L_POOL, C_OUT), lambda i: (0, 0, 0)),
            pl.BlockSpec((1, N_CLS), lambda i: (0, 0)),
        ],
        out_specs=pl.BlockSpec((block_b, N_CLS), lambda i: (i, 0)),
        scratch_shapes=[
            pltpu.VMEM((block_b, T_HALF, N_TAP_COL), jnp.float32),
            pltpu.VMEM((block_b, T_HALF, N_TAP_COL), jnp.float32),
        ],
        compiler_params=pltpu.CompilerParams(dimension_semantics=("parallel",)),
    )(e, o, wc, cb, dw, db)
    return out[:B]


# ------------------------------ reference -----------------------------------


def cnn_reference(x, conv_w, conv_b, dense_w, dense_b):
    y = jax.lax.conv_general_dilated(
        x, conv_w, window_strides=(1,), padding=((PAD, PAD),),
        dimension_numbers=("NCH", "OIH", "NCH"))
    y = y + conv_b[None, :, None]
    y = jnp.where(y > 0, y, NEG_SLOPE * y)
    B, C, L = y.shape
    y = jnp.max(y.reshape(B, C, L // 2, 2), axis=-1)     # MaxPool1d(2)
    feat = y.reshape(B, C * (L // 2))                    # torch.flatten(out, 1)
    return feat @ dense_w.T + dense_b


# -------------------------------- main ---------------------------------------


if __name__ == "__main__":
    key = jax.random.PRNGKey(0)
    k_x, k_cw, k_cb, k_dw, k_db = jax.random.split(key, 5)

    B = 2
    x = jax.random.normal(k_x, (B, C_IN, L_IN), dtype=jnp.float32)

    # Deterministic synthetic parameters (shapes per nn.Module __init__).
    conv_w = 0.02 * jax.random.normal(k_cw, (C_OUT, C_IN, KSIZE), dtype=jnp.float32)
    conv_b = 0.02 * jax.random.normal(k_cb, (C_OUT,), dtype=jnp.float32)
    dense_w = 0.05 * jax.random.normal(k_dw, (N_CLS, C_OUT * L_POOL), dtype=jnp.float32)
    dense_b = 0.05 * jax.random.normal(k_db, (N_CLS,), dtype=jnp.float32)

    out = jax.jit(cnn_forward)(x, conv_w, conv_b, dense_w, dense_b)
    out = jax.block_until_ready(out)

    ref = cnn_reference(x, conv_w, conv_b, dense_w, dense_b)
    assert out.shape == (B, N_CLS), out.shape
    # bf16 conv operands vs f32 reference -> slightly looser tolerance.
    assert jnp.allclose(out, ref, rtol=2e-2, atol=2e-2), (out, ref)

    print("KERNEL_OK")
</pallas_src>

<mosaic_0001>
module attributes {stable_mosaic.version = 11 : i64} {
  func.func @cnn_fused_kernel(%arg0: i32, %arg1: memref<8x16x993xbf16, #tpu.memory_space<vmem>>, %arg2: memref<8x16x993xbf16, #tpu.memory_space<vmem>>, %arg3: memref<993x80xbf16, #tpu.memory_space<vmem>>, %arg4: memref<1x16xf32, #tpu.memory_space<vmem>>, %arg5: memref<2x12x16xf32, #tpu.memory_space<vmem>>, %arg6: memref<1x2xf32, #tpu.memory_space<vmem>>, %arg7: memref<8x2xf32, #tpu.memory_space<vmem>>, %arg8: memref<8x16x80xf32, #tpu.memory_space<vmem>>, %arg9: memref<8x16x80xf32, #tpu.memory_space<vmem>>) attributes {dimension_semantics = [#tpu.dimension_semantics<parallel>], iteration_bounds = array<i64: 1>, scalar_prefetch = 0 : i64, scratch_operands = 2 : i64, tpu.core_type = #tpu.core_type<tc>, window_params = [{transform_indices = @transform_0, window_bounds = array<i64: 8, 16, 993>}, {transform_indices = @transform_1, window_bounds = array<i64: 8, 16, 993>}, {pipeline_mode = #tpu.pipeline_mode<synchronous>, transform_indices = @transform_2, window_bounds = array<i64: 993, 80>}, {pipeline_mode = #tpu.pipeline_mode<synchronous>, transform_indices = @transform_3, window_bounds = array<i64: 1, 16>}, {pipeline_mode = #tpu.pipeline_mode<synchronous>, transform_indices = @transform_4, window_bounds = array<i64: 2, 12, 16>}, {pipeline_mode = #tpu.pipeline_mode<synchronous>, transform_indices = @transform_5, window_bounds = array<i64: 1, 2>}, {transform_indices = @transform_6, window_bounds = array<i64: 8, 2>}]} {
    %c0 = arith.constant 0 : index
    %c0_0 = arith.constant 0 : index
    %0 = vector.load %arg3[%c0, %c0_0] : memref<993x80xbf16, #tpu.memory_space<vmem>>, vector<993x80xbf16>
    %c0_1 = arith.constant 0 : index
    %c0_2 = arith.constant 0 : index
    %c0_3 = arith.constant 0 : index
    %1 = vector.load %arg1[%c0_1, %c0_2, %c0_3] : memref<8x16x993xbf16, #tpu.memory_space<vmem>>, vector<1x16x993xbf16>
    %2 = vector.shape_cast %1 : vector<1x16x993xbf16> to vector<16x993xbf16>
    %cst = arith.constant dense<0.000000e+00> : vector<16x80xf32>
    %3 = tpu.matmul %2, %0, %cst {dimension_numbers = #tpu.dot_dimension_numbers<[1], [0], [0], [1], [0, 0, 1, 1], [], []>} : vector<16x993xbf16>, vector<993x80xbf16>, vector<16x80xf32> -> vector<16x80xf32>
    %c0_4 = arith.constant 0 : index
    %c0_5 = arith.constant 0 : index
    %c0_6 = arith.constant 0 : index
    %4 = vector.load %arg8[%c0_4, %c0_5, %c0_6] : memref<8x16x80xf32, #tpu.memory_space<vmem>>, vector<1x16x80xf32>
    %5 = vector.shape_cast %4 : vector<1x16x80xf32> to vector<16x80xf32>
    %6 = vector.shape_cast %3 : vector<16x80xf32> to vector<1x16x80xf32>
    tpu.vector_store %arg8[%c0_4, %c0_5, %c0_6], %6 {strides = array<i32>} : memref<8x16x80xf32, #tpu.memory_space<vmem>>, vector<1x16x80xf32>,
    %c0_7 = arith.constant 0 : index
    %c0_8 = arith.constant 0 : index
    %c0_9 = arith.constant 0 : index
    %7 = vector.load %arg2[%c0_7, %c0_8, %c0_9] : memref<8x16x993xbf16, #tpu.memory_space<vmem>>, vector<1x16x993xbf16>
    %8 = vector.shape_cast %7 : vector<1x16x993xbf16> to vector<16x993xbf16>
    %cst_10 = arith.constant dense<0.000000e+00> : vector<16x80xf32>
    %9 = tpu.matmul %8, %0, %cst_10 {dimension_numbers = #tpu.dot_dimension_numbers<[1], [0], [0], [1], [0, 0, 1, 1], [], []>} : vector<16x993xbf16>, vector<993x80xbf16>, vector<16x80xf32> -> vector<16x80xf32>
    %c0_11 = arith.constant 0 : index
    %c0_12 = arith.constant 0 : index
    %c0_13 = arith.constant 0 : index
    %10 = vector.load %arg9[%c0_11, %c0_12, %c0_13] : memref<8x16x80xf32, #tpu.memory_space<vmem>>, vector<1x16x80xf32>
    %11 = vector.shape_cast %10 : vector<1x16x80xf32> to vector<16x80xf32>
    %12 = vector.shape_cast %9 : vector<16x80xf32> to vector<1x16x80xf32>
    tpu.vector_store %arg9[%c0_11, %c0_12, %c0_13], %12 {strides = array<i32>} : memref<8x16x80xf32, #tpu.memory_space<vmem>>, vector<1x16x80xf32>,
    %c1 = arith.constant 1 : index
    %c0_14 = arith.constant 0 : index
    %c0_15 = arith.constant 0 : index
    %13 = vector.load %arg1[%c1, %c0_14, %c0_15] : memref<8x16x993xbf16, #tpu.memory_space<vmem>>, vector<1x16x993xbf16>
    %14 = vector.shape_cast %13 : vector<1x16x993xbf16> to vector<16x993xbf16>
    %cst_16 = arith.constant dense<0.000000e+00> : vector<16x80xf32>
    %15 = tpu.matmul %14, %0, %cst_16 {dimension_numbers = #tpu.dot_dimension_numbers<[1], [0], [0], [1], [0, 0, 1, 1], [], []>} : vector<16x993xbf16>, vector<993x80xbf16>, vector<16x80xf32> -> vector<16x80xf32>
    %c1_17 = arith.constant 1 : index
    %c0_18 = arith.constant 0 : index
    %c0_19 = arith.constant 0 : index
    %16 = vector.load %arg8[%c1_17, %c0_18, %c0_19] : memref<8x16x80xf32, #tpu.memory_space<vmem>>, vector<1x16x80xf32>
    %17 = vector.shape_cast %16 : vector<1x16x80xf32> to vector<16x80xf32>
    %18 = vector.shape_cast %15 : vector<16x80xf32> to vector<1x16x80xf32>
    tpu.vector_store %arg8[%c1_17, %c0_18, %c0_19], %18 {strides = array<i32>} : memref<8x16x80xf32, #tpu.memory_space<vmem>>, vector<1x16x80xf32>,
    %c1_20 = arith.constant 1 : index
    %c0_21 = arith.constant 0 : index
    %c0_22 = arith.constant 0 : index
    %19 = vector.load %arg2[%c1_20, %c0_21, %c0_22] : memref<8x16x993xbf16, #tpu.memory_space<vmem>>, vector<1x16x993xbf16>
    %20 = vector.shape_cast %19 : vector<1x16x993xbf16> to vector<16x993xbf16>
    %cst_23 = arith.constant dense<0.000000e+00> : vector<16x80xf32>
    %21 = tpu.matmul %20, %0, %cst_23 {dimension_numbers = #tpu.dot_dimension_numbers<[1], [0], [0], [1], [0, 0, 1, 1], [], []>} : vector<16x993xbf16>, vector<993x80xbf16>, vector<16x80xf32> -> vector<16x80xf32>
    %c1_24 = arith.constant 1 : index
    %c0_25 = arith.constant 0 : index
    %c0_26 = arith.constant 0 : index
    %22 = vector.load %arg9[%c1_24, %c0_25, %c0_26] : memref<8x16x80xf32, #tpu.memory_space<vmem>>, vector<1x16x80xf32>
    %23 = vector.shape_cast %22 : vector<1x16x80xf32> to vector<16x80xf32>
    %24 = vector.shape_cast %21 : vector<16x80xf32> to vector<1x16x80xf32>
    tpu.vector_store %arg9[%c1_24, %c0_25, %c0_26], %24 {strides = array<i32>} : memref<8x16x80xf32, #tpu.memory_space<vmem>>, vector<1x16x80xf32>,
    %c2 = arith.constant 2 : index
    %c0_27 = arith.constant 0 : index
    %c0_28 = arith.constant 0 : index
    %25 = vector.load %arg1[%c2, %c0_27, %c0_28] : memref<8x16x993xbf16, #tpu.memory_space<vmem>>, vector<1x16x993xbf16>
    %26 = vector.shape_cast %25 : vector<1x16x993xbf16> to vector<16x993xbf16>
    %cst_29 = arith.constant dense<0.000000e+00> : vector<16x80xf32>
    %27 = tpu.matmul %26, %0, %cst_29 {dimension_numbers = #tpu.dot_dimension_numbers<[1], [0], [0], [1], [0, 0, 1, 1], [], []>} : vector<16x993xbf16>, vector<993x80xbf16>, vector<16x80xf32> -> vector<16x80xf32>
    %c2_30 = arith.constant 2 : index
    %c0_31 = arith.constant 0 : index
    %c0_32 = arith.constant 0 : index
    %28 = vector.load %arg8[%c2_30, %c0_31, %c0_32] : memref<8x16x80xf32, #tpu.memory_space<vmem>>, vector<1x16x80xf32>
    %29 = vector.shape_cast %28 : vector<1x16x80xf32> to vector<16x80xf32>
    %30 = vector.shape_cast %27 : vector<16x80xf32> to vector<1x16x80xf32>
    tpu.vector_store %arg8[%c2_30, %c0_31, %c0_32], %30 {strides = array<i32>} : memref<8x16x80xf32, #tpu.memory_space<vmem>>, vector<1x16x80xf32>,
    %c2_33 = arith.constant 2 : index
    %c0_34 = arith.constant 0 : index
    %c0_35 = arith.constant 0 : index
    %31 = vector.load %arg2[%c2_33, %c0_34, %c0_35] : memref<8x16x993xbf16, #tpu.memory_space<vmem>>, vector<1x16x993xbf16>
    %32 = vector.shape_cast %31 : vector<1x16x993xbf16> to vector<16x993xbf16>
    %cst_36 = arith.constant dense<0.000000e+00> : vector<16x80xf32>
    %33 = tpu.matmul %32, %0, %cst_36 {dimension_numbers = #tpu.dot_dimension_numbers<[1], [0], [0], [1], [0, 0, 1, 1], [], []>} : vector<16x993xbf16>, vector<993x80xbf16>, vector<16x80xf32> -> vector<16x80xf32>
    %c2_37 = arith.constant 2 : index
    %c0_38 = arith.constant 0 : index
    %c0_39 = arith.constant 0 : index
    %34 = vector.load %arg9[%c2_37, %c0_38, %c0_39] : memref<8x16x80xf32, #tpu.memory_space<vmem>>, vector<1x16x80xf32>
    %35 = vector.shape_cast %34 : vector<1x16x80xf32> to vector<16x80xf32>
    %36 = vector.shape_cast %33 : vector<16x80xf32> to vector<1x16x80xf32>
    tpu.vector_store %arg9[%c2_37, %c0_38, %c0_39], %36 {strides = array<i32>} : memref<8x16x80xf32, #tpu.memory_space<vmem>>, vector<1x16x80xf32>,
    %c3 = arith.constant 3 : index
    %c0_40 = arith.constant 0 : index
    %c0_41 = arith.constant 0 : index
    %37 = vector.load %arg1[%c3, %c0_40, %c0_41] : memref<8x16x993xbf16, #tpu.memory_space<vmem>>, vector<1x16x993xbf16>
    %38 = vector.shape_cast %37 : vector<1x16x993xbf16> to vector<16x993xbf16>
    %cst_42 = arith.constant dense<0.000000e+00> : vector<16x80xf32>
    %39 = tpu.matmul %38, %0, %cst_42 {dimension_numbers = #tpu.dot_dimension_numbers<[1], [0], [0], [1], [0, 0, 1, 1], [], []>} : vector<16x993xbf16>, vector<993x80xbf16>, vector<16x80xf32> -> vector<16x80xf32>
    %c3_43 = arith.constant 3 : index
    %c0_44 = arith.constant 0 : index
    %c0_45 = arith.constant 0 : index
    %40 = vector.load %arg8[%c3_43, %c0_44, %c0_45] : memref<8x16x80xf32, #tpu.memory_space<vmem>>, vector<1x16x80xf32>
    %41 = vector.shape_cast %40 : vector<1x16x80xf32> to vector<16x80xf32>
    %42 = vector.shape_cast %39 : vector<16x80xf32> to vector<1x16x80xf32>
    tpu.vector_store %arg8[%c3_43, %c0_44, %c0_45], %42 {strides = array<i32>} : memref<8x16x80xf32, #tpu.memory_space<vmem>>, vector<1x16x80xf32>,
    %c3_46 = arith.constant 3 : index
    %c0_47 = arith.constant 0 : index
    %c0_48 = arith.constant 0 : index
    %43 = vector.load %arg2[%c3_46, %c0_47, %c0_48] : memref<8x16x993xbf16, #tpu.memory_space<vmem>>, vector<1x16x993xbf16>
    %44 = vector.shape_cast %43 : vector<1x16x993xbf16> to vector<16x993xbf16>
    %cst_49 = arith.constant dense<0.000000e+00> : vector<16x80xf32>
    %45 = tpu.matmul %44, %0, %cst_49 {dimension_numbers = #tpu.dot_dimension_numbers<[1], [0], [0], [1], [0, 0, 1, 1], [], []>} : vector<16x993xbf16>, vector<993x80xbf16>, vector<16x80xf32> -> vector<16x80xf32>
    %c3_50 = arith.constant 3 : index
    %c0_51 = arith.constant 0 : index
    %c0_52 = arith.constant 0 : index
    %46 = vector.load %arg9[%c3_50, %c0_51, %c0_52] : memref<8x16x80xf32, #tpu.memory_space<vmem>>, vector<1x16x80xf32>
    %47 = vector.shape_cast %46 : vector<1x16x80xf32> to vector<16x80xf32>
    %48 = vector.shape_cast %45 : vector<16x80xf32> to vector<1x16x80xf32>
    tpu.vector_store %arg9[%c3_50, %c0_51, %c0_52], %48 {strides = array<i32>} : memref<8x16x80xf32, #tpu.memory_space<vmem>>, vector<1x16x80xf32>,
    %c4 = arith.constant 4 : index
    %c0_53 = arith.constant 0 : index
    %c0_54 = arith.constant 0 : index
    %49 = vector.load %arg1[%c4, %c0_53, %c0_54] : memref<8x16x993xbf16, #tpu.memory_space<vmem>>, vector<1x16x993xbf16>
    %50 = vector.shape_cast %49 : vector<1x16x993xbf16> to vector<16x993xbf16>
    %cst_55 = arith.constant dense<0.000000e+00> : vector<16x80xf32>
    %51 = tpu.matmul %50, %0, %cst_55 {dimension_numbers = #tpu.dot_dimension_numbers<[1], [0], [0], [1], [0, 0, 1, 1], [], []>} : vector<16x993xbf16>, vector<993x80xbf16>, vector<16x80xf32> -> vector<16x80xf32>
    %c4_56 = arith.constant 4 : index
    %c0_57 = arith.constant 0 : index
    %c0_58 = arith.constant 0 : index
    %52 = vector.load %arg8[%c4_56, %c0_57, %c0_58] : memref<8x16x80xf32, #tpu.memory_space<vmem>>, vector<1x16x80xf32>
    %53 = vector.shape_cast %52 : vector<1x16x80xf32> to vector<16x80xf32>
    %54 = vector.shape_cast %51 : vector<16x80xf32> to vector<1x16x80xf32>
    tpu.vector_store %arg8[%c4_56, %c0_57, %c0_58], %54 {strides = array<i32>} : memref<8x16x80xf32, #tpu.memory_space<vmem>>, vector<1x16x80xf32>,
    %c4_59 = arith.constant 4 : index
    %c0_60 = arith.constant 0 : index
    %c0_61 = arith.constant 0 : index
    %55 = vector.load %arg2[%c4_59, %c0_60, %c0_61] : memref<8x16x993xbf16, #tpu.memory_space<vmem>>, vector<1x16x993xbf16>
    %56 = vector.shape_cast %55 : vector<1x16x993xbf16> to vector<16x993xbf16>
    %cst_62 = arith.constant dense<0.000000e+00> : vector<16x80xf32>
    %57 = tpu.matmul %56, %0, %cst_62 {dimension_numbers = #tpu.dot_dimension_numbers<[1], [0], [0], [1], [0, 0, 1, 1], [], []>} : vector<16x993xbf16>, vector<993x80xbf16>, vector<16x80xf32> -> vector<16x80xf32>
    %c4_63 = arith.constant 4 : index
    %c0_64 = arith.constant 0 : index
    %c0_65 = arith.constant 0 : index
    %58 = vector.load %arg9[%c4_63, %c0_64, %c0_65] : memref<8x16x80xf32, #tpu.memory_space<vmem>>, vector<1x16x80xf32>
    %59 = vector.shape_cast %58 : vector<1x16x80xf32> to vector<16x80xf32>
    %60 = vector.shape_cast %57 : vector<16x80xf32> to vector<1x16x80xf32>
    tpu.vector_store %arg9[%c4_63, %c0_64, %c0_65], %60 {strides = array<i32>} : memref<8x16x80xf32, #tpu.memory_space<vmem>>, vector<1x16x80xf32>,
    %c5 = arith.constant 5 : index
    %c0_66 = arith.constant 0 : index
    %c0_67 = arith.constant 0 : index
    %61 = vector.load %arg1[%c5, %c0_66, %c0_67] : memref<8x16x993xbf16, #tpu.memory_space<vmem>>, vector<1x16x993xbf16>
    %62 = vector.shape_cast %61 : vector<1x16x993xbf16> to vector<16x993xbf16>
    %cst_68 = arith.constant dense<0.000000e+00> : vector<16x80xf32>
    %63 = tpu.matmul %62, %0, %cst_68 {dimension_numbers = #tpu.dot_dimension_numbers<[1], [0], [0], [1], [0, 0, 1, 1], [], []>} : vector<16x993xbf16>, vector<993x80xbf16>, vector<16x80xf32> -> vector<16x80xf32>
    %c5_69 = arith.constant 5 : index
    %c0_70 = arith.constant 0 : index
    %c0_71 = arith.constant 0 : index
    %64 = vector.load %arg8[%c5_69, %c0_70, %c0_71] : memref<8x16x80xf32, #tpu.memory_space<vmem>>, vector<1x16x80xf32>
    %65 = vector.shape_cast %64 : vector<1x16x80xf32> to vector<16x80xf32>
    %66 = vector.shape_cast %63 : vector<16x80xf32> to vector<1x16x80xf32>
    tpu.vector_store %arg8[%c5_69, %c0_70, %c0_71], %66 {strides = array<i32>} : memref<8x16x80xf32, #tpu.memory_space<vmem>>, vector<1x16x80xf32>,
    %c5_72 = arith.constant 5 : index
    %c0_73 = arith.constant 0 : index
    %c0_74 = arith.constant 0 : index
    %67 = vector.load %arg2[%c5_72, %c0_73, %c0_74] : memref<8x16x993xbf16, #tpu.memory_space<vmem>>, vector<1x16x993xbf16>
    %68 = vector.shape_cast %67 : vector<1x16x993xbf16> to vector<16x993xbf16>
    %cst_75 = arith.constant dense<0.000000e+00> : vector<16x80xf32>
    %69 = tpu.matmul %68, %0, %cst_75 {dimension_numbers = #tpu.dot_dimension_numbers<[1], [0], [0], [1], [0, 0, 1, 1], [], []>} : vector<16x993xbf16>, vector<993x80xbf16>, vector<16x80xf32> -> vector<16x80xf32>
    %c5_76 = arith.constant 5 : index
    %c0_77 = arith.constant 0 : index
    %c0_78 = arith.constant 0 : index
    %70 = vector.load %arg9[%c5_76, %c0_77, %c0_78] : memref<8x16x80xf32, #tpu.memory_space<vmem>>, vector<1x16x80xf32>
    %71 = vector.shape_cast %70 : vector<1x16x80xf32> to vector<16x80xf32>
    %72 = vector.shape_cast %69 : vector<16x80xf32> to vector<1x16x80xf32>
    tpu.vector_store %arg9[%c5_76, %c0_77, %c0_78], %72 {strides = array<i32>} : memref<8x16x80xf32, #tpu.memory_space<vmem>>, vector<1x16x80xf32>,
    %c6 = arith.constant 6 : index
    %c0_79 = arith.constant 0 : index
    %c0_80 = arith.constant 0 : index
    %73 = vector.load %arg1[%c6, %c0_79, %c0_80] : memref<8x16x993xbf16, #tpu.memory_space<vmem>>, vector<1x16x993xbf16>
    %74 = vector.shape_cast %73 : vector<1x16x993xbf16> to vector<16x993xbf16>
    %cst_81 = arith.constant dense<0.000000e+00> : vector<16x80xf32>
    %75 = tpu.matmul %74, %0, %cst_81 {dimension_numbers = #tpu.dot_dimension_numbers<[1], [0], [0], [1], [0, 0, 1, 1], [], []>} : vector<16x993xbf16>, vector<993x80xbf16>, vector<16x80xf32> -> vector<16x80xf32>
    %c6_82 = arith.constant 6 : index
    %c0_83 = arith.constant 0 : index
    %c0_84 = arith.constant 0 : index
    %76 = vector.load %arg8[%c6_82, %c0_83, %c0_84] : memref<8x16x80xf32, #tpu.memory_space<vmem>>, vector<1x16x80xf32>
    %77 = vector.shape_cast %76 : vector<1x16x80xf32> to vector<16x80xf32>
    %78 = vector.shape_cast %75 : vector<16x80xf32> to vector<1x16x80xf32>
    tpu.vector_store %arg8[%c6_82, %c0_83, %c0_84], %78 {strides = array<i32>} : memref<8x16x80xf32, #tpu.memory_space<vmem>>, vector<1x16x80xf32>,
    %c6_85 = arith.constant 6 : index
    %c0_86 = arith.constant 0 : index
    %c0_87 = arith.constant 0 : index
    %79 = vector.load %arg2[%c6_85, %c0_86, %c0_87] : memref<8x16x993xbf16, #tpu.memory_space<vmem>>, vector<1x16x993xbf16>
    %80 = vector.shape_cast %79 : vector<1x16x993xbf16> to vector<16x993xbf16>
    %cst_88 = arith.constant dense<0.000000e+00> : vector<16x80xf32>
    %81 = tpu.matmul %80, %0, %cst_88 {dimension_numbers = #tpu.dot_dimension_numbers<[1], [0], [0], [1], [0, 0, 1, 1], [], []>} : vector<16x993xbf16>, vector<993x80xbf16>, vector<16x80xf32> -> vector<16x80xf32>
    %c6_89 = arith.constant 6 : index
    %c0_90 = arith.constant 0 : index
    %c0_91 = arith.constant 0 : index
    %82 = vector.load %arg9[%c6_89, %c0_90, %c0_91] : memref<8x16x80xf32, #tpu.memory_space<vmem>>, vector<1x16x80xf32>
    %83 = vector.shape_cast %82 : vector<1x16x80xf32> to vector<16x80xf32>
    %84 = vector.shape_cast %81 : vector<16x80xf32> to vector<1x16x80xf32>
    tpu.vector_store %arg9[%c6_89, %c0_90, %c0_91], %84 {strides = array<i32>} : memref<8x16x80xf32, #tpu.memory_space<vmem>>, vector<1x16x80xf32>,
    %c7 = arith.constant 7 : index
    %c0_92 = arith.constant 0 : index
    %c0_93 = arith.constant 0 : index
    %85 = vector.load %arg1[%c7, %c0_92, %c0_93] : memref<8x16x993xbf16, #tpu.memory_space<vmem>>, vector<1x16x993xbf16>
    %86 = vector.shape_cast %85 : vector<1x16x993xbf16> to vector<16x993xbf16>
    %cst_94 = arith.constant dense<0.000000e+00> : vector<16x80xf32>
    %87 = tpu.matmul %86, %0, %cst_94 {dimension_numbers = #tpu.dot_dimension_numbers<[1], [0], [0], [1], [0, 0, 1, 1], [], []>} : vector<16x993xbf16>, vector<993x80xbf16>, vector<16x80xf32> -> vector<16x80xf32>
    %c7_95 = arith.constant 7 : index
    %c0_96 = arith.constant 0 : index
    %c0_97 = arith.constant 0 : index
    %88 = vector.load %arg8[%c7_95, %c0_96, %c0_97] : memref<8x16x80xf32, #tpu.memory_space<vmem>>, vector<1x16x80xf32>
    %89 = vector.shape_cast %88 : vector<1x16x80xf32> to vector<16x80xf32>
    %90 = vector.shape_cast %87 : vector<16x80xf32> to vector<1x16x80xf32>
    tpu.vector_store %arg8[%c7_95, %c0_96, %c0_97], %90 {strides = array<i32>} : memref<8x16x80xf32, #tpu.memory_space<vmem>>, vector<1x16x80xf32>,
    %c7_98 = arith.constant 7 : index
    %c0_99 = arith.constant 0 : index
    %c0_100 = arith.constant 0 : index
    %91 = vector.load %arg2[%c7_98, %c0_99, %c0_100] : memref<8x16x993xbf16, #tpu.memory_space<vmem>>, vector<1x16x993xbf16>
    %92 = vector.shape_cast %91 : vector<1x16x993xbf16> to vector<16x993xbf16>
    %cst_101 = arith.constant dense<0.000000e+00> : vector<16x80xf32>
    %93 = tpu.matmul %92, %0, %cst_101 {dimension_numbers = #tpu.dot_dimension_numbers<[1], [0], [0], [1], [0, 0, 1, 1], [], []>} : vector<16x993xbf16>, vector<993x80xbf16>, vector<16x80xf32> -> vector<16x80xf32>
    %c7_102 = arith.constant 7 : index
    %c0_103 = arith.constant 0 : index
    %c0_104 = arith.constant 0 : index
    %94 = vector.load %arg9[%c7_102, %c0_103, %c0_104] : memref<8x16x80xf32, #tpu.memory_space<vmem>>, vector<1x16x80xf32>
    %95 = vector.shape_cast %94 : vector<1x16x80xf32> to vector<16x80xf32>
    %96 = vector.shape_cast %93 : vector<16x80xf32> to vector<1x16x80xf32>
    tpu.vector_store %arg9[%c7_102, %c0_103, %c0_104], %96 {strides = array<i32>} : memref<8x16x80xf32, #tpu.memory_space<vmem>>, vector<1x16x80xf32>,
    %c0_105 = arith.constant 0 : index
    %c0_106 = arith.constant 0 : index
    %c0_107 = arith.constant 0 : index
    %97 = vector.load %arg8[%c0_105, %c0_106, %c0_107] : memref<8x16x80xf32, #tpu.memory_space<vmem>>, vector<8x12x16xf32>
    %c0_108 = arith.constant 0 : index
    %c0_109 = arith.constant 0 : index
    %c16 = arith.constant 16 : index
    %98 = vector.load %arg9[%c0_108, %c0_109, %c16] : memref<8x16x80xf32, #tpu.memory_space<vmem>>, vector<8x12x16xf32>
    %99 = arith.addf %97, %98 : vector<8x12x16xf32>
    %c0_110 = arith.constant 0 : index
    %c1_111 = arith.constant 1 : index
    %c32 = arith.constant 32 : index
    %100 = vector.load %arg8[%c0_110, %c1_111, %c32] : memref<8x16x80xf32, #tpu.memory_space<vmem>>, vector<8x12x16xf32>
    %101 = arith.addf %99, %100 : vector<8x12x16xf32>
    %c0_112 = arith.constant 0 : index
    %c1_113 = arith.constant 1 : index
    %c48 = arith.constant 48 : index
    %102 = vector.load %arg9[%c0_112, %c1_113, %c48] : memref<8x16x80xf32, #tpu.memory_space<vmem>>, vector<8x12x16xf32>
    %103 = arith.addf %101, %102 : vector<8x12x16xf32>
    %c0_114 = arith.constant 0 : index
    %c2_115 = arith.constant 2 : index
    %c64 = arith.constant 64 : index
    %104 = vector.load %arg8[%c0_114, %c2_115, %c64] : memref<8x16x80xf32, #tpu.memory_space<vmem>>, vector<8x12x16xf32>
    %105 = arith.addf %103, %104 : vector<8x12x16xf32>
    %c0_116 = arith.constant 0 : index
    %c0_117 = arith.constant 0 : index
    %c0_118 = arith.constant 0 : index
    %106 = vector.load %arg9[%c0_116, %c0_117, %c0_118] : memref<8x16x80xf32, #tpu.memory_space<vmem>>, vector<8x12x16xf32>
    %c0_119 = arith.constant 0 : index
    %c1_120 = arith.constant 1 : index
    %c16_121 = arith.constant 16 : index
    %107 = vector.load %arg8[%c0_119, %c1_120, %c16_121] : memref<8x16x80xf32, #tpu.memory_space<vmem>>, vector<8x12x16xf32>
    %108 = arith.addf %106, %107 : vector<8x12x16xf32>
    %c0_122 = arith.constant 0 : index
    %c1_123 = arith.constant 1 : index
    %c32_124 = arith.constant 32 : index
    %109 = vector.load %arg9[%c0_122, %c1_123, %c32_124] : memref<8x16x80xf32, #tpu.memory_space<vmem>>, vector<8x12x16xf32>
    %110 = arith.addf %108, %109 : vector<8x12x16xf32>
    %c0_125 = arith.constant 0 : index
    %c2_126 = arith.constant 2 : index
    %c48_127 = arith.constant 48 : index
    %111 = vector.load %arg8[%c0_125, %c2_126, %c48_127] : memref<8x16x80xf32, #tpu.memory_space<vmem>>, vector<8x12x16xf32>
    %112 = arith.addf %110, %111 : vector<8x12x16xf32>
    %c0_128 = arith.constant 0 : index
    %c2_129 = arith.constant 2 : index
    %c64_130 = arith.constant 64 : index
    %113 = vector.load %arg9[%c0_128, %c2_129, %c64_130] : memref<8x16x80xf32, #tpu.memory_space<vmem>>, vector<8x12x16xf32>
    %114 = arith.addf %112, %113 : vector<8x12x16xf32>
    %115 = arith.maximumf %105, %114 : vector<8x12x16xf32>
    %c0_131 = arith.constant 0 : index
    %c0_132 = arith.constant 0 : index
    %116 = vector.load %arg4[%c0_131, %c0_132] : memref<1x16xf32, #tpu.memory_space<vmem>>, vector<1x16xf32>
    %117 = vector.shape_cast %116 : vector<1x16xf32> to vector<1x1x16xf32>
    %118 = vector.broadcast %117 : vector<1x1x16xf32> to vector<8x12x16xf32>
    %119 = arith.addf %115, %118 : vector<8x12x16xf32>
    %cst_133 = arith.constant 0.000000e+00 : f32
    %120 = vector.broadcast %cst_133 : f32 to vector<8x12x16xf32>
    %121 = arith.cmpf ogt, %119, %120 : vector<8x12x16xf32>
    %cst_134 = arith.constant 0.00999999977 : f32
    %122 = vector.broadcast %cst_134 : f32 to vector<8x12x16xf32>
    %123 = arith.mulf %122, %119 : vector<8x12x16xf32>
    %124 = arith.select %121, %119, %123 : vector<8x12x16xi1>, vector<8x12x16xf32>
    %c0_135 = arith.constant 0 : index
    %c0_136 = arith.constant 0 : index
    %c0_137 = arith.constant 0 : index
    %125 = vector.load %arg5[%c0_135, %c0_136, %c0_137] : memref<2x12x16xf32, #tpu.memory_space<vmem>>, vector<1x12x16xf32>
    %126 = vector.shape_cast %125 : vector<1x12x16xf32> to vector<12x16xf32>
    %127 = vector.shape_cast %126 : vector<12x16xf32> to vector<1x12x16xf32>
    %128 = vector.broadcast %127 : vector<1x12x16xf32> to vector<8x12x16xf32>
    %129 = arith.mulf %124, %128 : vector<8x12x16xf32>
    %cst_138 = arith.constant dense<0.000000e+00> : vector<8x12xf32>
    %130 = vector.multi_reduction <add>, %129, %cst_138 [2] : vector<8x12x16xf32> to vector<8x12xf32>
    %131 = vector.shape_cast %130 : vector<8x12xf32> to vector<8x12x1xf32>
    %cst_139 = arith.constant dense<0.000000e+00> : vector<8x1xf32>
    %132 = vector.multi_reduction <add>, %131, %cst_139 [1] : vector<8x12x1xf32> to vector<8x1xf32>
    %c0_140 = arith.constant 0 : index
    %c0_141 = arith.constant 0 : index
    %133 = vector.load %arg6[%c0_140, %c0_141] : memref<1x2xf32, #tpu.memory_space<vmem>>, vector<1x1xf32>
    %134 = vector.broadcast %133 : vector<1x1xf32> to vector<8x1xf32>
    %135 = arith.addf %132, %134 : vector<8x1xf32>
    %c0_142 = arith.constant 0 : index
    %c0_143 = arith.constant 0 : index
    %136 = vector.load %arg7[%c0_142, %c0_143] : memref<8x2xf32, #tpu.memory_space<vmem>>, vector<8x1xf32>
    tpu.vector_store %arg7[%c0_142, %c0_143], %135 {strides = array<i32>} : memref<8x2xf32, #tpu.memory_space<vmem>>, vector<8x1xf32>,
    %c1_144 = arith.constant 1 : index
    %c0_145 = arith.constant 0 : index
    %c0_146 = arith.constant 0 : index
    %137 = vector.load %arg5[%c1_144, %c0_145, %c0_146] : memref<2x12x16xf32, #tpu.memory_space<vmem>>, vector<1x12x16xf32>
    %138 = vector.shape_cast %137 : vector<1x12x16xf32> to vector<12x16xf32>
    %139 = vector.shape_cast %138 : vector<12x16xf32> to vector<1x12x16xf32>
    %140 = vector.broadcast %139 : vector<1x12x16xf32> to vector<8x12x16xf32>
    %141 = arith.mulf %124, %140 : vector<8x12x16xf32>
    %cst_147 = arith.constant dense<0.000000e+00> : vector<8x12xf32>
    %142 = vector.multi_reduction <add>, %141, %cst_147 [2] : vector<8x12x16xf32> to vector<8x12xf32>
    %143 = vector.shape_cast %142 : vector<8x12xf32> to vector<8x12x1xf32>
    %cst_148 = arith.constant dense<0.000000e+00> : vector<8x1xf32>
    %144 = vector.multi_reduction <add>, %143, %cst_148 [1] : vector<8x12x1xf32> to vector<8x1xf32>
    %c0_149 = arith.constant 0 : index
    %c1_150 = arith.constant 1 : index
    %145 = vector.load %arg6[%c0_149, %c1_150] : memref<1x2xf32, #tpu.memory_space<vmem>>, vector<1x1xf32>
    %146 = vector.broadcast %145 : vector<1x1xf32> to vector<8x1xf32>
    %147 = arith.addf %144, %146 : vector<8x1xf32>
    %c0_151 = arith.constant 0 : index
    %c1_152 = arith.constant 1 : index
    %148 = vector.load %arg7[%c0_151, %c1_152] : memref<8x2xf32, #tpu.memory_space<vmem>>, vector<8x1xf32>
    tpu.vector_store %arg7[%c0_151, %c1_152], %147 {strides = array<i32>} : memref<8x2xf32, #tpu.memory_space<vmem>>, vector<8x1xf32>,
    return
  }
  func.func @transform_0(%arg0: i32) -> (i32, i32, i32) {
    %c0_i32 = arith.constant 0 : i32
    %c0_i32_0 = arith.constant 0 : i32
    %c0_i32_1 = arith.constant 0 : i32
    return %arg0, %c0_i32, %c0_i32_0 : i32, i32, i32
  }
  func.func @transform_1(%arg0: i32) -> (i32, i32, i32) {
    %c0_i32 = arith.constant 0 : i32
    %c0_i32_0 = arith.constant 0 : i32
    %c0_i32_1 = arith.constant 0 : i32
    return %arg0, %c0_i32, %c0_i32_0 : i32, i32, i32
  }
  func.func @transform_2(%arg0: i32) -> (i32, i32) {
    %c0_i32 = arith.constant 0 : i32
    %c0_i32_0 = arith.constant 0 : i32
    %c0_i32_1 = arith.constant 0 : i32
    return %c0_i32, %c0_i32_0 : i32, i32
  }
  func.func @transform_3(%arg0: i32) -> (i32, i32) {
    %c0_i32 = arith.constant 0 : i32
    %c0_i32_0 = arith.constant 0 : i32
    %c0_i32_1 = arith.constant 0 : i32
    return %c0_i32, %c0_i32_0 : i32, i32
  }
  func.func @transform_4(%arg0: i32) -> (i32, i32, i32) {
    %c0_i32 = arith.constant 0 : i32
    %c0_i32_0 = arith.constant 0 : i32
    %c0_i32_1 = arith.constant 0 : i32
    %c0_i32_2 = arith.constant 0 : i32
    return %c0_i32, %c0_i32_0, %c0_i32_1 : i32, i32, i32
  }
  func.func @transform_5(%arg0: i32) -> (i32, i32) {
    %c0_i32 = arith.constant 0 : i32
    %c0_i32_0 = arith.constant 0 : i32
    %c0_i32_1 = arith.constant 0 : i32
    return %c0_i32, %c0_i32_0 : i32, i32
  }
  func.func @transform_6(%arg0: i32) -> (i32, i32) {
    %c0_i32 = arith.constant 0 : i32
    %c0_i32_0 = arith.constant 0 : i32
    return %arg0, %c0_i32 : i32, i32
  }
}

</mosaic_0001>

<bundles_post_ra>
// kernel: cnn_forward.1
= control target key start
LH: loop header
LB: loop body
LE: loop exit
PB: predicated region body
PF: predicated region fallthrough
CT: control target
= control target key end

     0   :  { %v10904_v0 = vmov 0   ;;  %vm571_vm0 = vcmask 793600   ;;  %vm575_vm1 = vcmask 1040384   ;;  %vm745_vm2 = vcmask 654336   ;;  %s6799_s21 = smov 96   ;;  %s6800_s26 = smov 64   ;;  %s10897_s2 = inlined_call_operand.vmem [shape: bf16[993,80], index: 2, kind: input, shape index: {}]   ;;  %s10898_s0 = inlined_call_operand.vmem [shape: bf16[8,16,993], index: 0, kind: input, shape index: {}]   ;;  %s10899_s1 = inlined_call_operand.vmem [shape: bf16[8,16,993], index: 1, kind: input, shape index: {}]   ;;  %s10900_s3 = inlined_call_operand.vmem [shape: f32[1,16], index: 3, kind: input, shape index: {}]   ;;  %s10901_s4 = inlined_call_operand.vmem [shape: f32[2,12,16], index: 4, kind: input, shape index: {}]   ;;  %s10902_s5 = inlined_call_operand.vmem [shape: f32[1,2], index: 5, kind: input, shape index: {}]   ;;  %s10903_s6 = inlined_call_operand.vmem [shape: f32[8,2], index: 6, kind: output, shape index: {}]  }
   0x1   :  { %704 = vmatprep.subr.bf16.mxu1 %v10904_v0  ;;  %v6844_v1 = vld [vmem:[%s10897_s2 + $0x40] sm:$0xff]   ;;  %v6861_v4 = vld [vmem:[%s10897_s2 + $0x48] sm:$0xff]   ;;  %v6879_v7 = vld [vmem:[%s10897_s2 + $0x50] sm:$0xff]   ;;  %v577_v54 = vsel %vm575_vm1, 65535, %v10904_v0  ;;  %s6801_s7 = smov 112   ;;  %s6802_s12 = smov 80  }
   0x2   :  { %v6849_v2 = vld [vmem:[%s10897_s2 + $0x180] sm:$0xff]   ;;  %5474 = vmatprep.subr.bf16.mxu0 %v6844_v1  ;;  %v6868_v5 = vld [vmem:[%s10897_s2 + $0x188] sm:$0xff]   ;;  %v6885_v8 = vld [vmem:[%s10897_s2 + $0x190] sm:$0xff]   ;;  %vm4813_vm1 = vcmask 125952   ;;  %s6803_s24 = smov 127  }
   0x3   :  { %v6855_v3 = vld [vmem:[%s10897_s2] sm:$0xff]   ;;  %705 = vmatpush1.bf16.msra.mxu1 %v6849_v2  ;;  %v6874_v6 = vld [vmem:[%s10897_s2 + $0x8] sm:$0xff]   ;;  %v6892_v9 = vld [vmem:[%s10897_s2 + $0x10] sm:$0xff]  }
   0x4   :  { %5475 = vmatpush3.bf16.msra.mxu0 %v6855_v3  ;;  %706 = vmatprep.subr.bf16.mxu1 %v10904_v0  ;;  %v6898_v10 = vld [vmem:[%s10897_s2 + $0x58] sm:$0xff]   ;;  %v6917_v13 = vld [vmem:[%s10897_s2 + $0x60] sm:$0xff]   ;;  %v6936_v16 = vld [vmem:[%s10897_s2 + $0x68] sm:$0xff]  }
   0x5   :  { %5476 = vmatprep.subr.bf16.mxu0 %v6861_v4  ;;  %v6904_v11 = vld [vmem:[%s10897_s2 + $0x198] sm:$0xff]   ;;  %v6923_v14 = vld [vmem:[%s10897_s2 + $0x1a0] sm:$0xff]   ;;  %v6942_v17 = vld [vmem:[%s10897_s2 + $0x1a8] sm:$0xff]  }
   0x6   :  { %v6911_v12 = vld [vmem:[%s10897_s2 + $0x18] sm:$0xff]   ;;  %v6930_v15 = vld [vmem:[%s10897_s2 + $0x20] sm:$0xff]   ;;  %v6949_v18 = vld [vmem:[%s10897_s2 + $0x28] sm:$0xff]  }
   0x7   :  { %707 = vmatpush1.bf16.msra.mxu1 %v6868_v5  ;;  %v6955_v19 = vld [vmem:[%s10897_s2 + $0x70] sm:$0xff]   ;;  %v149_v22 = vld [vmem:[%s10898_s0] sm:$0xff]  ;;  %v6980_v24 = vld [vmem:[%s10897_s2 + $0x78] sm:$0xff]  }
   0x8   :  { %5477 = vmatpush3.bf16.msra.mxu0 %v6874_v6  ;;  %708 = vmatprep.subr.bf16.mxu1 %v10904_v0  ;;  %v6960_v20 = vld [vmem:[%s10897_s2 + $0x1b0] sm:$0xff]   ;;  %v153_v23 = vld [vmem:[%s10898_s0 + $0x20] sm:$0xff]  ;;  %v6986_v26 = vld [vmem:[%s10897_s2 + $0x1b8] sm:$0xff]  }
   0x9   :  { %5478 = vmatprep.subr.bf16.mxu0 %v6879_v7  ;;  %v6966_v21 = vld [vmem:[%s10897_s2 + $0x30] sm:$0xff]   ;;  %v5151_v25 = vcombine.high %v149_v22, %v153_v23  ;;  %v6993_v27 = vld [vmem:[%s10897_s2 + $0x38] sm:$0xff]   ;;  %v6999_v28 = vld [vmem:[%s10897_s2 + $0xc0] sm:$0xff]   ;;  %v5150_v29 = vcombine.low %v149_v22, %v153_v23 }
   0xa   :  { %v7005_v30 = vld [vmem:[%s10897_s2 + $0x1c0] sm:$0xff]   ;;  %v7018_v32 = vld [vmem:[%s10897_s2 + $0xc8] sm:$0xff]   ;;  %v7037_v35 = vld [vmem:[%s10897_s2 + $0xd0] sm:$0xff]  }
   0xb   :  { %709 = vmatpush1.bf16.msra.mxu1 %v6885_v8  ;;  %613 = vmatprep.mubr.bf16.mxu0 %v5151_v25  ;;  %v7012_v31 = vld [vmem:[%s10897_s2 + $0x80] sm:$0xff]   ;;  %v7024_v33 = vld [vmem:[%s10897_s2 + $0x1c8] sm:$0xff]   ;;  %v7043_v36 = vld [vmem:[%s10897_s2 + $0x1d0] sm:$0xff]  }
   0xc   :  { %5479 = vmatpush3.bf16.msra.mxu0 %v6892_v9  ;;  %710 = vmatprep.subr.bf16.mxu1 %v10904_v0  ;;  %v7031_v34 = vld [vmem:[%s10897_s2 + $0x88] sm:$0xff]   ;;  %v7050_v37 = vld [vmem:[%s10897_s2 + $0x90] sm:$0xff]   ;;  %v7056_v38 = vld [vmem:[%s10897_s2 + $0xd8] sm:$0xff]  }
   0xd   :  { %5480 = vmatprep.subr.bf16.mxu0 %v6898_v10  ;;  %v7062_v39 = vld [vmem:[%s10897_s2 + $0x1d8] sm:$0xff]   ;;  %v7074_v41 = vld [vmem:[%s10897_s2 + $0xe0] sm:$0xff]   ;;  %v150_v47 = vld [vmem:[%s10898_s0 + $0x8] sm:$0xff] }
   0xe   :  { %v7069_v40 = vld [vmem:[%s10897_s2 + $0x98] sm:$0xff]   ;;  %11047 = vst [vmem:[#allocation5_spill] sm:$0xff] %v7074_v41  ;;  %v7086_v44 = vld [vmem:[%s10897_s2 + $0x1e0] sm:$0xff]   ;;  %v154_v48 = vld [vmem:[%s10898_s0 + $0x28] sm:$0xff] }
   0xf   :  { %711 = vmatpush1.bf16.msra.mxu1 %v6904_v11  ;;  %11046 = vst [vmem:[#allocation4_spill] sm:$0xff] %v7069_v40  ;;  %v152_v42 = vld [vmem:[%s10898_s0 + $0x18] sm:$0xff]  ;;  %v7092_v46 = vld [vmem:[%s10897_s2 + $0xa0] sm:$0xff]   ;;  %v7106_v49 = vld [vmem:[%s10897_s2 + $0xe8] sm:$0xff]   ;;  %v5153_v51 = vcombine.high %v150_v47, %v154_v48  ;;  %v5152_v63 = vcombine.low %v150_v47, %v154_v48 }
  0x10   :  { %5481 = vmatpush3.bf16.msra.mxu0 %v6911_v12  ;;  %712 = vmatprep.subr.bf16.mxu1 %v10904_v0  ;;  %v156_v43 = vld [vmem:[%s10898_s0 + $0x38] sm:$0xff]  ;;  %11048 = vst [vmem:[#allocation6_spill] sm:$0xff] %v7092_v46  ;;  %11049 = vst [vmem:[#allocation7_spill] sm:$0xff] %v7106_v49  ;;  %v6580_v50 = vld [vmem:[%s10897_s2 + $0x1f0] ss:$0 sps:$4 sm:$0x11]  }
  0x11   :  { %5482 = vmatprep.subr.bf16.mxu0 %v6917_v13  ;;  %v5157_v45 = vcombine.high %v152_v42, %v156_v43  ;;  %v7116_v52 = vld [vmem:[%s10897_s2 + $0x1e8] sm:$0xff]   ;;  %v7130_v55 = vld [vmem:[%s10897_s2 + $0xf0] sm:$0xff]   ;;  %v7133_v56 = vand.u32 %v6580_v50, %v577_v54  ;;  %v7146_v58 = vld [vmem:[%s10897_s2 + $0xf8] sm:$0xff]   ;;  %v5156_v59 = vcombine.low %v152_v42, %v156_v43 }
  0x12   :  { %v7123_v53 = vld [vmem:[%s10897_s2 + $0xa8] sm:$0xff]   ;;  %11051 = vst [vmem:[#allocation9_spill] sm:$0xff] %v7130_v55  ;;  %v7140_v57 = vld [vmem:[%s10897_s2 + $0xb0] sm:$0xff]   ;;  %11053 = vst [vmem:[#allocation11_spill] sm:$0xff] %v7146_v58 }
  0x13   :  { %713 = vmatpush1.bf16.msra.mxu1 %v6923_v14  ;;  %5221 = vmatprep.mubr.msk.bf16.mxu1 %vm571_vm0, %v5157_v45  ;;  %11050 = vst [vmem:[#allocation8_spill] sm:$0xff] %v7123_v53  ;;  %11052 = vst [vmem:[#allocation10_spill] sm:$0xff] %v7140_v57  ;;  %v7154_v60 = vld [vmem:[%s10897_s2 + $0xb8] sm:$0xff]   ;;  %v7160_v61 = vld [vmem:[%s10897_s2 + $0x140] sm:$0xff]  }
  0x14   :  { %5483 = vmatpush3.bf16.msra.mxu0 %v6930_v15  ;;  %714 = vmatprep.subr.bf16.mxu1 %v10904_v0  ;;  %11054 = vst [vmem:[#allocation12_spill] sm:$0xff] %v7154_v60  ;;  %v749_v62 = vld [vmem:[%s10899_s1 + $0x8] sm:$0xff]  ;;  %v7174_v23 = vld [vmem:[%s10897_s2 + $0x100] sm:$0xff]   ;;  %v151_v42 = vld [vmem:[%s10898_s0 + $0x10] sm:$0xff] }
  0x15   :  { %5484 = vmatprep.subr.bf16.mxu0 %v6936_v16  ;;  %v753_v22 = vld [vmem:[%s10899_s1 + $0x28] sm:$0xff]  ;;  %v155_v43 = vld [vmem:[%s10898_s0 + $0x30] sm:$0xff]  ;;  %v7222_v54 = vld [vmem:[%s10897_s2 + $0x118] sm:$0xff]  }
  0x16   :  { %v5225_v25 = vcombine.high %v749_v62, %v753_v22  ;;  %v5155_v45 = vcombine.high %v151_v42, %v155_v43  ;;  %v7194_v47 = vld [vmem:[%s10897_s2 + $0x108] sm:$0xff]   ;;  %v7200_v48 = vld [vmem:[%s10897_s2 + $0x150] sm:$0xff]  }
  0x17   :  { %715 = vmatpush1.bf16.msra.mxu1 %v6942_v17  ;;  %v7208_v50 = vld [vmem:[%s10897_s2 + $0x110] sm:$0xff]  }
  0x18   :  { %5485 = vmatpush3.bf16.msra.mxu0 %v6949_v18  ;;  %716 = vmatprep.subr.bf16.mxu1 %v10904_v0 }
  0x19   :  { %5486 = vmatprep.subr.bf16.mxu0 %v6955_v19 }
  0x1b   :  { %717 = vmatpush1.bf16.msra.mxu1 %v6960_v20 }
  0x1c   :  { %5487 = vmatpush3.bf16.msra.mxu0 %v6966_v21  ;;  %718 = vmatprep.subr.bf16.mxu1 %v10904_v0 }
  0x1d   :  { %5488 = vmatprep.subr.bf16.mxu0 %v6980_v24 }
  0x1f   :  { %719 = vmatpush1.bf16.msra.mxu1 %v6986_v26 }
  0x20   :  { %5489 = vmatpush3.bf16.msra.mxu0 %v6993_v27  ;;  %720 = vmatprep.subr.bf16.mxu1 %v10904_v0 }
  0x21   :  { %5496 = vmatprep.subr.bf16.mxu0 %v6999_v28 }
  0x23   :  { %614 = vmatmul.mubr.bf16.vlgmr.msra.gmra.mrb[0].mxu0 %v5150_v29  ;;  %721 = vmatpush1.bf16.msra.mxu1 %v7005_v30  ;;  %v7180_v29 = vld [vmem:[%s10897_s2 + $0x148] sm:$0xff]  }
  0x24   :  { %5497 = vmatpush3.bf16.msra.mxu0 %v7012_v31  ;;  %722 = vmatprep.subr.bf16.mxu1 %v10904_v0 }
  0x25   :  { %5498 = vmatprep.subr.bf16.mxu0 %v7018_v32  ;;  %654 = vmatprep.mubr.bf16.mxu0 %v5153_v51  ;;  %v7214_v51 = vld [vmem:[%s10897_s2 + $0x158] sm:$0xff]  }
  0x27   :  { %723 = vmatpush1.bf16.msra.mxu1 %v7024_v33 }
  0x28   :  { %5499 = vmatpush3.bf16.msra.mxu0 %v7031_v34  ;;  %724 = vmatprep.subr.bf16.mxu1 %v10904_v0 }
  0x29   :  { %5500 = vmatprep.subr.bf16.mxu0 %v7037_v35 }
  0x2b   :  { %725 = vmatpush1.bf16.msra.mxu1 %v7043_v36 }
  0x2c   :  { %5501 = vmatpush3.bf16.msra.mxu0 %v7050_v37  ;;  %726 = vmatprep.subr.bf16.mxu1 %v10904_v0 }
  0x2d   :  { %5502 = vmatprep.subr.bf16.mxu0 %v7056_v38 }
  0x2f   :  { %727 = vmatpush1.bf16.msra.mxu1 %v7062_v39 }
  0x30   :  { %5503 = vmatpush3.bf16.msra.mxu0 %v7069_v40  ;;  %728 = vmatprep.subr.bf16.mxu1 %v10904_v0 }
  0x31   :  { %5504 = vmatprep.subr.bf16.mxu0 %v7074_v41 }
  0x33   :  { %729 = vmatpush1.bf16.msra.mxu1 %v7086_v44 }
  0x34   :  { %5505 = vmatpush3.bf16.msra.mxu0 %v7092_v46  ;;  %730 = vmatprep.subr.bf16.mxu1 %v10904_v0 }
  0x35   :  { %5506 = vmatprep.subr.bf16.mxu0 %v7106_v49 }
  0x37   :  { %731 = vmatpush1.bf16.msra.mxu1 %v7116_v52 }
  0x38   :  { %5507 = vmatpush3.bf16.msra.mxu0 %v7123_v53  ;;  %732 = vmatprep.subr.bf16.mxu1 %v10904_v0  ;;  %v7256_v0 = vld [vmem:[%s10897_s2 + $0x170] sm:$0xff]  }
  0x39   :  { %5508 = vmatprep.subr.bf16.mxu0 %v7130_v55 }
  0x3b   :  { %733 = vmatpush1.bf16.msra.mxu1 %v7133_v56 }
  0x3c   :  { %5509 = vmatpush3.bf16.msra.mxu0 %v7140_v57  ;;  %5562 = vmatprep.subr.bf16.mxu1 %v6999_v28 }
  0x3d   :  { %5510 = vmatprep.subr.bf16.mxu0 %v7146_v58 }
  0x3e   :  { %737 = vmatmul.mubr.bf16.vlgmr.msra.gmra.mrb[0].mxu1 %v5156_v59  ;;  %v7228_v59 = vld [vmem:[%s10897_s2 + $0x160] sm:$0xff]  }
  0x3f   :  { %5563 = vmatpush3.bf16.msra.mxu1 %v7012_v31  ;;  %871 = vmatprep.mubr.bf16.mxu1 %v5225_v25  ;;  %v7242_v25 = vld [vmem:[%s10897_s2 + $0x168] sm:$0xff]  }
  0x40   :  { %5511 = vmatpush3.bf16.msra.mxu0 %v7154_v60  ;;  %5564 = vmatprep.subr.bf16.mxu1 %v7018_v32 }
  0x41   :  { %5518 = vmatprep.subr.bf16.mxu0 %v7160_v61 }
  0x43   :  { %655 = vmatmul.mubr.bf16.vlgmr.msra.gmra.mrb[4].mxu0 %v5152_v63  ;;  %5565 = vmatpush3.bf16.msra.mxu1 %v7031_v34  ;;  %v7236_v63 = vld [vmem:[%s10897_s2 + $0x120] sm:$0xff]  }
  0x44   :  { %5519 = vmatpush3.bf16.msra.mxu0 %v7174_v23  ;;  %5566 = vmatprep.subr.bf16.mxu1 %v7037_v35 }
  0x45   :  { %5520 = vmatprep.subr.bf16.mxu0 %v7180_v29  ;;  %695 = vmatprep.mubr.bf16.mxu0 %v5155_v45  ;;  %v7250_v45 = vld [vmem:[%s10897_s2 + $0x128] sm:$0xff]  }
  0x47   :  { %5567 = vmatpush3.bf16.msra.mxu1 %v7050_v37 }
  0x48   :  { %5521 = vmatpush3.bf16.msra.mxu0 %v7194_v47  ;;  %5568 = vmatprep.subr.bf16.mxu1 %v7056_v38 }
  0x49   :  { %5522 = vmatprep.subr.bf16.mxu0 %v7200_v48 }
  0x4b   :  { %5569 = vmatpush3.bf16.msra.mxu1 %v7069_v40  ;;  %v7290_v40 = vld [vmem:[%s10897_s2 + $0x138] sm:$0xff]  }
  0x4c   :  { %5523 = vmatpush3.bf16.msra.mxu0 %v7208_v50  ;;  %5570 = vmatprep.subr.bf16.mxu1 %v7074_v41  ;;  %v11055_v41 = vmov 0  }
  0x4d   :  { %5524 = vmatprep.subr.bf16.mxu0 %v7214_v51 }
  0x4f   :  { %5571 = vmatpush3.bf16.msra.mxu1 %v7092_v46 }
  0x50   :  { %5525 = vmatpush3.bf16.msra.mxu0 %v7222_v54  ;;  %5572 = vmatprep.subr.bf16.mxu1 %v7106_v49  ;;  %v7274_v49 = vld [vmem:[%s10899_s1 + $0x38] sm:$0xff] }
  0x51   :  { %5526 = vmatprep.subr.bf16.mxu0 %v7228_v59 }
  0x53   :  { %5573 = vmatpush3.bf16.msra.mxu1 %v7123_v53  ;;  %v7269_v53 = vld [vmem:[%s10899_s1 + $0x18] sm:$0xff] }
  0x54   :  { %5527 = vmatpush3.bf16.msra.mxu0 %v7236_v63  ;;  %5574 = vmatprep.subr.bf16.mxu1 %v7130_v55  ;;  %v7264_v55 = vld [vmem:[%s10897_s2 + $0x130] sm:$0xff]   ;;  %v5229_v46 = vcombine.high %v7269_v53, %v7274_v49 }
  0x55   :  { %5528 = vmatprep.subr.bf16.mxu0 %v7242_v25 }
  0x57   :  { %5575 = vmatpush3.bf16.msra.mxu1 %v7140_v57  ;;  %v5224_v57 = vcombine.low %v749_v62, %v753_v22  ;;  %v748_v62 = vld [vmem:[%s10899_s1] sm:$0xff] }
  0x58   :  { %5529 = vmatpush3.bf16.msra.mxu0 %v7250_v45  ;;  %5576 = vmatprep.subr.bf16.mxu1 %v7146_v58  ;;  %v7280_v58 = vld [vmem:[%s10897_s2 + $0x178] sm:$0xff]   ;;  %v752_v22 = vld [vmem:[%s10899_s1 + $0x20] sm:$0xff] }
  0x59   :  { %5530 = vmatprep.subr.bf16.mxu0 %v7256_v0 }
  0x5b   :  { %5577 = vmatpush3.bf16.msra.mxu1 %v7154_v60  ;;  %v5154_v60 = vcombine.low %v151_v42, %v155_v43  ;;  %v5222_v42 = vcombine.low %v748_v62, %v752_v22 }
  0x5c   :  { %5531 = vmatpush3.bf16.msra.mxu0 %v7264_v55  ;;  %921 = vmatprep.subr.bf16.mxu1 %v11055_v41 }
  0x5d   :  { %5532 = vmatprep.subr.bf16.mxu0 %v7280_v58 }
  0x5e   :  { %872 = vmatmul.mubr.bf16.vlgmr.msra.gmra.mrb[4].mxu1 %v5224_v57  ;;  %v5223_v57 = vcombine.high %v748_v62, %v752_v22  ;;  %v5233_v62 = vld [vmem:[%s10898_s0 + $0x50] sm:$0xff] }
  0x5f   :  { %922 = vmatpush1.bf16.msra.mxu1 %v6849_v2  ;;  %5230 = vmatprep.mubr.msk.bf16.mxu1 %vm571_vm0, %v5229_v46  ;;  %v750_v46 = vld [vmem:[%s10899_s1 + $0x10] sm:$0xff] }
  0x60   :  { %5533 = vmatpush3.bf16.msra.mxu0 %v7290_v40  ;;  %923 = vmatprep.subr.bf16.mxu1 %v11055_v41  ;;  %v5237_v22 = vld [vmem:[%s10898_s0 + $0x70] sm:$0xff] }
  0x61   :  { %5540 = vmatprep.subr.bf16.mxu0 %v6844_v1 }
  0x63   :  { %696 = vmatmul.mubr.bf16.vlgmr.msra.gmra.mrb[8].mxu0 %v5154_v60  ;;  %924 = vmatpush1.bf16.msra.mxu1 %v6868_v5  ;;  %v754_v60 = vld [vmem:[%s10899_s1 + $0x30] sm:$0xff] }
  0x64   :  { %5541 = vmatpush3.bf16.msra.mxu0 %v6855_v3  ;;  %925 = vmatprep.subr.bf16.mxu1 %v11055_v41  ;;  %v5227_v43 = vcombine.high %v750_v46, %v754_v60 }
  0x65   :  { %5542 = vmatprep.subr.bf16.mxu0 %v6861_v4  ;;  %830 = vmatprep.mubr.bf16.mxu0 %v5223_v57  ;;  %v5228_v57 = vcombine.low %v7269_v53, %v7274_v49  ;;  %v5231_v49 = vld [vmem:[%s10898_s0 + $0x40] sm:$0xff] }
  0x66   :  { %v5235_v53 = vld [vmem:[%s10898_s0 + $0x60] sm:$0xff] }
  0x67   :  { %926 = vmatpush1.bf16.msra.mxu1 %v6885_v8 }
  0x68   :  { %5543 = vmatpush3.bf16.msra.mxu0 %v6874_v6  ;;  %927 = vmatprep.subr.bf16.mxu1 %v11055_v41 }
  0x69   :  { %5544 = vmatprep.subr.bf16.mxu0 %v6879_v7 }
  0x6b   :  { %928 = vmatpush1.bf16.msra.mxu1 %v6904_v11 }
  0x6c   :  { %5545 = vmatpush3.bf16.msra.mxu0 %v6892_v9  ;;  %929 = vmatprep.subr.bf16.mxu1 %v11055_v41 }
  0x6d   :  { %5546 = vmatprep.subr.bf16.mxu0 %v6898_v10 }
  0x6f   :  { %930 = vmatpush1.bf16.msra.mxu1 %v6923_v14 }
  0x70   :  { %5547 = vmatpush3.bf16.msra.mxu0 %v6911_v12  ;;  %931 = vmatprep.subr.bf16.mxu1 %v11055_v41 }
  0x71   :  { %5548 = vmatprep.subr.bf16.mxu0 %v6917_v13 }
  0x73   :  { %932 = vmatpush1.bf16.msra.mxu1 %v6942_v17 }
  0x74   :  { %5549 = vmatpush3.bf16.msra.mxu0 %v6930_v15  ;;  %933 = vmatprep.subr.bf16.mxu1 %v11055_v41 }
  0x75   :  { %5550 = vmatprep.subr.bf16.mxu0 %v6936_v16 }
  0x77   :  { %934 = vmatpush1.bf16.msra.mxu1 %v6960_v20 }
  0x78   :  { %5551 = vmatpush3.bf16.msra.mxu0 %v6949_v18  ;;  %935 = vmatprep.subr.bf16.mxu1 %v11055_v41 }
  0x79   :  { %5552 = vmatprep.subr.bf16.mxu0 %v6955_v19 }
  0x7b   :  { %936 = vmatpush1.bf16.msra.mxu1 %v6986_v26 }
  0x7c   :  { %5553 = vmatpush3.bf16.msra.mxu0 %v6966_v21  ;;  %937 = vmatprep.subr.bf16.mxu1 %v11055_v41 }
  0x7d   :  { %5554 = vmatprep.subr.bf16.mxu0 %v6980_v24 }
  0x7f   :  { %938 = vmatpush1.bf16.msra.mxu1 %v7005_v30 }
  0x80   :  { %5555 = vmatpush3.bf16.msra.mxu0 %v6993_v27  ;;  %939 = vmatprep.subr.bf16.mxu1 %v11055_v41 }
  0x81   :  { %5584 = vmatprep.subr.bf16.mxu0 %v7160_v61 }
  0x83   :  { %831 = vmatmul.mubr.bf16.vlgmr.msra.gmra.mrb[12].mxu0 %v5222_v42  ;;  %940 = vmatpush1.bf16.msra.mxu1 %v7024_v33  ;;  %v5244_v42 = vcombine.high %v5233_v62, %v5237_v22 }
  0x84   :  { %5585 = vmatpush3.bf16.msra.mxu0 %v7174_v23  ;;  %941 = vmatprep.subr.bf16.mxu1 %v11055_v41 }
  0x85   :  { %5586 = vmatprep.subr.bf16.mxu0 %v7180_v29  ;;  %912 = vmatprep.mubr.bf16.mxu0 %v5227_v43  ;;  %v5226_v43 = vcombine.low %v750_v46, %v754_v60  ;;  %v5248_v46 = vld [vmem:[%s10899_s1 + $0x40] sm:$0xff] }
  0x86   :  { %v5252_v60 = vld [vmem:[%s10899_s1 + $0x60] sm:$0xff] }
  0x87   :  { %942 = vmatpush1.bf16.msra.mxu1 %v7043_v36 }
  0x88   :  { %5587 = vmatpush3.bf16.msra.mxu0 %v7194_v47  ;;  %943 = vmatprep.subr.bf16.mxu1 %v11055_v41 }
  0x89   :  { %5588 = vmatprep.subr.bf16.mxu0 %v7200_v48 }
  0x8b   :  { %944 = vmatpush1.bf16.msra.mxu1 %v7062_v39 }
  0x8c   :  { %5589 = vmatpush3.bf16.msra.mxu0 %v7208_v50  ;;  %945 = vmatprep.subr.bf16.mxu1 %v11055_v41 }
  0x8d   :  { %5590 = vmatprep.subr.bf16.mxu0 %v7214_v51 }
  0x8f   :  { %946 = vmatpush1.bf16.msra.mxu1 %v7086_v44 }
  0x90   :  { %5591 = vmatpush3.bf16.msra.mxu0 %v7222_v54  ;;  %947 = vmatprep.subr.bf16.mxu1 %v11055_v41 }
  0x91   :  { %5592 = vmatprep.subr.bf16.mxu0 %v7228_v59 }
  0x93   :  { %948 = vmatpush1.bf16.msra.mxu1 %v7116_v52 }
  0x94   :  { %5593 = vmatpush3.bf16.msra.mxu0 %v7236_v63  ;;  %949 = vmatprep.subr.bf16.mxu1 %v11055_v41 }
  0x95   :  { %5594 = vmatprep.subr.bf16.mxu0 %v7242_v25 }
  0x97   :  { %950 = vmatpush1.bf16.msra.mxu1 %v7133_v56 }
  0x98   :  { %5595 = vmatpush3.bf16.msra.mxu0 %v7250_v45  ;;  %5650 = vmatprep.subr.bf16.mxu1 %v7160_v61 }
  0x99   :  { %5596 = vmatprep.subr.bf16.mxu0 %v7256_v0 }
  0x9a   :  { %954 = vmatmul.mubr.bf16.vlgmr.msra.gmra.mrb[8].mxu1 %v5228_v57  ;;  %v5240_v57 = vcombine.high %v5231_v49, %v5235_v53 }
  0x9b   :  { %5651 = vmatpush3.bf16.msra.mxu1 %v7174_v23  ;;  %1129 = vmatprep.mubr.bf16.mxu1 %v5244_v42  ;;  %v5243_v42 = vcombine.low %v5233_v62, %v5237_v22  ;;  %v5232_v62 = vld [vmem:[%s10898_s0 + $0x48] sm:$0xff]  ;;  %v5239_v22 = vcombine.low %v5231_v49, %v5235_v53 }
  0x9c   :  { %5597 = vmatpush3.bf16.msra.mxu0 %v7264_v55  ;;  %5652 = vmatprep.subr.bf16.mxu1 %v7180_v29 }
  0x9d   :  { %5598 = vmatprep.subr.bf16.mxu0 %v7280_v58 }
  0x9f   :  { %5653 = vmatpush3.bf16.msra.mxu1 %v7194_v47 }
  0xa0   :  { %5599 = vmatpush3.bf16.msra.mxu0 %v7290_v40  ;;  %5654 = vmatprep.subr.bf16.mxu1 %v7200_v48 }
  0xa1   :  { %5606 = vmatprep.subr.bf16.mxu0 %v6844_v1 }
  0xa3   :  { %913 = vmatmul.mubr.bf16.vlgmr.msra.gmra.mrb[16].mxu0 %v5226_v43  ;;  %5655 = vmatpush3.bf16.msra.mxu1 %v7208_v50  ;;  %v5257_v43 = vcombine.high %v5248_v46, %v5252_v60 }
  0xa4   :  { %5607 = vmatpush3.bf16.msra.mxu0 %v6855_v3  ;;  %5656 = vmatprep.subr.bf16.mxu1 %v7214_v51 }
  0xa5   :  { %5608 = vmatprep.subr.bf16.mxu0 %v6861_v4  ;;  %1047 = vmatprep.mubr.bf16.mxu0 %v5240_v57 }
  0xa7   :  { %5657 = vmatpush3.bf16.msra.mxu1 %v7222_v54 }
  0xa8   :  { %5609 = vmatpush3.bf16.msra.mxu0 %v6874_v6  ;;  %5658 = vmatprep.subr.bf16.mxu1 %v7228_v59 }
  0xa9   :  { %5610 = vmatprep.subr.bf16.mxu0 %v6879_v7 }
  0xab   :  { %5659 = vmatpush3.bf16.msra.mxu1 %v7236_v63 }
  0xac   :  { %5611 = vmatpush3.bf16.msra.mxu0 %v6892_v9  ;;  %5660 = vmatprep.subr.bf16.mxu1 %v7242_v25 }
  0xad   :  { %5612 = vmatprep.subr.bf16.mxu0 %v6898_v10 }
  0xaf   :  { %5661 = vmatpush3.bf16.msra.mxu1 %v7250_v45 }
  0xb0   :  { %5613 = vmatpush3.bf16.msra.mxu0 %v6911_v12  ;;  %5662 = vmatprep.subr.bf16.mxu1 %v7256_v0 }
  0xb1   :  { %5614 = vmatprep.subr.bf16.mxu0 %v6917_v13 }
  0xb3   :  { %5663 = vmatpush3.bf16.msra.mxu1 %v7264_v55 }
  0xb4   :  { %5615 = vmatpush3.bf16.msra.mxu0 %v6930_v15  ;;  %5664 = vmatprep.subr.bf16.mxu1 %v7280_v58 }
  0xb5   :  { %5616 = vmatprep.subr.bf16.mxu0 %v6936_v16 }
  0xb7   :  { %5665 = vmatpush3.bf16.msra.mxu1 %v7290_v40 }
  0xb8   :  { %5617 = vmatpush3.bf16.msra.mxu0 %v6949_v18  ;;  %5672 = vmatprep.subr.bf16.mxu1 %v6844_v1  ;;  %v5236_v1 = vld [vmem:[%s10898_s0 + $0x68] sm:$0xff] }
  0xb9   :  { %5618 = vmatprep.subr.bf16.mxu0 %v6955_v19 }
  0xba   :  { %1130 = vmatmul.mubr.bf16.vlgmr.msra.gmra.mrb[12].mxu1 %v5243_v42  ;;  %v7541_v42 = vld [vmem:[%s10897_s2 + $0x190] sm:$0xff]  }
  0xbb   :  { %5673 = vmatpush3.bf16.msra.mxu1 %v6855_v3  ;;  %1265 = vmatprep.mubr.bf16.mxu1 %v5257_v43  ;;  %v5242_v3 = vcombine.high %v5232_v62, %v5236_v1 }
  0xbc   :  { %5619 = vmatpush3.bf16.msra.mxu0 %v6966_v21  ;;  %5674 = vmatprep.subr.bf16.mxu1 %v6861_v4  ;;  %v11056_v4 = vld [vmem:[#allocation4_spill] sm:$0xff] }
  0xbd   :  { %5620 = vmatprep.subr.bf16.mxu0 %v6980_v24 }
  0xbf   :  { %5675 = vmatpush3.bf16.msra.mxu1 %v6874_v6  ;;  %v11057_v6 = vld [vmem:[#allocation5_spill] sm:$0xff] }
  0xc0   :  { %5621 = vmatpush3.bf16.msra.mxu0 %v6993_v27  ;;  %5676 = vmatprep.subr.bf16.mxu1 %v6879_v7  ;;  %v11058_v7 = vld [vmem:[#allocation6_spill] sm:$0xff] }
  0xc1   :  { %5628 = vmatprep.subr.bf16.mxu0 %v6999_v28 }
  0xc3   :  { %1048 = vmatmul.mubr.bf16.vlgmr.msra.gmra.mrb[20].mxu0 %v5239_v22  ;;  %5677 = vmatpush3.bf16.msra.mxu1 %v6892_v9  ;;  %v5249_v9 = vld [vmem:[%s10899_s1 + $0x48] sm:$0xff] }
  0xc4   :  { %5629 = vmatpush3.bf16.msra.mxu0 %v7012_v31  ;;  %5678 = vmatprep.subr.bf16.mxu1 %v6898_v10  ;;  %v5253_v10 = vld [vmem:[%s10899_s1 + $0x68] sm:$0xff] }
  0xc5   :  { %5630 = vmatprep.subr.bf16.mxu0 %v7018_v32  ;;  %1088 = vmatprep.mubr.bf16.mxu0 %v5242_v3 }
  0xc7   :  { %5679 = vmatpush3.bf16.msra.mxu1 %v6911_v12  ;;  %v11059_v12 = vld [vmem:[#allocation7_spill] sm:$0xff] }
  0xc8   :  { %5631 = vmatpush3.bf16.msra.mxu0 %v7031_v34  ;;  %5680 = vmatprep.subr.bf16.mxu1 %v6917_v13  ;;  %v5256_v13 = vcombine.low %v5248_v46, %v5252_v60  ;;  %v7522_v46 = vld [vmem:[%s10897_s2 + $0x180] sm:$0xff]   ;;  %v7532_v60 = vld [vmem:[%s10897_s2 + $0x188] sm:$0xff]  }
  0xc9   :  { %5632 = vmatprep.subr.bf16.mxu0 %v7037_v35 }
  0xcb   :  { %5681 = vmatpush3.bf16.msra.mxu1 %v6930_v15  ;;  %v5259_v15 = vcombine.high %v5249_v9, %v5253_v10 }
  0xcc   :  { %5633 = vmatpush3.bf16.msra.mxu0 %v7050_v37  ;;  %5682 = vmatprep.subr.bf16.mxu1 %v6936_v16  ;;  %v11060_v16 = vld [vmem:[#allocation8_spill] sm:$0xff] }
  0xcd   :  { %5634 = vmatprep.subr.bf16.mxu0 %v7056_v38 }
  0xcf   :  { %5683 = vmatpush3.bf16.msra.mxu1 %v6949_v18  ;;  %v11061_v18 = vld [vmem:[#allocation9_spill] sm:$0xff] }
  0xd0   :  { %5635 = vmatpush3.bf16.msra.mxu0 %v11056_v4  ;;  %5684 = vmatprep.subr.bf16.mxu1 %v6955_v19  ;;  %v11062_v19 = vld [vmem:[#allocation10_spill] sm:$0xff] }
  0xd1   :  { %5636 = vmatprep.subr.bf16.mxu0 %v11057_v6 }
  0xd3   :  { %5685 = vmatpush3.bf16.msra.mxu1 %v6966_v21  ;;  %v11063_v21 = vld [vmem:[#allocation11_spill] sm:$0xff] }
  0xd4   :  { %5637 = vmatpush3.bf16.msra.mxu0 %v11058_v7  ;;  %5686 = vmatprep.subr.bf16.mxu1 %v6980_v24  ;;  %v7469_v24 = vld [vmem:[%s10898_s0 + $0x58] sm:$0xff] }
  0xd5   :  { %5638 = vmatprep.subr.bf16.mxu0 %v11059_v12 }
  0xd7   :  { %5687 = vmatpush3.bf16.msra.mxu1 %v6993_v27  ;;  %v7474_v27 = vld [vmem:[%s10898_s0 + $0x78] sm:$0xff] }
  0xd8   :  { %5639 = vmatpush3.bf16.msra.mxu0 %v11060_v16  ;;  %5694 = vmatprep.subr.bf16.mxu1 %v6999_v28  ;;  %v5241_v28 = vcombine.low %v5232_v62, %v5236_v1 }
  0xd9   :  { %5640 = vmatprep.subr.bf16.mxu0 %v11061_v18 }
  0xda   :  { %1266 = vmatmul.mubr.bf16.vlgmr.msra.gmra.mrb[16].mxu1 %v5256_v13 }
  0xdb   :  { %5695 = vmatpush3.bf16.msra.mxu1 %v7012_v31  ;;  %1306 = vmatprep.mubr.bf16.mxu1 %v5259_v15  ;;  %v11064_v31 = vld [vmem:[#allocation12_spill] sm:$0xff] }
  0xdc   :  { %5641 = vmatpush3.bf16.msra.mxu0 %v11062_v19  ;;  %5696 = vmatprep.subr.bf16.mxu1 %v7018_v32  ;;  %v5246_v32 = vcombine.high %v7469_v24, %v7474_v27 }
  0xdd   :  { %5642 = vmatprep.subr.bf16.mxu0 %v11063_v21 }
  0xdf   :  { %5697 = vmatpush3.bf16.msra.mxu1 %v7031_v34  ;;  %v5258_v34 = vcombine.low %v5249_v9, %v5253_v10  ;;  %v5245_v9 = vcombine.low %v7469_v24, %v7474_v27 }
  0xe0   :  { %5643 = vmatpush3.bf16.msra.mxu0 %v11064_v31  ;;  %5698 = vmatprep.subr.bf16.mxu1 %v7037_v35 }
  0xe1   :  { %1138 = vmatprep.subr.bf16.mxu0 %v11055_v41 }
  0xe3   :  { %1089 = vmatmul.mubr.bf16.vlgmr.msra.gmra.mrb[24].mxu0 %v5241_v28  ;;  %5699 = vmatpush3.bf16.msra.mxu1 %v7050_v37 }
  0xe4   :  { %1139 = vmatpush1.bf16.msra.mxu0 %v6849_v2  ;;  %5700 = vmatprep.subr.bf16.mxu1 %v7056_v38  ;;  %v7505_v2 = vld [vmem:[%s10899_s1 + $0x58] sm:$0xff] }
  0xe5   :  { %1140 = vmatprep.subr.bf16.mxu0 %v11055_v41  ;;  %5247 = vmatprep.mubr.msk.bf16.mxu0 %vm571_vm0, %v5246_v32  ;;  %v7638_v32 = vld [vmem:[%s10898_s0 + $0x80] sm:$0xff] }
  0xe7   :  { %5701 = vmatpush3.bf16.msra.mxu1 %v11056_v4 }
  0xe8   :  { %1141 = vmatpush1.bf16.msra.mxu0 %v6868_v5  ;;  %5702 = vmatprep.subr.bf16.mxu1 %v11057_v6  ;;  %v7510_v5 = vld [vmem:[%s10899_s1 + $0x78] sm:$0xff] }
  0xe9   :  { %1142 = vmatprep.subr.bf16.mxu0 %v11055_v41  ;;  %v5263_v37 = vcombine.high %v7505_v2, %v7510_v5 }
  0xeb   :  { %5703 = vmatpush3.bf16.msra.mxu1 %v11058_v7  ;;  %v7574_v7 = vld [vmem:[%s10899_s1 + $0x50] sm:$0xff] }
  0xec   :  { %1143 = vmatpush1.bf16.msra.mxu0 %v6885_v8  ;;  %5704 = vmatprep.subr.bf16.mxu1 %v11059_v12 }
  0xed   :  { %1144 = vmatprep.subr.bf16.mxu0 %v11055_v41 }
  0xef   :  { %5705 = vmatpush3.bf16.msra.mxu1 %v11060_v16 }
  0xf0   :  { %1145 = vmatpush1.bf16.msra.mxu0 %v6904_v11  ;;  %5706 = vmatprep.subr.bf16.mxu1 %v11061_v18 }
  0xf1   :  { %1146 = vmatprep.subr.bf16.mxu0 %v11055_v41 }
  0xf3   :  { %5707 = vmatpush3.bf16.msra.mxu1 %v11062_v19 }
  0xf4   :  { %1147 = vmatpush1.bf16.msra.mxu0 %v6923_v14  ;;  %5708 = vmatprep.subr.bf16.mxu1 %v11063_v21 }
  0xf5   :  { %1148 = vmatprep.subr.bf16.mxu0 %v11055_v41 }
  0xf6   :  { %v5490_v8 = vpop.f32.mrb[0].mxu0 }
  0xf7   :  { %v5491_v35 = vpop.f32.mrb[1].mxu0  ;;  %5709 = vmatpush3.bf16.msra.mxu1 %v11064_v31 }
  0xf8   :  { %v5492_v38 = vadd.f32 %v5491_v35, %v5490_v8  ;;  %v5493_v49 = vpop.f32.mrb[2].mxu0  ;;  %1149 = vmatpush1.bf16.msra.mxu0 %v6942_v17  ;;  %1356 = vmatprep.subr.bf16.mxu1 %v11055_v41  ;;  %v7654_v8 = vld [vmem:[%s10897_s2 + $0x40] sm:$0xff]   ;;  %v7673_v35 = vld [vmem:[%s10897_s2 + $0x48] sm:$0xff]  }
  0xf9   :  { %v5494_v53 = vpop.f32.mrb[3].mxu0  ;;  %1150 = vmatprep.subr.bf16.mxu0 %v11055_v41 }
  0xfa   :  { %v5495_v57 = vadd.f32 %v5494_v53, %v5493_v49  ;;  %1307 = vmatmul.mubr.bf16.vlgmr.msra.gmra.mrb[20].mxu1 %v5258_v34  ;;  %v7710_v49 = vld [vmem:[%s10897_s2 + $0x18] sm:$0xff]   ;;  %v7726_v53 = vld [vmem:[%s10897_s2 + $0x20] sm:$0xff]  }
  0xfb   :  { %1357 = vmatpush1.bf16.msra.mxu1 %v7522_v46  ;;  %5264 = vmatprep.mubr.msk.bf16.mxu1 %vm571_vm0, %v5263_v37 }
  0xfc   :  { %1151 = vmatpush1.bf16.msra.mxu0 %v6960_v20  ;;  %1358 = vmatprep.subr.bf16.mxu1 %v11055_v41 }
  0xfd   :  { %1152 = vmatprep.subr.bf16.mxu0 %v11055_v41 }
  0xff   :  { %1359 = vmatpush1.bf16.msra.mxu1 %v7532_v60 }
 0x100   :  { %1153 = vmatpush1.bf16.msra.mxu0 %v6986_v26  ;;  %1360 = vmatprep.subr.bf16.mxu1 %v11055_v41 }
 0x101   :  { %1154 = vmatprep.subr.bf16.mxu0 %v11055_v41 }
 0x103   :  { %1361 = vmatpush1.bf16.msra.mxu1 %v7541_v42 }
 0x104   :  { %1155 = vmatpush1.bf16.msra.mxu0 %v7005_v30  ;;  %1362 = vmatprep.subr.bf16.mxu1 %v11055_v41 }
 0x105   :  { %1156 = vmatprep.subr.bf16.mxu0 %v11055_v41 }
 0x107   :  { %1363 = vmatpush1.bf16.msra.mxu1 %v6904_v11 }
 0x108   :  { %1157 = vmatpush1.bf16.msra.mxu0 %v7024_v33  ;;  %1364 = vmatprep.subr.bf16.mxu1 %v11055_v41 }
 0x109   :  { %1158 = vmatprep.subr.bf16.mxu0 %v11055_v41 }
 0x10b   :  { %1365 = vmatpush1.bf16.msra.mxu1 %v6923_v14 }
 0x10c   :  { %1159 = vmatpush1.bf16.msra.mxu0 %v7043_v36  ;;  %1366 = vmatprep.subr.bf16.mxu1 %v11055_v41 }
 0x10d   :  { %1160 = vmatprep.subr.bf16.mxu0 %v11055_v41 }
 0x10f   :  { %1367 = vmatpush1.bf16.msra.mxu1 %v6942_v17 }
 0x110   :  { %1161 = vmatpush1.bf16.msra.mxu0 %v7062_v39  ;;  %1368 = vmatprep.subr.bf16.mxu1 %v11055_v41 }
 0x111   :  { %1162 = vmatprep.subr.bf16.mxu0 %v11055_v41  ;;  %v7559_v11 = vpop.f32.mrb[0].mxu1 }
 0x112   :  { %v740_v43 = vpop.f32.mrb[1].mxu1 }
 0x113   :  { %1369 = vmatpush1.bf16.msra.mxu1 %v6960_v20  ;;  %v7562_v14 = vpop.f32.mrb[2].mxu1 }
 0x114   :  { %1163 = vmatpush1.bf16.msra.mxu0 %v7086_v44  ;;  %1370 = vmatprep.subr.bf16.mxu1 %v11055_v41  ;;  %v743_v62 = vpop.f32.mrb[3].mxu1 }
 0x115   :  { %1164 = vmatprep.subr.bf16.mxu0 %v11055_v41 }
 0x116   :  { %v5512_v17 = vpop.f32.mrb[4].mxu0 }
 0x117   :  { %v5513_v1 = vpop.f32.mrb[5].mxu0  ;;  %1371 = vmatpush1.bf16.msra.mxu1 %v6986_v26  ;;  %v7579_v26 = vld [vmem:[%s10899_s1 + $0x70] sm:$0xff] }
 0x118   :  { %v5514_v22 = vadd.f32 %v5513_v1, %v5512_v17  ;;  %v5515_v3 = vpop.f32.mrb[6].mxu0  ;;  %1165 = vmatpush1.bf16.msra.mxu0 %v7116_v52  ;;  %1372 = vmatprep.subr.bf16.mxu1 %v11055_v41  ;;  %v5261_v12 = vcombine.high %v7574_v7, %v7579_v26 }
 0x119   :  { %v5516_v20 = vpop.f32.mrb[7].mxu0  ;;  %1166 = vmatprep.subr.bf16.mxu0 %v11055_v41 }
 0x11a   :  { %v657_v4 = vadd.f32 %v5514_v22, %v5492_v38  ;;  %v5517_v6 = vadd.f32 %v5516_v20, %v5515_v3  ;;  %v7694_v38 = vld [vmem:[%s10897_s2 + $0x10] sm:$0xff]   ;;  %v7779_v20 = vld [vmem:[%s10897_s2 + $0x78] sm:$0xff]  }
 0x11b   :  { %1373 = vmatpush1.bf16.msra.mxu1 %v7005_v30  ;;  %v7611_v30 = vld [vmem:[%s10898_s0 + $0x90] sm:$0xff] }
 0x11c   :  { %v660_v10 = vadd.f32 %v5517_v6, %v5495_v57  ;;  %1167 = vmatpush1.bf16.msra.mxu0 %v7133_v56  ;;  %1374 = vmatprep.subr.bf16.mxu1 %v11055_v41  ;;  %v7738_v57 = vld [vmem:[%s10899_s1 + $0xa0] sm:$0xff]  ;;  %v7771_v22 = vld [vmem:[%s10897_s2 + $0x30] sm:$0xff]  }
 0x11d   :  { %5716 = vmatprep.subr.bf16.mxu0 %v7160_v61 }
 0x11f   :  { %1171 = vmatmul.mubr.bf16.vlgmr.msra.gmra.mrb[28].mxu0 %v5245_v9  ;;  %1375 = vmatpush1.bf16.msra.mxu1 %v7024_v33  ;;  %v7616_v33 = vld [vmem:[%s10898_s0 + $0xb0] sm:$0xff] }
 0x120   :  { %5717 = vmatpush3.bf16.msra.mxu0 %v7174_v23  ;;  %1376 = vmatprep.subr.bf16.mxu1 %v11055_v41  ;;  %v5278_v15 = vcombine.high %v7611_v30, %v7616_v33 }
 0x121   :  { %5718 = vmatprep.subr.bf16.mxu0 %v7180_v29  ;;  %1347 = vmatprep.mubr.bf16.mxu0 %v5261_v12  ;;  %v7804_v12 = vld [vmem:[%s10897_s2 + $0x38] sm:$0xff]  }
 0x123   :  { %1377 = vmatpush1.bf16.msra.mxu1 %v7043_v36 }
 0x124   :  { %5719 = vmatpush3.bf16.msra.mxu0 %v7194_v47  ;;  %1378 = vmatprep.subr.bf16.mxu1 %v11055_v41 }
 0x125   :  { %5720 = vmatprep.subr.bf16.mxu0 %v7200_v48 }
 0x127   :  { %1379 = vmatpush1.bf16.msra.mxu1 %v7062_v39  ;;  %v5262_v39 = vcombine.low %v7505_v2, %v7510_v5 }
 0x128   :  { %5721 = vmatpush3.bf16.msra.mxu0 %v7208_v50  ;;  %1380 = vmatprep.subr.bf16.mxu1 %v11055_v41 }
 0x129   :  { %5722 = vmatprep.subr.bf16.mxu0 %v7214_v51 }
 0x12b   :  { %1381 = vmatpush1.bf16.msra.mxu1 %v7086_v44 }
 0x12c   :  { %5723 = vmatpush3.bf16.msra.mxu0 %v7222_v54  ;;  %1382 = vmatprep.subr.bf16.mxu1 %v11055_v41 }
 0x12d   :  { %5724 = vmatprep.subr.bf16.mxu0 %v7228_v59 }
 0x12f   :  { %1383 = vmatpush1.bf16.msra.mxu1 %v7116_v52 }
 0x130   :  { %5725 = vmatpush3.bf16.msra.mxu0 %v7236_v63  ;;  %1384 = vmatprep.subr.bf16.mxu1 %v11055_v41 }
 0x131   :  { %5726 = vmatprep.subr.bf16.mxu0 %v7242_v25  ;;  %v5578_v36 = vpop.f32.mrb[4].mxu1 }
 0x132   :  { %v5579_v44 = vpop.f32.mrb[5].mxu1 }
 0x133   :  { %1385 = vmatpush1.bf16.msra.mxu1 %v7133_v56  ;;  %v7622_v52 = vadd.f32 %v5579_v44, %v5578_v36  ;;  %v5581_v13 = vpop.f32.mrb[6].mxu1  ;;  %v7820_v36 = vld [vmem:[%s10897_s2 + $0x80] sm:$0xff]   ;;  %v7834_v44 = vld [vmem:[%s10897_s2 + $0x88] sm:$0xff]  }
 0x134   :  { %5727 = vmatpush3.bf16.msra.mxu0 %v7250_v45  ;;  %5782 = vmatprep.subr.bf16.mxu1 %v7160_v61  ;;  %v5582_v16 = vpop.f32.mrb[7].mxu1 }
 0x135   :  { %5728 = vmatprep.subr.bf16.mxu0 %v7256_v0  ;;  %v7629_v18 = vadd.f32 %v5582_v16, %v5581_v13  ;;  %v7848_v13 = vld [vmem:[%s10897_s2 + $0x90] sm:$0xff]   ;;  %v7862_v16 = vld [vmem:[%s10897_s2 + $0x98] sm:$0xff]  }
 0x136   :  { %v5534_v19 = vpop.f32.mrb[8].mxu0  ;;  %1389 = vmatmul.mubr.bf16.vlgmr.msra.gmra.mrb[24].mxu1 %v5262_v39  ;;  %v7827_v39 = vld [vmem:[%s10897_s2 + $0xc8] sm:$0xff]  }
 0x137   :  { %v5535_v21 = vpop.f32.mrb[9].mxu0  ;;  %5783 = vmatpush3.bf16.msra.mxu1 %v7174_v23  ;;  %1565 = vmatprep.mubr.bf16.mxu1 %v5278_v15  ;;  %v7643_v23 = vld [vmem:[%s10898_s0 + $0xa0] sm:$0xff]  ;;  %v7855_v15 = vld [vmem:[%s10897_s2 + $0xd8] sm:$0xff]  }
 0x138   :  { %v5536_v24 = vadd.f32 %v5535_v21, %v5534_v19  ;;  %v5537_v27 = vpop.f32.mrb[10].mxu0  ;;  %5729 = vmatpush3.bf16.msra.mxu0 %v7264_v55  ;;  %5784 = vmatprep.subr.bf16.mxu1 %v7180_v29  ;;  %v5260_v29 = vcombine.low %v7574_v7, %v7579_v26  ;;  %v7788_v7 = vld [vmem:[%s10898_s0 + $0x88] sm:$0xff]  ;;  %v5273_v9 = vcombine.low %v7638_v32, %v7643_v23 }
 0x139   :  { %v5538_v28 = vpop.f32.mrb[11].mxu0  ;;  %5730 = vmatprep.subr.bf16.mxu0 %v7280_v58  ;;  %v7793_v26 = vld [vmem:[%s10898_s0 + $0xa8] sm:$0xff] }
 0x13a   :  { %v698_v61 = vadd.f32 %v5536_v24, %v657_v4  ;;  %v5539_v31 = vadd.f32 %v5538_v28, %v5537_v27  ;;  %v7876_v27 = vld [vmem:[%s10897_s2 + $0xa0] sm:$0xff]  }
 0x13b   :  { %5785 = vmatpush3.bf16.msra.mxu1 %v7194_v47  ;;  %v5274_v47 = vcombine.high %v7638_v32, %v7643_v23  ;;  %v7893_v32 = vld [vmem:[%s10897_s2 + $0xe8] sm:$0xff]  }
 0x13c   :  { %v739_v2 = vadd.f32 %v7559_v11, %v698_v61  ;;  %v701_v5 = vadd.f32 %v5539_v31, %v660_v10  ;;  %5731 = vmatpush3.bf16.msra.mxu0 %v7290_v40  ;;  %5786 = vmatprep.subr.bf16.mxu1 %v7200_v48  ;;  %v7666_v48 = vld [vmem:[%s10897_s2] sm:$0xff]   ;;  %v5277_v11 = vcombine.low %v7611_v30, %v7616_v33  ;;  %v7883_v61 = vld [vmem:[%s10899_s1 + $0x88] sm:$0xff] }
 0x13d   :  { %5738 = vmatprep.subr.bf16.mxu0 %v7654_v8  ;;  %v7811_v30 = vld [vmem:[%s10897_s2 + $0xc0] sm:$0xff]   ;;  %v5276_v33 = vcombine.high %v7788_v7, %v7793_v26  ;;  %v7888_v31 = vld [vmem:[%s10899_s1 + $0xa8] sm:$0xff] }
 0x13e   :  { %746 = vst.msk [vmem:[#allocation2] sm:$0xff] %vm745_vm2, %v739_v2  ;;  %v742_v34 = vadd.f32 %v7562_v14, %v701_v5  ;;  %v7756_v14 = vld [vmem:[%s10897_s2 + $0x28] sm:$0xff]   ;;  %v7911_v5 = vld [vmem:[%s10897_s2 + $0xf0] sm:$0xff]  }
 0x13f   :  { %1348 = vmatmul.mubr.bf16.vlgmr.msra.gmra.mrb[32].mxu0 %v5260_v29  ;;  %5787 = vmatpush3.bf16.msra.mxu1 %v7208_v50  ;;  %v7680_v50 = vld [vmem:[%s10897_s2 + $0x8] sm:$0xff]   ;;  %v5293_v29 = vcombine.high %v7883_v61, %v7888_v31 }
 0x140   :  { %747 = vst.msk [vmem:[#allocation2 + $0x8] sm:$0xff] %vm745_vm2, %v742_v34  ;;  %5739 = vmatpush3.bf16.msra.mxu0 %v7666_v48  ;;  %5788 = vmatprep.subr.bf16.mxu1 %v7214_v51  ;;  %v7687_v51 = vld [vmem:[%s10897_s2 + $0x50] sm:$0xff]   ;;  %v7904_v2 = vld [vmem:[%s10897_s2 + $0xa8] sm:$0xff]  }
 0x141   :  { %5740 = vmatprep.subr.bf16.mxu0 %v7673_v35  ;;  %1483 = vmatprep.mubr.bf16.mxu0 %v5274_v47 }
 0x143   :  { %5789 = vmatpush3.bf16.msra.mxu1 %v7222_v54 }
 0x144   :  { %5741 = vmatpush3.bf16.msra.mxu0 %v7680_v50  ;;  %5790 = vmatprep.subr.bf16.mxu1 %v7228_v59  ;;  %v7703_v59 = vld [vmem:[%s10897_s2 + $0x58] sm:$0xff]  }
 0x145   :  { %5742 = vmatprep.subr.bf16.mxu0 %v7687_v51 }
 0x147   :  { %5791 = vmatpush3.bf16.msra.mxu1 %v7236_v63  ;;  %v4129_v37 = vld [vmem:[#allocation2 + $0x9] sm:$0xf]  ;;  %v4128_v54 = vld [vmem:[#allocation2 + $0x1] sm:$0xff] }
 0x148   :  { %5743 = vmatpush3.bf16.msra.mxu0 %v7694_v38  ;;  %4162 = vrot.lane.b32.xlu1 %v4129_v37, %s6799_s21  ;;  %v4321_v63 = vld [vmem:[#allocation2 + $0xa] sm:$0xf] }
 0x149   :  { %4160 = vrot.lane.b32.xlu0 %v4128_v54, %s6799_s21  ;;  %5792 = vmatprep.subr.bf16.mxu1 %v7242_v25  ;;  %v4320_v25 = vld [vmem:[#allocation2 + $0x2] sm:$0xff] }
 0x14a   :  { %5744 = vmatprep.subr.bf16.mxu0 %v7703_v59 }
 0x14b   :  { %5793 = vmatpush3.bf16.msra.mxu1 %v7250_v45  ;;  %v7719_v45 = vld [vmem:[%s10897_s2 + $0x60] sm:$0xff]  }
 0x14c   :  { %5745 = vmatpush3.bf16.msra.mxu0 %v7710_v49  ;;  %4354 = vrot.lane.b32.xlu1 %v4321_v63, %s6800_s26 }
 0x14d   :  { %4352 = vrot.lane.b32.xlu0 %v4320_v25, %s6800_s26  ;;  %5794 = vmatprep.subr.bf16.mxu1 %v7256_v0  ;;  %v7733_v0 = vld [vmem:[%s10899_s1 + $0x80] sm:$0xff] }
 0x14e   :  { %5746 = vmatprep.subr.bf16.mxu0 %v7719_v45  ;;  %v5291_v43 = vcombine.high %v7733_v0, %v7738_v57  ;;  %v5290_v23 = vcombine.low %v7733_v0, %v7738_v57  ;;  %v7925_v0 = vld [vmem:[%s10897_s2 + $0xf8] sm:$0xff]  }
 0x14f   :  { %5795 = vmatpush3.bf16.msra.mxu1 %v7264_v55  ;;  %v7745_v55 = vld [vmem:[%s10897_s2 + $0x68] sm:$0xff]  }
 0x150   :  { %5747 = vmatpush3.bf16.msra.mxu0 %v7726_v53  ;;  %4418 = vrot.lane.b32.xlu1 %v4129_v37, %s6801_s7 }
 0x151   :  { %4544 = vrot.lane.b32.xlu0 %v4320_v25, %s6802_s12  ;;  %5796 = vmatprep.subr.bf16.mxu1 %v7280_v58  ;;  %v7764_v58 = vld [vmem:[%s10897_s2 + $0x70] sm:$0xff]  }
 0x152   :  { %5748 = vmatprep.subr.bf16.mxu0 %v7745_v55 }
 0x153   :  { %5797 = vmatpush3.bf16.msra.mxu1 %v7290_v40 }
 0x154   :  { %5749 = vmatpush3.bf16.msra.mxu0 %v7756_v14  ;;  %4416 = vrot.lane.b32.xlu1 %v4128_v54, %s6801_s7 }
 0x155   :  { %5804 = vmatprep.subr.bf16.mxu1 %v7654_v8  ;;  %5750 = vmatprep.subr.bf16.mxu0 %v7764_v58 }
 0x156   :  { %v5556_v40 = vpop.f32.mrb[12].mxu0  ;;  %1566 = vmatmul.mubr.bf16.vlgmr.msra.gmra.mrb[28].mxu1 %v5277_v11 }
 0x157   :  { %v5557_v62 = vpop.f32.mrb[13].mxu0  ;;  %5805 = vmatpush3.bf16.msra.mxu1 %v7666_v48  ;;  %1701 = vmatprep.mubr.bf16.mxu1 %v5291_v43  ;;  %v7932_v43 = vld [vmem:[%s10898_s0 + $0x98] sm:$0xff] }
 0x158   :  { %v5558_v17 = vadd.f32 %v5557_v62, %v5556_v40  ;;  %v5559_v1 = vpop.f32.mrb[14].mxu0  ;;  %5751 = vmatpush3.bf16.msra.mxu0 %v7771_v22  ;;  %4546 = vrot.lane.b32.xlu1 %v4321_v63, %s6802_s12  ;;  %v7918_v63 = vld [vmem:[%s10897_s2 + $0xb0] sm:$0xff]   ;;  %v7937_v40 = vld [vmem:[%s10898_s0 + $0xb8] sm:$0xff]  ;;  %v5275_v62 = vcombine.low %v7788_v7, %v7793_v26 }
 0x159   :  { %v5560_v3 = vpop.f32.mrb[15].mxu0  ;;  %5806 = vmatprep.subr.bf16.mxu1 %v7673_v35  ;;  %5752 = vmatprep.subr.bf16.mxu0 %v7779_v20 }
 0x15a   :  { %v7783_v4 = vadd.f32 %v7622_v52, %v5558_v17  ;;  %v5561_v6 = vadd.f32 %v5560_v3, %v5559_v1  ;;  %v7841_v52 = vld [vmem:[%s10897_s2 + $0xd0] sm:$0xff]   ;;  %v7946_v3 = vld [vmem:[%s10897_s2 + $0xb8] sm:$0xff]  }
 0x15b   :  { %5807 = vmatpush3.bf16.msra.mxu1 %v7680_v50  ;;  %11065 = vst [vmem:[#allocation4_spill] sm:$0xff] %v7946_v3 }
 0x15c   :  { %v7799_v10 = vadd.f32 %v7629_v18, %v5561_v6  ;;  %5753 = vmatpush3.bf16.msra.mxu0 %v7804_v12  ;;  %5808 = vmatprep.subr.bf16.mxu1 %v7687_v51  ;;  %v7869_v18 = vld [vmem:[%s10897_s2 + $0xe0] sm:$0xff]  }
 0x15d   :  { %5760 = vmatprep.subr.bf16.mxu0 %v7811_v30 }
 0x15f   :  { %1484 = vmatmul.mubr.bf16.vlgmr.msra.gmra.mrb[36].mxu0 %v5273_v9  ;;  %5809 = vmatpush3.bf16.msra.mxu1 %v7694_v38 }
 0x160   :  { %5761 = vmatpush3.bf16.msra.mxu0 %v7820_v36  ;;  %5810 = vmatprep.subr.bf16.mxu1 %v7703_v59 }
 0x161   :  { %5762 = vmatprep.subr.bf16.mxu0 %v7827_v39  ;;  %1524 = vmatprep.mubr.bf16.mxu0 %v5276_v33  ;;  %v7981_v33 = vld [vmem:[%s10897_s2 + $0x198] sm:$0xff]  }
 0x162   :  { %11066 = vst [vmem:[#allocation5_spill] sm:$0xff] %v7981_v33 }
 0x163   :  { %5811 = vmatpush3.bf16.msra.mxu1 %v7710_v49 }
 0x164   :  { %5763 = vmatpush3.bf16.msra.mxu0 %v7834_v44  ;;  %5812 = vmatprep.subr.bf16.mxu1 %v7719_v45 }
 0x165   :  { %5764 = vmatprep.subr.bf16.mxu0 %v7841_v52 }
 0x167   :  { %5813 = vmatpush3.bf16.msra.mxu1 %v7726_v53 }
 0x168   :  { %5765 = vmatpush3.bf16.msra.mxu0 %v7848_v13  ;;  %5814 = vmatprep.subr.bf16.mxu1 %v7745_v55 }
 0x169   :  { %5766 = vmatprep.subr.bf16.mxu0 %v7855_v15 }
 0x16b   :  { %5815 = vmatpush3.bf16.msra.mxu1 %v7756_v14 }
 0x16c   :  { %5767 = vmatpush3.bf16.msra.mxu0 %v7862_v16  ;;  %5816 = vmatprep.subr.bf16.mxu1 %v7764_v58 }
 0x16d   :  { %5768 = vmatprep.subr.bf16.mxu0 %v7869_v18  ;;  %v955_v19 = vpop.f32.mrb[8].mxu1 }
 0x16e   :  { %v957_v21 = vpop.f32.mrb[9].mxu1 }
 0x16f   :  { %5817 = vmatpush3.bf16.msra.mxu1 %v7771_v22  ;;  %v958_v24 = vpop.f32.mrb[10].mxu1 }
 0x170   :  { %5769 = vmatpush3.bf16.msra.mxu0 %v7876_v27  ;;  %5818 = vmatprep.subr.bf16.mxu1 %v7779_v20  ;;  %v960_v28 = vpop.f32.mrb[11].mxu1 }
 0x171   :  { %5770 = vmatprep.subr.bf16.mxu0 %v7893_v32 }
 0x173   :  { %5819 = vmatpush3.bf16.msra.mxu1 %v7804_v12 }
 0x174   :  { %5771 = vmatpush3.bf16.msra.mxu0 %v7904_v2  ;;  %5826 = vmatprep.subr.bf16.mxu1 %v7811_v30 }
 0x175   :  { %5772 = vmatprep.subr.bf16.mxu0 %v7911_v5 }
 0x176   :  { %v5600_v47 = vpop.f32.mrb[16].mxu0  ;;  %1702 = vmatmul.mubr.bf16.vlgmr.msra.gmra.mrb[32].mxu1 %v5290_v23 }
 0x177   :  { %v5601_v34 = vpop.f32.mrb[17].mxu0  ;;  %5827 = vmatpush3.bf16.msra.mxu1 %v7820_v36  ;;  %1742 = vmatprep.mubr.bf16.mxu1 %v5293_v29 }
 0x178   :  { %v5602_v37 = vadd.f32 %v5601_v34, %v5600_v47  ;;  %v5603_v54 = vpop.f32.mrb[18].mxu0  ;;  %5773 = vmatpush3.bf16.msra.mxu0 %v7918_v63  ;;  %5828 = vmatprep.subr.bf16.mxu1 %v7827_v39  ;;  %v7994_v47 = vld [vmem:[%s10897_s2 + $0x1a0] sm:$0xff]  }
 0x179   :  { %v5604_v25 = vpop.f32.mrb[19].mxu0  ;;  %5774 = vmatprep.subr.bf16.mxu0 %v7925_v0  ;;  %11067 = vst [vmem:[#allocation6_spill] sm:$0xff] %v7994_v47 }
 0x17a   :  { %v5605_v57 = vadd.f32 %v5604_v25, %v5603_v54  ;;  %v915_v11 = vadd.f32 %v5602_v37, %v7783_v4  ;;  %v5280_v4 = vcombine.high %v7932_v43, %v7937_v40  ;;  %v8001_v37 = vld [vmem:[%s10899_s1 + $0x98] sm:$0xff] }
 0x17b   :  { %5829 = vmatpush3.bf16.msra.mxu1 %v7834_v44  ;;  %v8006_v54 = vld [vmem:[%s10899_s1 + $0xb8] sm:$0xff] }
 0x17c   :  { %v956_v17 = vadd.f32 %v955_v19, %v915_v11  ;;  %v918_v1 = vadd.f32 %v5605_v57, %v7799_v10  ;;  %5775 = vmatpush3.bf16.msra.mxu0 %v7946_v3  ;;  %5830 = vmatprep.subr.bf16.mxu1 %v7841_v52  ;;  %v5292_v57 = vcombine.low %v7883_v61, %v7888_v31 }
 0x17d   :  { %1574 = vmatprep.subr.bf16.mxu0 %v11055_v41  ;;  %v5297_v11 = vcombine.high %v8001_v37, %v8006_v54 }
 0x17e   :  { %962 = vst.msk [vmem:[#allocation3] sm:$0xff] %vm745_vm2, %v956_v17  ;;  %v959_v6 = vadd.f32 %v958_v24, %v918_v1 }
 0x17f   :  { %1525 = vmatmul.mubr.bf16.vlgmr.msra.gmra.mrb[40].mxu0 %v5275_v62  ;;  %5831 = vmatpush3.bf16.msra.mxu1 %v7848_v13  ;;  %v8021_v62 = vld [vmem:[%s10897_s2 + $0x1a8] sm:$0xff]  }
 0x180   :  { %963 = vst.msk [vmem:[#allocation3 + $0x8] sm:$0xff] %vm745_vm2, %v959_v6  ;;  %1575 = vmatpush1.bf16.msra.mxu0 %v7522_v46  ;;  %5832 = vmatprep.subr.bf16.mxu1 %v7855_v15  ;;  %11068 = vst [vmem:[#allocation7_spill] sm:$0xff] %v8021_v62 }
 0x181   :  { %1576 = vmatprep.subr.bf16.mxu0 %v11055_v41  ;;  %5281 = vmatprep.mubr.msk.bf16.mxu0 %vm571_vm0, %v5280_v4  ;;  %v8034_v4 = vld [vmem:[%s10897_s2 + $0x1b0] sm:$0xff]  }
 0x182   :  { %11069 = vst [vmem:[#allocation8_spill] sm:$0xff] %v8034_v4 }
 0x183   :  { %5833 = vmatpush3.bf16.msra.mxu1 %v7862_v16 }
 0x184   :  { %1577 = vmatpush1.bf16.msra.mxu0 %v7532_v60  ;;  %5834 = vmatprep.subr.bf16.mxu1 %v7869_v18 }
 0x185   :  { %v7963_v7 = vld [vmem:[#allocation3] sm:$0xff]  ;;  %1578 = vmatprep.subr.bf16.mxu0 %v11055_v41 }
 0x186   :  { %4064 = vrot.lane.b32.xlu0 %v7963_v7, %s6801_s7 }
 0x187   :  { %5835 = vmatpush3.bf16.msra.mxu1 %v7876_v27  ;;  %v4225_v26 = vld [vmem:[#allocation3 + $0x9] sm:$0xf]  ;;  %v4224_v19 = vld [vmem:[#allocation3 + $0x1] sm:$0xff] }
 0x188   :  { %1579 = vmatpush1.bf16.msra.mxu0 %v7541_v42  ;;  %4258 = vrot.lane.b32.xlu1 %v4225_v26, %s6802_s12  ;;  %v7972_v9 = vld [vmem:[#allocation3 + $0x8] sm:$0xf] }
 0x189   :  { %5836 = vmatprep.subr.bf16.mxu1 %v7893_v32  ;;  %1580 = vmatprep.subr.bf16.mxu0 %v11055_v41  ;;  %v4609_v10 = vld [vmem:[#allocation3 + $0xa] sm:$0xf]  ;;  %v4608_v28 = vld [vmem:[#allocation3 + $0x2] sm:$0xff] }
 0x18a   :  { %4066 = vrot.lane.b32.xlu0 %v7972_v9, %s6801_s7 }
 0x18b   :  { %5837 = vmatpush3.bf16.msra.mxu1 %v7904_v2 }
 0x18c   :  { %1581 = vmatpush1.bf16.msra.mxu0 %v7981_v33  ;;  %4642 = vrot.lane.b32.xlu1 %v4609_v10, %s6800_s26  ;;  %v8052_v10 = vld [vmem:[%s10897_s2 + $0x1c0] sm:$0xff]  }
 0x18d   :  { %5838 = vmatprep.subr.bf16.mxu1 %v7911_v5  ;;  %1582 = vmatprep.subr.bf16.mxu0 %v11055_v41  ;;  %v5666_v21 = vpop.f32.mrb[12].mxu1  ;;  %11071 = vst [vmem:[#allocation10_spill] sm:$0xff] %v8052_v10 }
 0x18e   :  { %4256 = vrot.lane.b32.xlu0 %v4224_v19, %s6802_s12  ;;  %v5667_v24 = vpop.f32.mrb[13].mxu1 }
 0x18f   :  { %5839 = vmatpush3.bf16.msra.mxu1 %v7918_v63  ;;  %v7989_v23 = vadd.f32 %v5667_v24, %v5666_v21  ;;  %v5669_v29 = vpop.f32.mrb[14].mxu1 }
 0x190   :  { %1583 = vmatpush1.bf16.msra.mxu0 %v7994_v47  ;;  %4640 = vrot.lane.b32.xlu1 %v4608_v28, %s6800_s26  ;;  %v5670_v34 = vpop.f32.mrb[15].mxu1 }
 0x191   :  { %5840 = vmatprep.subr.bf16.mxu1 %v7925_v0  ;;  %1584 = vmatprep.subr.bf16.mxu0 %v11055_v41  ;;  %v8010_v25 = vadd.f32 %v5670_v34, %v5669_v29  ;;  %v8090_v34 = vld [vmem:[%s10897_s2 + $0x1e0] sm:$0xff]  }
 0x192   :  { %4482 = vrot.lane.b32.xlu0 %v4225_v26, %s6799_s21  ;;  %11075 = vst [vmem:[#allocation14_spill] sm:$0xff] %v8090_v34 }
 0x193   :  { %5841 = vmatpush3.bf16.msra.mxu1 %v7946_v3 }
 0x194   :  { %1585 = vmatpush1.bf16.msra.mxu0 %v8021_v62  ;;  %1792 = vmatprep.subr.bf16.mxu1 %v11055_v41 }
 0x195   :  { %1586 = vmatprep.subr.bf16.mxu0 %v11055_v41 }
 0x196   :  { %v5622_v17 = vpop.f32.mrb[20].mxu0  ;;  %1743 = vmatmul.mubr.bf16.vlgmr.msra.gmra.mrb[36].mxu1 %v5292_v57  ;;  %4480 = vrot.lane.b32.xlu0 %v4224_v19, %s6799_s21  ;;  %v8079_v19 = vld [vmem:[%s10897_s2 + $0x1d8] sm:$0xff]  }
 0x197   :  { %v5623_v61 = vpop.f32.mrb[21].mxu0  ;;  %1793 = vmatpush1.bf16.msra.mxu1 %v7522_v46  ;;  %5298 = vmatprep.mubr.msk.bf16.mxu1 %vm571_vm0, %v5297_v11  ;;  %v8043_v46 = vld [vmem:[%s10897_s2 + $0x1b8] sm:$0xff]   ;;  %11074 = vst [vmem:[#allocation13_spill] sm:$0xff] %v8079_v19 }
 0x198   :  { %v8029_v31 = vadd.f32 %v5623_v61, %v5622_v17  ;;  %v5625_v1 = vpop.f32.mrb[22].mxu0  ;;  %1587 = vmatpush1.bf16.msra.mxu0 %v8034_v4  ;;  %1794 = vmatprep.subr.bf16.mxu1 %v11055_v41  ;;  %11070 = vst [vmem:[#allocation9_spill] sm:$0xff] %v8043_v46  ;;  %v8101_v17 = vld [vmem:[%s10897_s2 + $0x1e8] sm:$0xff]  }
 0x199   :  { %v5626_v6 = vpop.f32.mrb[23].mxu0  ;;  %1588 = vmatprep.subr.bf16.mxu0 %v11055_v41  ;;  %11076 = vst [vmem:[#allocation15_spill] sm:$0xff] %v8101_v17 }
 0x19a   :  { %v5627_v26 = vadd.f32 %v5626_v6, %v5625_v1  ;;  %v8109_v1 = vld [vmem:[%s10899_s1 + $0x90] sm:$0xff] }
 0x19b   :  { %1795 = vmatpush1.bf16.msra.mxu1 %v7532_v60  ;;  %v8061_v60 = vld [vmem:[%s10897_s2 + $0x1c8] sm:$0xff]   ;;  %v8114_v6 = vld [vmem:[%s10899_s1 + $0xb0] sm:$0xff] }
 0x19c   :  { %1589 = vmatpush1.bf16.msra.mxu0 %v8043_v46  ;;  %1796 = vmatprep.subr.bf16.mxu1 %v11055_v41  ;;  %11072 = vst [vmem:[#allocation11_spill] sm:$0xff] %v8061_v60 }
 0x19d   :  { %1590 = vmatprep.subr.bf16.mxu0 %v11055_v41 }
 0x19f   :  { %1797 = vmatpush1.bf16.msra.mxu1 %v7541_v42  ;;  %v8070_v42 = vld [vmem:[%s10897_s2 + $0x1d0] sm:$0xff]  }
 0x1a0   :  { %1591 = vmatpush1.bf16.msra.mxu0 %v8052_v10  ;;  %1798 = vmatprep.subr.bf16.mxu1 %v11055_v41  ;;  %11073 = vst [vmem:[#allocation12_spill] sm:$0xff] %v8070_v42 }
 0x1a1   :  { %1592 = vmatprep.subr.bf16.mxu0 %v11055_v41 }
 0x1a3   :  { %1799 = vmatpush1.bf16.msra.mxu1 %v7981_v33 }
 0x1a4   :  { %1593 = vmatpush1.bf16.msra.mxu0 %v8061_v60  ;;  %1800 = vmatprep.subr.bf16.mxu1 %v11055_v41 }
 0x1a5   :  { %1594 = vmatprep.subr.bf16.mxu0 %v11055_v41 }
 0x1a7   :  { %1801 = vmatpush1.bf16.msra.mxu1 %v7994_v47 }
 0x1a8   :  { %1595 = vmatpush1.bf16.msra.mxu0 %v8070_v42  ;;  %1802 = vmatprep.subr.bf16.mxu1 %v11055_v41 }
 0x1a9   :  { %1596 = vmatprep.subr.bf16.mxu0 %v11055_v41 }
 0x1ab   :  { %1803 = vmatpush1.bf16.msra.mxu1 %v8021_v62 }
 0x1ac   :  { %1597 = vmatpush1.bf16.msra.mxu0 %v8079_v19  ;;  %1804 = vmatprep.subr.bf16.mxu1 %v11055_v41 }
 0x1ad   :  { %1598 = vmatprep.subr.bf16.mxu0 %v11055_v41  ;;  %v5688_v21 = vpop.f32.mrb[16].mxu1 }
 0x1ae   :  { %v5689_v24 = vpop.f32.mrb[17].mxu1 }
 0x1af   :  { %1805 = vmatpush1.bf16.msra.mxu1 %v8034_v4  ;;  %v8085_v28 = vadd.f32 %v5689_v24, %v5688_v21  ;;  %v5691_v29 = vpop.f32.mrb[18].mxu1  ;;  %v5279_v24 = vcombine.low %v7932_v43, %v7937_v40  ;;  %v8124_v4 = vld [vmem:[%s10897_s2 + $0x140] sm:$0xff]  }
 0x1b0   :  { %1599 = vmatpush1.bf16.msra.mxu0 %v8090_v34  ;;  %1806 = vmatprep.subr.bf16.mxu1 %v11055_v41  ;;  %v5692_v57 = vpop.f32.mrb[19].mxu1 }
 0x1b1   :  { %1600 = vmatprep.subr.bf16.mxu0 %v11055_v41  ;;  %v8095_v11 = vadd.f32 %v5692_v57, %v5691_v29 }
 0x1b3   :  { %1807 = vmatpush1.bf16.msra.mxu1 %v8043_v46 }
 0x1b4   :  { %1601 = vmatpush1.bf16.msra.mxu0 %v8101_v17  ;;  %1808 = vmatprep.subr.bf16.mxu1 %v11055_v41 }
 0x1b5   :  { %1602 = vmatprep.subr.bf16.mxu0 %v11055_v41 }
 0x1b6   :  { %v5644_v61 = vpop.f32.mrb[24].mxu0 }
 0x1b7   :  { %v5645_v21 = vpop.f32.mrb[25].mxu0  ;;  %1809 = vmatpush1.bf16.msra.mxu1 %v8052_v10  ;;  %v5295_v10 = vcombine.high %v8109_v1, %v8114_v6 }
 0x1b8   :  { %v5646_v29 = vadd.f32 %v5645_v21, %v5644_v61  ;;  %v5647_v57 = vpop.f32.mrb[26].mxu0  ;;  %1603 = vmatpush1.bf16.msra.mxu0 %v7133_v56  ;;  %1810 = vmatprep.subr.bf16.mxu1 %v11055_v41  ;;  %v8134_v61 = vld [vmem:[%s10897_s2 + $0x100] sm:$0xff]  }
 0x1b9   :  { %v5648_v46 = vpop.f32.mrb[27].mxu0  ;;  %5848 = vmatprep.subr.bf16.mxu0 %v8124_v4 }
 0x1ba   :  { %v1091_v62 = vadd.f32 %v5646_v29, %v8029_v31  ;;  %v5649_v43 = vadd.f32 %v5648_v46, %v5647_v57  ;;  %v8144_v31 = vld [vmem:[%s10897_s2 + $0x148] sm:$0xff]   ;;  %v8196_v29 = vld [vmem:[%s10897_s2 + $0x120] sm:$0xff]   ;;  %v8203_v57 = vld [vmem:[%s10898_s0 + $0xd0] sm:$0xff] }
 0x1bb   :  { %1607 = vmatmul.mubr.bf16.vlgmr.msra.gmra.mrb[44].mxu0 %v5279_v24  ;;  %1811 = vmatpush1.bf16.msra.mxu1 %v8061_v60  ;;  %v8154_v46 = vld [vmem:[%s10897_s2 + $0x108] sm:$0xff]   ;;  %v8189_v24 = vld [vmem:[%s10897_s2 + $0x160] sm:$0xff]   ;;  %11077 = vst [vmem:[#allocation16_spill] sm:$0xff] %v8196_v29 }
 0x1bc   :  { %v1094_v40 = vadd.f32 %v5649_v43, %v5627_v26  ;;  %5849 = vmatpush3.bf16.msra.mxu0 %v8134_v61  ;;  %1812 = vmatprep.subr.bf16.mxu1 %v11055_v41  ;;  %v8139_v21 = vadd.f32 %v7989_v23, %v1091_v62  ;;  %v8161_v23 = vld [vmem:[%s10897_s2 + $0x150] sm:$0xff]   ;;  %v8175_v62 = vld [vmem:[%s10897_s2 + $0x158] sm:$0xff]  }
 0x1bd   :  { %5850 = vmatprep.subr.bf16.mxu0 %v8144_v31  ;;  %1783 = vmatprep.mubr.bf16.mxu0 %v5295_v10  ;;  %v8182_v10 = vld [vmem:[%s10897_s2 + $0x118] sm:$0xff]   ;;  %v8208_v43 = vld [vmem:[%s10898_s0 + $0xf0] sm:$0xff] }
 0x1be   :  { %v8148_v26 = vadd.f32 %v8010_v25, %v1094_v40  ;;  %v8168_v25 = vld [vmem:[%s10897_s2 + $0x110] sm:$0xff]   ;;  %v5312_v47 = vcombine.high %v8203_v57, %v8208_v43 }
 0x1bf   :  { %1813 = vmatpush1.bf16.msra.mxu1 %v8070_v42 }
 0x1c0   :  { %5851 = vmatpush3.bf16.msra.mxu0 %v8154_v46  ;;  %1814 = vmatprep.subr.bf16.mxu1 %v11055_v41 }
 0x1c1   :  { %5852 = vmatprep.subr.bf16.mxu0 %v8161_v23 }
 0x1c3   :  { %1815 = vmatpush1.bf16.msra.mxu1 %v8079_v19  ;;  %v5296_v19 = vcombine.low %v8001_v37, %v8006_v54  ;;  %v8234_v54 = vld [vmem:[%s10897_s2 + $0x170] sm:$0xff]  }
 0x1c4   :  { %5853 = vmatpush3.bf16.msra.mxu0 %v8168_v25  ;;  %1816 = vmatprep.subr.bf16.mxu1 %v11055_v41  ;;  %11080 = vst [vmem:[#allocation19_spill] sm:$0xff] %v8234_v54 }
 0x1c5   :  { %5854 = vmatprep.subr.bf16.mxu0 %v8175_v62 }
 0x1c7   :  { %1817 = vmatpush1.bf16.msra.mxu1 %v8090_v34 }
 0x1c8   :  { %5855 = vmatpush3.bf16.msra.mxu0 %v8182_v10  ;;  %1818 = vmatprep.subr.bf16.mxu1 %v11055_v41 }
 0x1c9   :  { %5856 = vmatprep.subr.bf16.mxu0 %v8189_v24 }
 0x1cb   :  { %1819 = vmatpush1.bf16.msra.mxu1 %v8101_v17  ;;  %v8213_v17 = vld [vmem:[%s10897_s2 + $0x168] sm:$0xff]  }
 0x1cc   :  { %5857 = vmatpush3.bf16.msra.mxu0 %v8196_v29  ;;  %1820 = vmatprep.subr.bf16.mxu1 %v11055_v41  ;;  %11078 = vst [vmem:[#allocation17_spill] sm:$0xff] %v8213_v17  ;;  %v8224_v41 = vld [vmem:[%s10897_s2 + $0x128] sm:$0xff]  }
 0x1cd   :  { %v5710_v40 = vpop.f32.mrb[20].mxu1  ;;  %5858 = vmatprep.subr.bf16.mxu0 %v8213_v17  ;;  %11079 = vst [vmem:[#allocation18_spill] sm:$0xff] %v8224_v41 }
 0x1ce   :  { %v5711_v34 = vpop.f32.mrb[21].mxu1 }
 0x1cf   :  { %v5712_v42 = vadd.f32 %v5711_v34, %v5710_v40  ;;  %v5713_v60 = vpop.f32.mrb[22].mxu1  ;;  %1821 = vmatpush1.bf16.msra.mxu1 %v7133_v56 }
 0x1d0   :  { %v5714_v33 = vpop.f32.mrb[23].mxu1  ;;  %5859 = vmatpush3.bf16.msra.mxu0 %v8224_v41  ;;  %5914 = vmatprep.subr.bf16.mxu1 %v8124_v4 }
 0x1d1   :  { %v8229_v3 = vadd.f32 %v5712_v42, %v8085_v28  ;;  %v5715_v37 = vadd.f32 %v5714_v33, %v5713_v60  ;;  %5860 = vmatprep.subr.bf16.mxu0 %v8234_v54  ;;  %v8244_v42 = vld [vmem:[%s10897_s2 + $0x130] sm:$0xff]   ;;  %v8251_v33 = vld [vmem:[%s10897_s2 + $0x178] sm:$0xff]   ;;  %v8262_v60 = vld [vmem:[%s10898_s0 + $0xe0] sm:$0xff] }
 0x1d2   :  { %1825 = vmatmul.mubr.bf16.vlgmr.msra.gmra.mrb[40].mxu1 %v5296_v19  ;;  %11081 = vst [vmem:[#allocation20_spill] sm:$0xff] %v8244_v42  ;;  %11082 = vst [vmem:[#allocation21_spill] sm:$0xff] %v8251_v33  ;;  %v5294_v19 = vcombine.low %v8109_v1, %v8114_v6  ;;  %v8270_v28 = vld [vmem:[%s10897_s2 + $0x138] sm:$0xff]   ;;  %v8286_v1 = vpop.permute.xlu1 %4162  ;;  %v8292_v6 = vpop.permute.xlu0 %4160 }
 0x1d3   :  { %v8238_v34 = vadd.f32 %v5715_v37, %v8095_v11  ;;  %5915 = vmatpush3.bf16.msra.mxu1 %v8134_v61  ;;  %2001 = vmatprep.mubr.bf16.mxu1 %v5312_v47  ;;  %v8257_v47 = vld [vmem:[%s10898_s0 + $0xc0] sm:$0xff]  ;;  %11083 = vst [vmem:[#allocation22_spill] sm:$0xff] %v8270_v28 }
 0x1d4   :  { %5861 = vmatpush3.bf16.msra.mxu0 %v8244_v42  ;;  %5916 = vmatprep.subr.bf16.mxu1 %v8144_v31  ;;  %v5308_v11 = vcombine.high %v8257_v47, %v8262_v60  ;;  %v8305_v37 = vld [vmem:[%s10899_s1 + $0xc0] sm:$0xff] }
 0x1d5   :  { %5862 = vmatprep.subr.bf16.mxu0 %v8251_v33 }
 0x1d6   :  { %v8297_v40 = vpop.permute.xlu1 %4354 }
 0x1d7   :  { %5917 = vmatpush3.bf16.msra.mxu1 %v8154_v46 }
 0x1d8   :  { %5863 = vmatpush3.bf16.msra.mxu0 %v8270_v28  ;;  %5918 = vmatprep.subr.bf16.mxu1 %v8161_v23 }
 0x1d9   :  { %5870 = vmatprep.subr.bf16.mxu0 %v7654_v8 }
 0x1db   :  { %1784 = vmatmul.mubr.bf16.vlgmr.msra.gmra.mrb[48].mxu0 %v5294_v19  ;;  %5919 = vmatpush3.bf16.msra.mxu1 %v8168_v25  ;;  %v8310_v19 = vld [vmem:[%s10899_s1 + $0xe0] sm:$0xff] }
 0x1dc   :  { %5871 = vmatpush3.bf16.msra.mxu0 %v7666_v48  ;;  %5920 = vmatprep.subr.bf16.mxu1 %v8175_v62 }
 0x1dd   :  { %5872 = vmatprep.subr.bf16.mxu0 %v7673_v35  ;;  %1919 = vmatprep.mubr.bf16.mxu0 %v5308_v11  ;;  %v8313_v11 = vpop.permute.xlu0 %4352 }
 0x1df   :  { %5921 = vmatpush3.bf16.msra.mxu1 %v8182_v10 }
 0x1e0   :  { %5873 = vmatpush3.bf16.msra.mxu0 %v7680_v50  ;;  %5922 = vmatprep.subr.bf16.mxu1 %v8189_v24 }
 0x1e1   :  { %5874 = vmatprep.subr.bf16.mxu0 %v7687_v51 }
 0x1e3   :  { %5923 = vmatpush3.bf16.msra.mxu1 %v8196_v29 }
 0x1e4   :  { %5875 = vmatpush3.bf16.msra.mxu0 %v7694_v38  ;;  %5924 = vmatprep.subr.bf16.mxu1 %v8213_v17 }
 0x1e5   :  { %5876 = vmatprep.subr.bf16.mxu0 %v7703_v59 }
 0x1e7   :  { %5925 = vmatpush3.bf16.msra.mxu1 %v8224_v41 }
 0x1e8   :  { %5877 = vmatpush3.bf16.msra.mxu0 %v7710_v49  ;;  %5926 = vmatprep.subr.bf16.mxu1 %v8234_v54  ;;  %v4419_v54 = vpop.permute.xlu1 %4418 }
 0x1e9   :  { %5878 = vmatprep.subr.bf16.mxu0 %v7719_v45 }
 0x1eb   :  { %5927 = vmatpush3.bf16.msra.mxu1 %v8244_v42  ;;  %v5311_v42 = vcombine.low %v8203_v57, %v8208_v43  ;;  %v8325_v57 = vpop.permute.xlu0 %4544 }
 0x1ec   :  { %5879 = vmatpush3.bf16.msra.mxu0 %v7726_v53  ;;  %5928 = vmatprep.subr.bf16.mxu1 %v8251_v33  ;;  %v5325_v33 = vcombine.high %v8305_v37, %v8310_v19 }
 0x1ed   :  { %5880 = vmatprep.subr.bf16.mxu0 %v7745_v55 }
 0x1ef   :  { %5929 = vmatpush3.bf16.msra.mxu1 %v8270_v28 }
 0x1f0   :  { %5881 = vmatpush3.bf16.msra.mxu0 %v7756_v14  ;;  %5936 = vmatprep.subr.bf16.mxu1 %v7654_v8 }
 0x1f1   :  { %5882 = vmatprep.subr.bf16.mxu0 %v7764_v58 }
 0x1f2   :  { %v1172_v41 = vpop.f32.mrb[28].mxu0  ;;  %2002 = vmatmul.mubr.bf16.vlgmr.msra.gmra.mrb[44].mxu1 %v5311_v42  ;;  %v4417_v42 = vpop.permute.xlu1 %4416 }
 0x1f3   :  { %v1173_v17 = vadd.f32 %v1172_v41, %v8139_v21  ;;  %v1174_v29 = vpop.f32.mrb[29].mxu0  ;;  %5937 = vmatpush3.bf16.msra.mxu1 %v7666_v48  ;;  %2137 = vmatprep.mubr.bf16.mxu1 %v5325_v33  ;;  %v8335_v41 = vld [vmem:[%s10898_s0 + $0xc8] sm:$0xff] }
 0x1f4   :  { %v1175_v43 = vpop.f32.mrb[30].mxu0  ;;  %5883 = vmatpush3.bf16.msra.mxu0 %v7771_v22  ;;  %5938 = vmatprep.subr.bf16.mxu1 %v7673_v35  ;;  %v8340_v48 = vld [vmem:[%s10898_s0 + $0xe8] sm:$0xff]  ;;  %v5307_v35 = vcombine.low %v8257_v47, %v8262_v60 }
 0x1f5   :  { %1180 = vst.msk [vmem:[#allocation2 + $0x10] sm:$0xff] %vm745_vm2, %v1173_v17  ;;  %v1176_v8 = vadd.f32 %v1175_v43, %v8148_v26  ;;  %v1177_v28 = vpop.f32.mrb[31].mxu0  ;;  %5884 = vmatprep.subr.bf16.mxu0 %v7779_v20  ;;  %v5310_v21 = vcombine.high %v8335_v41, %v8340_v48 }
 0x1f6   :  { %v4547_v26 = vpop.permute.xlu1 %4546  ;;  %v4016_v28 = vld [vmem:[#allocation2] sm:$0xff] }
 0x1f7   :  { %1181 = vst.msk [vmem:[#allocation2 + $0x18] sm:$0xff] %vm745_vm2, %v1176_v8  ;;  %5939 = vmatpush3.bf16.msra.mxu1 %v7680_v50  ;;  %v4017_v50 = vld [vmem:[#allocation2 + $0x8] sm:$0xf] }
 0x1f8   :  { %5885 = vmatpush3.bf16.msra.mxu0 %v7804_v12  ;;  %v4065_v17 = vpop.permute.xlu0 %4064  ;;  %5940 = vmatprep.subr.bf16.mxu1 %v7687_v51 }
 0x1f9   :  { %5892 = vmatprep.subr.bf16.mxu0 %v7811_v30 }
 0x1fa   :  { %v4259_v60 = vpop.permute.xlu1 %4258 }
 0x1fb   :  { %1920 = vmatmul.mubr.bf16.vlgmr.msra.gmra.mrb[52].mxu0 %v5307_v35  ;;  %5941 = vmatpush3.bf16.msra.mxu1 %v7694_v38  ;;  %v4465_v35 = vadd.f32 %v4419_v54, %v7972_v9  ;;  %v4464_v9 = vadd.f32 %v4417_v42, %v7963_v7 }
 0x1fc   :  { %5893 = vmatpush3.bf16.msra.mxu0 %v7820_v36  ;;  %v4067_v29 = vpop.permute.xlu0 %4066  ;;  %5942 = vmatprep.subr.bf16.mxu1 %v7703_v59  ;;  %v4112_v59 = vadd.f32 %v4065_v17, %v4016_v28 }
 0x1fd   :  { %v4113_v33 = vadd.f32 %v4067_v29, %v4017_v50  ;;  %5894 = vmatprep.subr.bf16.mxu0 %v7827_v39  ;;  %1960 = vmatprep.mubr.bf16.mxu0 %v5310_v21 }
 0x1fe   :  { %v4131_v51 = vld [vmem:[#allocation2 + $0x19] sm:$0xf]  ;;  %v4130_v47 = vld [vmem:[#allocation2 + $0x11] sm:$0xff]  ;;  %v4208_v17 = vadd.f32 %v8292_v6, %v4112_v59 }
 0x1ff   :  { %5943 = vmatpush3.bf16.msra.mxu1 %v7710_v49  ;;  %4166 = vrot.lane.b32.xlu1 %v4131_v51, %s6799_s21  ;;  %v4209_v43 = vadd.f32 %v8286_v1, %v4113_v33  ;;  %v4323_v8 = vld [vmem:[#allocation2 + $0x1a] sm:$0xf]  ;;  %v4322_v49 = vld [vmem:[#allocation2 + $0x12] sm:$0xff] }
 0x200   :  { %4164 = vrot.lane.b32.xlu0 %v4130_v47, %s6799_s21  ;;  %5895 = vmatpush3.bf16.msra.mxu0 %v7834_v44  ;;  %v4257_v38 = vpop.permute.xlu0 %4256 }
 0x201   :  { %5944 = vmatprep.subr.bf16.mxu1 %v7719_v45  ;;  %5896 = vmatprep.subr.bf16.mxu0 %v7841_v52  ;;  %v4305_v50 = vadd.f32 %v4259_v60, %v4209_v43  ;;  %v4643_v45 = vpop.permute.xlu1 %4642  ;;  %v4304_v54 = vadd.f32 %v4257_v38, %v4208_v17 }
 0x203   :  { %5945 = vmatpush3.bf16.msra.mxu1 %v7726_v53  ;;  %4358 = vrot.lane.b32.xlu1 %v4323_v8, %s6800_s26 }
 0x204   :  { %4356 = vrot.lane.b32.xlu0 %v4322_v49, %s6800_s26  ;;  %5897 = vmatpush3.bf16.msra.mxu0 %v7848_v13  ;;  %v4483_v21 = vpop.permute.xlu0 %4482 }
 0x205   :  { %v4529_v1 = vadd.f32 %v4483_v21, %v4465_v35  ;;  %5946 = vmatprep.subr.bf16.mxu1 %v7745_v55  ;;  %5898 = vmatprep.subr.bf16.mxu0 %v7855_v15  ;;  %v4401_v55 = vadd.f32 %v8297_v40, %v4305_v50 }
 0x207   :  { %v4593_v53 = vadd.f32 %v4547_v26, %v4529_v1  ;;  %5947 = vmatpush3.bf16.msra.mxu1 %v7756_v14  ;;  %4420 = vrot.lane.b32.xlu1 %v4130_v47, %s6801_s7  ;;  %v8381_v14 = vld [vmem:[%s10900_s3] ss:$0 sm:$0xff]  ;;  %v8391_v47 = vld [vmem:[%s10899_s1 + $0xc8] sm:$0xff] }
 0x208   :  { %4422 = vrot.lane.b32.xlu0 %v4131_v51, %s6801_s7  ;;  %5899 = vmatpush3.bf16.msra.mxu0 %v7862_v16  ;;  %v4481_v29 = vpop.permute.xlu0 %4480  ;;  %v4641_v51 = vpop.permute.xlu1 %4640 }
 0x209   :  { %v4689_v33 = vadd.f32 %v4643_v45, %v4593_v53  ;;  %v4528_v60 = vadd.f32 %v4481_v29, %v4464_v9  ;;  %5948 = vmatprep.subr.bf16.mxu1 %v7764_v58  ;;  %5900 = vmatprep.subr.bf16.mxu0 %v7869_v18  ;;  %v1390_v7 = vpop.f32.mrb[24].mxu1  ;;  %v8437_v53 = vld [vmem:[%s10898_s0 + $0xd8] sm:$0xff]  ;;  %v5309_v29 = vcombine.low %v8335_v41, %v8340_v48 }
 0x20a   :  { %v1392_v6 = vpop.f32.mrb[25].mxu1 }
 0x20b   :  { %v4705_v42 = vmax.f32 %v4401_v55, %v4689_v33  ;;  %v4592_v26 = vadd.f32 %v8325_v57, %v4528_v60  ;;  %5949 = vmatpush3.bf16.msra.mxu1 %v7771_v22  ;;  %4550 = vrot.lane.b32.xlu1 %v4323_v8, %s6802_s12  ;;  %v1393_v40 = vpop.f32.mrb[26].mxu1  ;;  %v8396_v57 = vld [vmem:[%s10899_s1 + $0xe8] sm:$0xff]  ;;  %v4400_v22 = vadd.f32 %v8313_v11, %v4304_v54  ;;  %v8442_v54 = vld [vmem:[%s10898_s0 + $0xf8] sm:$0xff]  ;;  %v11088_v33 = vld [vmem:[#allocation4_spill] sm:$0xff]  ;;  %v11089_v60 = vmov 0  }
 0x20c   :  { %5901 = vmatpush3.bf16.msra.mxu0 %v7876_v27  ;;  %5950 = vmatprep.subr.bf16.mxu1 %v7779_v20  ;;  %v1395_v58 = vpop.f32.mrb[27].mxu1  ;;  %v5324_v20 = vcombine.low %v8305_v37, %v8310_v19  ;;  %v5327_v59 = vcombine.high %v8391_v47, %v8396_v57  ;;  %v8410_v11 = vld [vmem:[%s10901_s4 + $0x8] sm:$0xf]  ;;  %v5314_v6 = vcombine.high %v8437_v53, %v8442_v54 }
 0x20d   :  { %v4688_v38 = vadd.f32 %v4641_v51, %v4592_v26  ;;  %5902 = vmatprep.subr.bf16.mxu0 %v7893_v32  ;;  %v4728_v28 = vadd.f32 %v8381_v14, %v4705_v42  ;;  %v11091_v26 = vld [vmem:[#allocation6_spill] sm:$0xff]  ;;  %v5326_v58 = vcombine.low %v8391_v47, %v8396_v57 }
 0x20f   :  { %v4704_v43 = vmax.f32 %v4400_v22, %v4688_v38  ;;  %5951 = vmatpush3.bf16.msra.mxu1 %v7804_v12  ;;  %4548 = vrot.lane.b32.xlu1 %v4322_v49, %s6802_s12  ;;  %vm4744_vm3 = vcmp.gt.f32.partialorder %v4728_v28, 0.0  ;;  %v4760_v8 = vmul.f32 0.01, %v4728_v28 }
 0x210   :  { %5903 = vmatpush3.bf16.msra.mxu0 %v7904_v2  ;;  %5958 = vmatprep.subr.bf16.mxu1 %v7811_v30  ;;  %v8426_v30 = vld [vmem:[%s10901_s4] sm:$0xff] }
 0x211   :  { %5904 = vmatprep.subr.bf16.mxu0 %v7911_v5  ;;  %v8415_v37 = vsel %vm4744_vm3, %v4728_v28, %v4760_v8  ;;  %v4727_v12 = vadd.f32 %v8381_v14, %v4704_v43  ;;  %v11092_v28 = vld [vmem:[#allocation7_spill] sm:$0xff]  ;;  %v11093_v43 = vld [vmem:[#allocation8_spill] sm:$0xff] }
 0x212   :  { %11084 = vst [vmem:[#allocation23_spill] sm:$0xff] %v8415_v37  ;;  %v5732_v19 = vpop.f32.mrb[32].mxu0  ;;  %2138 = vmatmul.mubr.bf16.vlgmr.msra.gmra.mrb[48].mxu1 %v5324_v20  ;;  %v8420_v35 = vmul.f32 %v8410_v11, %v8415_v37 }
 0x213   :  { %v5733_v49 = vpop.f32.mrb[33].mxu0  ;;  %5959 = vmatpush3.bf16.msra.mxu1 %v7820_v36  ;;  %2178 = vmatprep.mubr.bf16.mxu1 %v5327_v59  ;;  %vm4743_vm4 = vcmp.gt.f32.partialorder %v4727_v12, 0.0  ;;  %v4759_v21 = vmul.f32 0.01, %v4727_v12 }
 0x214   :  { %11085 = vst [vmem:[#allocation24_spill] sm:$0xff] %v8420_v35  ;;  %v5734_v50 = vadd.f32 %v5733_v49, %v5732_v19  ;;  %v5735_v1 = vpop.f32.mrb[34].mxu0  ;;  %5905 = vmatpush3.bf16.msra.mxu0 %v7918_v63  ;;  %5960 = vmatprep.subr.bf16.mxu1 %v7827_v39  ;;  %v11095_v19 = vld [vmem:[#allocation10_spill] sm:$0xff]  ;;  %v11096_v49 = vld [vmem:[#allocation11_spill] sm:$0xff]  ;;  %v9123_v35 = vld [vmem:[%s10897_s2 + $0x1e0] sm:$0xff]  }
 0x215   :  { %v5736_v45 = vpop.f32.mrb[35].mxu0  ;;  %5906 = vmatprep.subr.bf16.mxu0 %v7925_v0  ;;  %v8431_v17 = vsel %vm4743_vm4, %v4727_v12, %v4759_v21  ;;  %v11094_v12 = vld [vmem:[#allocation9_spill] sm:$0xff]  ;;  %v11097_v21 = vld [vmem:[#allocation12_spill] sm:$0xff] }
 0x216   :  { %11086 = vst [vmem:[#allocation25_spill] sm:$0xff] %v8431_v17  ;;  %v5737_v36 = vadd.f32 %v5736_v45, %v5735_v1  ;;  %v1350_v9 = vadd.f32 %v5734_v50, %v8229_v3  ;;  %v8446_v39 = vmul.f32 %v8426_v30, %v8431_v17  ;;  %v11098_v50 = vld [vmem:[#allocation13_spill] sm:$0xff]  ;;  %v9142_v17 = vld [vmem:[%s10899_s1 + $0x110] sm:$0xff] }
 0x217   :  { %5961 = vmatpush3.bf16.msra.mxu1 %v7834_v44  ;;  %v8463_v44 = vld [vmem:[%s10897_s2 + $0x180] sm:$0xff]  }
 0x218   :  { %11087 = vst [vmem:[#allocation26_spill] sm:$0xff] %v8446_v39  ;;  %v1391_v3 = vadd.f32 %v1390_v7, %v1350_v9  ;;  %v1353_v55 = vadd.f32 %v5737_v36, %v8238_v34  ;;  %5907 = vmatpush3.bf16.msra.mxu0 %v11088_v33  ;;  %5962 = vmatprep.subr.bf16.mxu1 %v7841_v52  ;;  %v8473_v52 = vld [vmem:[%s10897_s2 + $0x188] sm:$0xff]  }
 0x219   :  { %2010 = vmatprep.subr.bf16.mxu0 %v11089_v60  ;;  %v11090_v34 = vld [vmem:[#allocation5_spill] sm:$0xff] }
 0x21a   :  { %1398 = vst.msk [vmem:[#allocation3 + $0x10] sm:$0xff] %vm745_vm2, %v1391_v3  ;;  %v1394_v42 = vadd.f32 %v1393_v40, %v1353_v55  ;;  %v8515_v40 = vld [vmem:[%s10899_s1 + $0xf8] sm:$0xff] }
 0x21b   :  { %1961 = vmatmul.mubr.bf16.vlgmr.msra.gmra.mrb[56].mxu0 %v5309_v29  ;;  %5963 = vmatpush3.bf16.msra.mxu1 %v7848_v13  ;;  %v11099_v29 = vld [vmem:[#allocation14_spill] sm:$0xff] }
 0x21c   :  { %1399 = vst.msk [vmem:[#allocation3 + $0x18] sm:$0xff] %vm745_vm2, %v1394_v42  ;;  %2011 = vmatpush1.bf16.msra.mxu0 %v8463_v44  ;;  %5964 = vmatprep.subr.bf16.mxu1 %v7855_v15  ;;  %v8569_v42 = vld [vmem:[%s10899_s1 + $0xd0] sm:$0xff] }
 0x21d   :  { %2012 = vmatprep.subr.bf16.mxu0 %v11089_v60  ;;  %5315 = vmatprep.mubr.msk.bf16.mxu0 %vm571_vm0, %v5314_v6 }
 0x21f   :  { %5965 = vmatpush3.bf16.msra.mxu1 %v7862_v16  ;;  %v8486_v16 = vld [vmem:[%s10897_s2 + $0x190] sm:$0xff]  }
 0x220   :  { %2013 = vmatpush1.bf16.msra.mxu0 %v8473_v52  ;;  %5966 = vmatprep.subr.bf16.mxu1 %v7869_v18 }
 0x221   :  { %v8477_v13 = vld [vmem:[#allocation3 + $0x10] sm:$0xff]  ;;  %2014 = vmatprep.subr.bf16.mxu0 %v11089_v60 }
 0x222   :  { %4068 = vrot.lane.b32.xlu1 %v8477_v13, %s6801_s7 }
 0x223   :  { %5967 = vmatpush3.bf16.msra.mxu1 %v7876_v27  ;;  %v4226_v15 = vld [vmem:[#allocation3 + $0x11] sm:$0xff]  ;;  %v4227_v27 = vld [vmem:[#allocation3 + $0x19] sm:$0xf] }
 0x224   :  { %2015 = vmatpush1.bf16.msra.mxu0 %v8486_v16  ;;  %4260 = vrot.lane.b32.xlu0 %v4226_v15, %s6802_s12  ;;  %v8491_v18 = vld [vmem:[#allocation3 + $0x18] sm:$0xf] }
 0x225   :  { %5968 = vmatprep.subr.bf16.mxu1 %v7893_v32  ;;  %2016 = vmatprep.subr.bf16.mxu0 %v11089_v60  ;;  %v4611_v22 = vld [vmem:[#allocation3 + $0x1a] sm:$0xf] }
 0x226   :  { %4070 = vrot.lane.b32.xlu1 %v8491_v18, %s6801_s7 }
 0x227   :  { %5969 = vmatpush3.bf16.msra.mxu1 %v7904_v2 }
 0x228   :  { %2017 = vmatpush1.bf16.msra.mxu0 %v11090_v34  ;;  %4486 = vrot.lane.b32.xlu0 %v4227_v27, %s6799_s21 }
 0x229   :  { %5970 = vmatprep.subr.bf16.mxu1 %v7911_v5  ;;  %2018 = vmatprep.subr.bf16.mxu0 %v11089_v60  ;;  %v5798_v41 = vpop.f32.mrb[28].mxu1  ;;  %v8510_v5 = vld [vmem:[%s10899_s1 + $0xd8] sm:$0xff] }
 0x22a   :  { %4262 = vrot.lane.b32.xlu1 %v4227_v27, %s6802_s12  ;;  %v5799_v32 = vpop.f32.mrb[29].mxu1  ;;  %v5331_v38 = vcombine.high %v8510_v5, %v8515_v40 }
 0x22b   :  { %5971 = vmatpush3.bf16.msra.mxu1 %v7918_v63  ;;  %v8503_v48 = vadd.f32 %v5799_v32, %v5798_v41  ;;  %v5801_v7 = vpop.f32.mrb[30].mxu1  ;;  %v4610_v63 = vld [vmem:[#allocation3 + $0x12] sm:$0xff] }
 0x22c   :  { %2019 = vmatpush1.bf16.msra.mxu0 %v11091_v26  ;;  %4484 = vrot.lane.b32.xlu0 %v4226_v15, %s6799_s21  ;;  %v5802_v2 = vpop.f32.mrb[31].mxu1  ;;  %v8574_v15 = vld [vmem:[%s10899_s1 + $0xf0] sm:$0xff] }
 0x22d   :  { %5972 = vmatprep.subr.bf16.mxu1 %v7925_v0  ;;  %2020 = vmatprep.subr.bf16.mxu0 %v11089_v60  ;;  %v8519_v51 = vadd.f32 %v5802_v2, %v5801_v7 }
 0x22e   :  { %4644 = vrot.lane.b32.xlu1 %v4610_v63, %s6800_s26 }
 0x22f   :  { %5973 = vmatpush3.bf16.msra.mxu1 %v11088_v33  ;;  %v11100_v33 = vld [vmem:[#allocation15_spill] sm:$0xff] }
 0x230   :  { %2021 = vmatpush1.bf16.msra.mxu0 %v11092_v28  ;;  %4646 = vrot.lane.b32.xlu0 %v4611_v22, %s6800_s26  ;;  %v8617_v22 = vld [vmem:[%s10898_s0 + $0x130] sm:$0xff] }
 0x231   :  { %2228 = vmatprep.subr.bf16.mxu1 %v11089_v60  ;;  %2022 = vmatprep.subr.bf16.mxu0 %v11089_v60 }
 0x232   :  { %v5754_v0 = vpop.f32.mrb[36].mxu0  ;;  %2179 = vmatmul.mubr.bf16.vlgmr.msra.gmra.mrb[52].mxu1 %v5326_v58 }
 0x233   :  { %v5755_v20 = vpop.f32.mrb[37].mxu0  ;;  %2229 = vmatpush1.bf16.msra.mxu1 %v8463_v44  ;;  %5332 = vmatprep.mubr.msk.bf16.mxu1 %vm571_vm0, %v5331_v38 }
 0x234   :  { %v5756_v47 = vadd.f32 %v5755_v20, %v5754_v0  ;;  %v5757_v57 = vpop.f32.mrb[38].mxu0  ;;  %2023 = vmatpush1.bf16.msra.mxu0 %v11093_v43  ;;  %2230 = vmatprep.subr.bf16.mxu1 %v11089_v60  ;;  %v5330_v20 = vcombine.low %v8510_v5, %v8515_v40  ;;  %v11105_v40 = vld [vmem:[#allocation20_spill] sm:$0xff] }
 0x235   :  { %v5758_v59 = vpop.f32.mrb[39].mxu0  ;;  %2024 = vmatprep.subr.bf16.mxu0 %v11089_v60 }
 0x236   :  { %v5759_v8 = vadd.f32 %v5758_v59, %v5757_v57 }
 0x237   :  { %2231 = vmatpush1.bf16.msra.mxu1 %v8473_v52 }
 0x238   :  { %2025 = vmatpush1.bf16.msra.mxu0 %v11094_v12  ;;  %2232 = vmatprep.subr.bf16.mxu1 %v11089_v60 }
 0x239   :  { %2026 = vmatprep.subr.bf16.mxu0 %v11089_v60 }
 0x23b   :  { %2233 = vmatpush1.bf16.msra.mxu1 %v8486_v16 }
 0x23c   :  { %2027 = vmatpush1.bf16.msra.mxu0 %v11095_v19  ;;  %2234 = vmatprep.subr.bf16.mxu1 %v11089_v60 }
 0x23d   :  { %2028 = vmatprep.subr.bf16.mxu0 %v11089_v60 }
 0x23f   :  { %2235 = vmatpush1.bf16.msra.mxu1 %v11090_v34  ;;  %v5313_v34 = vcombine.low %v8437_v53, %v8442_v54 }
 0x240   :  { %2029 = vmatpush1.bf16.msra.mxu0 %v11096_v49  ;;  %2236 = vmatprep.subr.bf16.mxu1 %v11089_v60 }
 0x241   :  { %2030 = vmatprep.subr.bf16.mxu0 %v11089_v60 }
 0x243   :  { %2237 = vmatpush1.bf16.msra.mxu1 %v11091_v26  ;;  %v5329_v26 = vcombine.high %v8569_v42, %v8574_v15 }
 0x244   :  { %2031 = vmatpush1.bf16.msra.mxu0 %v11097_v21  ;;  %2238 = vmatprep.subr.bf16.mxu1 %v11089_v60 }
 0x245   :  { %2032 = vmatprep.subr.bf16.mxu0 %v11089_v60 }
 0x247   :  { %2239 = vmatpush1.bf16.msra.mxu1 %v11092_v28  ;;  %v11102_v28 = vld [vmem:[#allocation17_spill] sm:$0xff] }
 0x248   :  { %2033 = vmatpush1.bf16.msra.mxu0 %v11098_v50  ;;  %2240 = vmatprep.subr.bf16.mxu1 %v11089_v60 }
 0x249   :  { %2034 = vmatprep.subr.bf16.mxu0 %v11089_v60  ;;  %v5820_v1 = vpop.f32.mrb[32].mxu1 }
 0x24a   :  { %v5821_v45 = vpop.f32.mrb[33].mxu1 }
 0x24b   :  { %2241 = vmatpush1.bf16.msra.mxu1 %v11093_v43  ;;  %v8557_v36 = vadd.f32 %v5821_v45, %v5820_v1  ;;  %v5823_v9 = vpop.f32.mrb[34].mxu1  ;;  %v11107_v1 = vld [vmem:[#allocation22_spill] sm:$0xff] }
 0x24c   :  { %2035 = vmatpush1.bf16.msra.mxu0 %v11099_v29  ;;  %2242 = vmatprep.subr.bf16.mxu1 %v11089_v60  ;;  %v5824_v3 = vpop.f32.mrb[35].mxu1 }
 0x24d   :  { %2036 = vmatprep.subr.bf16.mxu0 %v11089_v60  ;;  %v5825_v55 = vadd.f32 %v5824_v3, %v5823_v9  ;;  %v8712_v3 = vld [vmem:[%s10897_s2 + $0x18] sm:$0xff]  }
 0x24f   :  { %2243 = vmatpush1.bf16.msra.mxu1 %v11094_v12 }
 0x250   :  { %2037 = vmatpush1.bf16.msra.mxu0 %v11100_v33  ;;  %2244 = vmatprep.subr.bf16.mxu1 %v11089_v60 }
 0x251   :  { %2038 = vmatprep.subr.bf16.mxu0 %v11089_v60 }
 0x252   :  { %v5776_v6 = vpop.f32.mrb[40].mxu0 }
 0x253   :  { %v5777_v27 = vpop.f32.mrb[41].mxu0  ;;  %2245 = vmatpush1.bf16.msra.mxu1 %v11095_v19 }
 0x254   :  { %v5778_v41 = vadd.f32 %v5777_v27, %v5776_v6  ;;  %v5779_v32 = vpop.f32.mrb[42].mxu0  ;;  %2039 = vmatpush1.bf16.msra.mxu0 %v7133_v56  ;;  %2246 = vmatprep.subr.bf16.mxu1 %v11089_v60  ;;  %v8728_v6 = vld [vmem:[%s10897_s2 + $0x20] sm:$0xff]   ;;  %v8745_v27 = vld [vmem:[%s10897_s2 + $0x68] sm:$0xff]  }
 0x255   :  { %v5780_v7 = vpop.f32.mrb[43].mxu0  ;;  %5980 = vmatprep.subr.bf16.mxu0 %v8124_v4 }
 0x256   :  { %v1527_v2 = vadd.f32 %v5778_v41, %v5756_v47  ;;  %v5781_v63 = vadd.f32 %v5780_v7, %v5779_v32 }
 0x257   :  { %2043 = vmatmul.mubr.bf16.vlgmr.msra.gmra.mrb[60].mxu0 %v5313_v34  ;;  %2247 = vmatpush1.bf16.msra.mxu1 %v11096_v49  ;;  %v11104_v49 = vld [vmem:[#allocation19_spill] sm:$0xff] }
 0x258   :  { %v1530_v58 = vadd.f32 %v5781_v63, %v5759_v8  ;;  %5981 = vmatpush3.bf16.msra.mxu0 %v8134_v61  ;;  %2248 = vmatprep.subr.bf16.mxu1 %v11089_v60  ;;  %v8588_v53 = vadd.f32 %v8503_v48, %v1527_v2  ;;  %v11101_v48 = vld [vmem:[#allocation16_spill] sm:$0xff]  ;;  %v11103_v8 = vld [vmem:[#allocation18_spill] sm:$0xff] }
 0x259   :  { %5982 = vmatprep.subr.bf16.mxu0 %v8144_v31  ;;  %2219 = vmatprep.mubr.bf16.mxu0 %v5329_v26  ;;  %v8760_v26 = vld [vmem:[%s10897_s2 + $0x28] sm:$0xff]   ;;  %v8767_v2 = vld [vmem:[%s10897_s2 + $0x70] sm:$0xff]   ;;  %11122 = vst [vmem:[#allocation18_spill] sm:$0xff] %v9123_v35 }
 0x25a   :  { %v8592_v54 = vadd.f32 %v8519_v51, %v1530_v58  ;;  %v8612_v51 = vld [vmem:[%s10898_s0 + $0x110] sm:$0xff] }
 0x25b   :  { %2249 = vmatpush1.bf16.msra.mxu1 %v11097_v21  ;;  %v5346_v43 = vcombine.high %v8612_v51, %v8617_v22  ;;  %v11106_v21 = vld [vmem:[#allocation21_spill] sm:$0xff]  ;;  %v5345_v41 = vcombine.low %v8612_v51, %v8617_v22 }
 0x25c   :  { %5983 = vmatpush3.bf16.msra.mxu0 %v8154_v46  ;;  %2250 = vmatprep.subr.bf16.mxu1 %v11089_v60 }
 0x25d   :  { %5984 = vmatprep.subr.bf16.mxu0 %v8161_v23 }
 0x25f   :  { %2251 = vmatpush1.bf16.msra.mxu1 %v11098_v50  ;;  %v8645_v50 = vld [vmem:[%s10898_s0 + $0x120] sm:$0xff] }
 0x260   :  { %5985 = vmatpush3.bf16.msra.mxu0 %v8168_v25  ;;  %2252 = vmatprep.subr.bf16.mxu1 %v11089_v60 }
 0x261   :  { %5986 = vmatprep.subr.bf16.mxu0 %v8175_v62 }
 0x263   :  { %2253 = vmatpush1.bf16.msra.mxu1 %v11099_v29 }
 0x264   :  { %5987 = vmatpush3.bf16.msra.mxu0 %v8182_v10  ;;  %2254 = vmatprep.subr.bf16.mxu1 %v11089_v60 }
 0x265   :  { %5988 = vmatprep.subr.bf16.mxu0 %v8189_v24 }
 0x267   :  { %2255 = vmatpush1.bf16.msra.mxu1 %v11100_v33 }
 0x268   :  { %5989 = vmatpush3.bf16.msra.mxu0 %v11101_v48  ;;  %2256 = vmatprep.subr.bf16.mxu1 %v11089_v60 }
 0x269   :  { %v5842_v38 = vpop.f32.mrb[36].mxu1  ;;  %5990 = vmatprep.subr.bf16.mxu0 %v11102_v28 }
 0x26a   :  { %v5843_v0 = vpop.f32.mrb[37].mxu1 }
 0x26b   :  { %v5844_v47 = vadd.f32 %v5843_v0, %v5842_v38  ;;  %v5845_v57 = vpop.f32.mrb[38].mxu1  ;;  %2257 = vmatpush1.bf16.msra.mxu1 %v7133_v56  ;;  %v8777_v38 = vld [vmem:[%s10897_s2 + $0x30] sm:$0xff]   ;;  %v8786_v0 = vld [vmem:[%s10897_s2 + $0x78] sm:$0xff]  }
 0x26c   :  { %v5846_v59 = vpop.f32.mrb[39].mxu1  ;;  %5991 = vmatpush3.bf16.msra.mxu0 %v11103_v8  ;;  %6046 = vmatprep.subr.bf16.mxu1 %v8124_v4  ;;  %v8640_v4 = vld [vmem:[%s10898_s0 + $0x100] sm:$0xff] }
 0x26d   :  { %v8628_v12 = vadd.f32 %v5844_v47, %v8557_v36  ;;  %v5847_v19 = vadd.f32 %v5846_v59, %v5845_v57  ;;  %5992 = vmatprep.subr.bf16.mxu0 %v11104_v49  ;;  %v5342_v45 = vcombine.high %v8640_v4, %v8645_v50  ;;  %v8666_v36 = vld [vmem:[%s10897_s2] sm:$0xff]   ;;  %v8792_v47 = vld [vmem:[%s10898_s0 + $0x108] sm:$0xff] }
 0x26e   :  { %2261 = vmatmul.mubr.bf16.vlgmr.msra.gmra.mrb[56].mxu1 %v5330_v20  ;;  %v8797_v57 = vld [vmem:[%s10898_s0 + $0x128] sm:$0xff] }
 0x26f   :  { %v8631_v5 = vadd.f32 %v5847_v19, %v5825_v55  ;;  %6047 = vmatpush3.bf16.msra.mxu1 %v8134_v61  ;;  %2437 = vmatprep.mubr.bf16.mxu1 %v5346_v43  ;;  %v5328_v61 = vcombine.low %v8569_v42, %v8574_v15  ;;  %v8719_v55 = vld [vmem:[%s10897_s2 + $0x60] sm:$0xff]   ;;  %v8806_v43 = vld [vmem:[%s10897_s2 + $0x38] sm:$0xff]   ;;  %v5344_v19 = vcombine.high %v8792_v47, %v8797_v57 }
 0x270   :  { %5993 = vmatpush3.bf16.msra.mxu0 %v11105_v40  ;;  %6048 = vmatprep.subr.bf16.mxu1 %v8144_v31  ;;  %v8655_v31 = vld [vmem:[%s10897_s2 + $0x40] sm:$0xff]  }
 0x271   :  { %5994 = vmatprep.subr.bf16.mxu0 %v11106_v21  ;;  %v8735_v42 = vld [vmem:[%s10899_s1 + $0x100] sm:$0xff] }
 0x272   :  { %v8722_v33 = vpop.permute.xlu0 %4164  ;;  %v8740_v15 = vld [vmem:[%s10899_s1 + $0x120] sm:$0xff] }
 0x273   :  { %6049 = vmatpush3.bf16.msra.mxu1 %v8154_v46  ;;  %v8661_v46 = vpop.permute.xlu1 %4166  ;;  %v5359_v32 = vcombine.high %v8735_v42, %v8740_v15 }
 0x274   :  { %5995 = vmatpush3.bf16.msra.mxu0 %v11107_v1  ;;  %6050 = vmatprep.subr.bf16.mxu1 %v8161_v23  ;;  %v8673_v23 = vld [vmem:[%s10897_s2 + $0x48] sm:$0xff]  }
 0x275   :  { %6002 = vmatprep.subr.bf16.mxu0 %v8655_v31 }
 0x276   :  { %v8755_v7 = vpop.permute.xlu0 %4356 }
 0x277   :  { %2220 = vmatmul.mubr.bf16.vlgmr.msra.gmra.mrb[64].mxu0 %v5328_v61  ;;  %6051 = vmatpush3.bf16.msra.mxu1 %v8168_v25  ;;  %v8680_v25 = vld [vmem:[%s10897_s2 + $0x8] sm:$0xff]   ;;  %v8690_v9 = vpop.permute.xlu1 %4358 }
 0x278   :  { %6003 = vmatpush3.bf16.msra.mxu0 %v8666_v36  ;;  %6052 = vmatprep.subr.bf16.mxu1 %v8175_v62  ;;  %v8687_v62 = vld [vmem:[%s10897_s2 + $0x50] sm:$0xff]  }
 0x279   :  { %6004 = vmatprep.subr.bf16.mxu0 %v8673_v23  ;;  %2355 = vmatprep.mubr.bf16.mxu0 %v5342_v45  ;;  %v8829_v45 = vld [vmem:[%s10897_s2 + $0xc8] sm:$0xff]  }
 0x27a   :  { %v4423_v20 = vpop.permute.xlu0 %4422 }
 0x27b   :  { %6053 = vmatpush3.bf16.msra.mxu1 %v8182_v10  ;;  %v8696_v10 = vld [vmem:[%s10897_s2 + $0x10] sm:$0xff]   ;;  %v8707_v29 = vpop.permute.xlu1 %4420 }
 0x27c   :  { %6005 = vmatpush3.bf16.msra.mxu0 %v8680_v25  ;;  %6054 = vmatprep.subr.bf16.mxu1 %v8189_v24  ;;  %v8703_v24 = vld [vmem:[%s10897_s2 + $0x58] sm:$0xff]  }
 0x27d   :  { %6006 = vmatprep.subr.bf16.mxu0 %v8687_v62 }
 0x27f   :  { %6055 = vmatpush3.bf16.msra.mxu1 %v11101_v48  ;;  %v8748_v34 = vpop.permute.xlu1 %4550 }
 0x280   :  { %6007 = vmatpush3.bf16.msra.mxu0 %v8696_v10  ;;  %6056 = vmatprep.subr.bf16.mxu1 %v11102_v28 }
 0x281   :  { %6008 = vmatprep.subr.bf16.mxu0 %v8703_v24 }
 0x283   :  { %6057 = vmatpush3.bf16.msra.mxu1 %v11103_v8  ;;  %v8772_v51 = vpop.permute.xlu1 %4548  ;;  %v8813_v8 = vld [vmem:[%s10897_s2 + $0xc0] sm:$0xff]  }
 0x284   :  { %6009 = vmatpush3.bf16.msra.mxu0 %v8712_v3  ;;  %6058 = vmatprep.subr.bf16.mxu1 %v11104_v49  ;;  %v4018_v49 = vld [vmem:[#allocation2 + $0x10] sm:$0xff] }
 0x285   :  { %6010 = vmatprep.subr.bf16.mxu0 %v8719_v55 }
 0x287   :  { %6059 = vmatpush3.bf16.msra.mxu1 %v11105_v40 }
 0x288   :  { %6011 = vmatpush3.bf16.msra.mxu0 %v8728_v6  ;;  %6060 = vmatprep.subr.bf16.mxu1 %v11106_v21 }
 0x289   :  { %6012 = vmatprep.subr.bf16.mxu0 %v8745_v27 }
 0x28b   :  { %6061 = vmatpush3.bf16.msra.mxu1 %v11107_v1 }
 0x28c   :  { %6013 = vmatpush3.bf16.msra.mxu0 %v8760_v26  ;;  %6068 = vmatprep.subr.bf16.mxu1 %v8655_v31 }
 0x28d   :  { %6014 = vmatprep.subr.bf16.mxu0 %v8767_v2 }
 0x28e   :  { %v1608_v63 = vpop.f32.mrb[44].mxu0  ;;  %2438 = vmatmul.mubr.bf16.vlgmr.msra.gmra.mrb[60].mxu1 %v5345_v41 }
 0x28f   :  { %v1609_v58 = vadd.f32 %v1608_v63, %v8588_v53  ;;  %v1610_v48 = vpop.f32.mrb[45].mxu0  ;;  %6069 = vmatpush3.bf16.msra.mxu1 %v8666_v36  ;;  %2573 = vmatprep.mubr.bf16.mxu1 %v5359_v32 }
 0x290   :  { %v1611_v22 = vpop.f32.mrb[46].mxu0  ;;  %6015 = vmatpush3.bf16.msra.mxu0 %v8777_v38  ;;  %6070 = vmatprep.subr.bf16.mxu1 %v8673_v23 }
 0x291   :  { %1616 = vst.msk [vmem:[#allocation2 + $0x20] sm:$0xff] %vm745_vm2, %v1609_v58  ;;  %v1612_v53 = vadd.f32 %v1611_v22, %v8592_v54  ;;  %v1613_v28 = vpop.f32.mrb[47].mxu0  ;;  %6016 = vmatprep.subr.bf16.mxu0 %v8786_v0  ;;  %v5341_v54 = vcombine.low %v8640_v4, %v8645_v50  ;;  %v8822_v4 = vld [vmem:[%s10897_s2 + $0x80] sm:$0xff]   ;;  %v4019_v50 = vld [vmem:[#allocation2 + $0x18] sm:$0xf]  ;;  %v4467_v58 = vadd.f32 %v4423_v20, %v8491_v18 }
 0x292   :  { %v4466_v18 = vadd.f32 %v8707_v29, %v8477_v13  ;;  %v8859_v29 = vld [vmem:[%s10897_s2 + $0x90] sm:$0xff]  }
 0x293   :  { %1617 = vst.msk [vmem:[#allocation2 + $0x28] sm:$0xff] %vm745_vm2, %v1612_v53  ;;  %6071 = vmatpush3.bf16.msra.mxu1 %v8680_v25  ;;  %v8841_v53 = vld [vmem:[%s10897_s2 + $0x88] sm:$0xff]  }
 0x294   :  { %6017 = vmatpush3.bf16.msra.mxu0 %v8806_v43  ;;  %v4069_v59 = vpop.permute.xlu1 %4068  ;;  %6072 = vmatprep.subr.bf16.mxu1 %v8687_v62 }
 0x295   :  { %6024 = vmatprep.subr.bf16.mxu0 %v8813_v8  ;;  %v4114_v21 = vadd.f32 %v4069_v59, %v4018_v49 }
 0x296   :  { %v4261_v40 = vpop.permute.xlu0 %4260 }
 0x297   :  { %2356 = vmatmul.mubr.bf16.vlgmr.msra.gmra.mrb[68].mxu0 %v5341_v54  ;;  %6073 = vmatpush3.bf16.msra.mxu1 %v8696_v10  ;;  %v4210_v48 = vadd.f32 %v8722_v33, %v4114_v21 }
 0x298   :  { %6025 = vmatpush3.bf16.msra.mxu0 %v8822_v4  ;;  %v4071_v61 = vpop.permute.xlu1 %4070  ;;  %6074 = vmatprep.subr.bf16.mxu1 %v8703_v24 }
 0x299   :  { %v4115_v1 = vadd.f32 %v4071_v61, %v4019_v50  ;;  %6026 = vmatprep.subr.bf16.mxu0 %v8829_v45  ;;  %2396 = vmatprep.mubr.bf16.mxu0 %v5344_v19  ;;  %v4306_v59 = vadd.f32 %v4261_v40, %v4210_v48  ;;  %v8868_v50 = vld [vmem:[%s10897_s2 + $0xd8] sm:$0xff]  }
 0x29a   :  { %v4487_v41 = vpop.permute.xlu0 %4486  ;;  %v4133_v32 = vld [vmem:[#allocation2 + $0x29] sm:$0xf]  ;;  %v4132_v63 = vld [vmem:[#allocation2 + $0x21] sm:$0xff] }
 0x29b   :  { %6075 = vmatpush3.bf16.msra.mxu1 %v8712_v3  ;;  %4170 = vrot.lane.b32.xlu1 %v4133_v32, %s6799_s21  ;;  %v4211_v22 = vadd.f32 %v8661_v46, %v4115_v1  ;;  %v4531_v33 = vadd.f32 %v4487_v41, %v4467_v58  ;;  %v8850_v46 = vld [vmem:[%s10897_s2 + $0xd0] sm:$0xff]   ;;  %v4325_v54 = vld [vmem:[#allocation2 + $0x2a] sm:$0xf]  ;;  %v4324_v13 = vld [vmem:[#allocation2 + $0x22] sm:$0xff]  ;;  %v4402_v41 = vadd.f32 %v8755_v7, %v4306_v59 }
 0x29c   :  { %4168 = vrot.lane.b32.xlu0 %v4132_v63, %s6799_s21  ;;  %6027 = vmatpush3.bf16.msra.mxu0 %v8841_v53  ;;  %v4263_v28 = vpop.permute.xlu1 %4262  ;;  %v8895_v59 = vld [vmem:[%s10897_s2 + $0xa0] sm:$0xff]  }
 0x29d   :  { %6076 = vmatprep.subr.bf16.mxu1 %v8719_v55  ;;  %6028 = vmatprep.subr.bf16.mxu0 %v8850_v46  ;;  %v4307_v19 = vadd.f32 %v4263_v28, %v4211_v22  ;;  %v4595_v40 = vadd.f32 %v8748_v34, %v4531_v33  ;;  %v8878_v34 = vld [vmem:[%s10897_s2 + $0x98] sm:$0xff]  }
 0x29e   :  { %v4485_v20 = vpop.permute.xlu0 %4484 }
 0x29f   :  { %v4530_v49 = vadd.f32 %v4485_v20, %v4466_v18  ;;  %6077 = vmatpush3.bf16.msra.mxu1 %v8728_v6  ;;  %4362 = vrot.lane.b32.xlu1 %v4325_v54, %s6800_s26  ;;  %v4403_v58 = vadd.f32 %v8690_v9, %v4307_v19  ;;  %v8885_v9 = vld [vmem:[%s10897_s2 + $0xe0] sm:$0xff]  }
 0x2a0   :  { %4360 = vrot.lane.b32.xlu0 %v4324_v13, %s6800_s26  ;;  %6029 = vmatpush3.bf16.msra.mxu0 %v8859_v29  ;;  %v4645_v61 = vpop.permute.xlu1 %4644 }
 0x2a1   :  { %v4594_v21 = vadd.f32 %v8772_v51, %v4530_v49  ;;  %6078 = vmatprep.subr.bf16.mxu1 %v8745_v27  ;;  %6030 = vmatprep.subr.bf16.mxu0 %v8868_v50  ;;  %v8901_v49 = vld [vmem:[%s10899_s1 + $0x108] sm:$0xff] }
 0x2a2   :  { %v4647_v1 = vpop.permute.xlu0 %4646 }
 0x2a3   :  { %v4690_v48 = vadd.f32 %v4645_v61, %v4594_v21  ;;  %v4691_v22 = vadd.f32 %v4647_v1, %v4595_v40  ;;  %6079 = vmatpush3.bf16.msra.mxu1 %v8760_v26  ;;  %v5358_v40 = vcombine.low %v8735_v42, %v8740_v15  ;;  %v8939_v15 = vld [vmem:[%s10897_s2 + $0xf0] sm:$0xff]  }
 0x2a4   :  { %4426 = vrot.lane.b32.xlu0 %v4133_v32, %s6801_s7  ;;  %6031 = vmatpush3.bf16.msra.mxu0 %v8878_v34 }
 0x2a5   :  { %v4706_v51 = vmax.f32 %v4402_v41, %v4690_v48  ;;  %v4707_v28 = vmax.f32 %v4403_v58, %v4691_v22  ;;  %6080 = vmatprep.subr.bf16.mxu1 %v8767_v2  ;;  %6032 = vmatprep.subr.bf16.mxu0 %v8885_v9  ;;  %v1826_v7 = vpop.f32.mrb[40].mxu1  ;;  %v8926_v58 = vld [vmem:[%s10897_s2 + $0xa8] sm:$0xff]  }
 0x2a6   :  { %v1828_v32 = vpop.f32.mrb[41].mxu1 }
 0x2a7   :  { %v4729_v18 = vadd.f32 %v8381_v14, %v4706_v51  ;;  %v4730_v33 = vadd.f32 %v8381_v14, %v4707_v28  ;;  %6081 = vmatpush3.bf16.msra.mxu1 %v8777_v38  ;;  %v1829_v20 = vpop.f32.mrb[42].mxu1  ;;  %v8906_v14 = vld [vmem:[%s10899_s1 + $0x128] sm:$0xff]  ;;  %v8951_v32 = vld [vmem:[%s10897_s2 + $0xb0] sm:$0xff]  }
 0x2a8   :  { %4424 = vrot.lane.b32.xlu0 %v4132_v63, %s6801_s7  ;;  %6033 = vmatpush3.bf16.msra.mxu0 %v8895_v59  ;;  %v1831_v19 = vpop.f32.mrb[43].mxu1  ;;  %v8912_v63 = vld [vmem:[%s10897_s2 + $0xe8] sm:$0xff]   ;;  %v5361_v1 = vcombine.high %v8901_v49, %v8906_v14 }
 0x2a9   :  { %6082 = vmatprep.subr.bf16.mxu1 %v8786_v0  ;;  %6034 = vmatprep.subr.bf16.mxu0 %v8912_v63  ;;  %vm4746_vm5 = vcmp.gt.f32.partialorder %v4730_v33, 0.0  ;;  %v4762_v21 = vmul.f32 0.01, %v4730_v33  ;;  %vm4745_vm6 = vcmp.gt.f32.partialorder %v4729_v18, 0.0  ;;  %v4761_v61 = vmul.f32 0.01, %v4729_v18 }
 0x2aa   :  { %v8965_v19 = vld [vmem:[%s10898_s0 + $0x118] sm:$0xff] }
 0x2ab   :  { %6083 = vmatpush3.bf16.msra.mxu1 %v8806_v43  ;;  %v8920_v41 = vsel %vm4746_vm5, %v4730_v33, %v4762_v21  ;;  %v8929_v48 = vsel %vm4745_vm6, %v4729_v18, %v4761_v61  ;;  %v8970_v21 = vld [vmem:[%s10898_s0 + $0x138] sm:$0xff]  ;;  %vm4859_vm5 = vcmask 1043456   ;;  %vm4948_vm6 = vcmask 1041409  }
 0x2ac   :  { %11108 = vst [vmem:[#allocation4_spill] sm:$0xff] %v8920_v41  ;;  %4554 = vrot.lane.b32.xlu0 %v4325_v54, %s6802_s12  ;;  %6035 = vmatpush3.bf16.msra.mxu0 %v8926_v58  ;;  %11109 = vst [vmem:[#allocation5_spill] sm:$0xff] %v8929_v48  ;;  %v8933_v42 = vmul.f32 %v8410_v11, %v8920_v41  ;;  %v8944_v54 = vmul.f32 %v8426_v30, %v8929_v48  ;;  %v8958_v30 = vld [vmem:[%s10897_s2 + $0xf8] sm:$0xff]  }
 0x2ad   :  { %6090 = vmatprep.subr.bf16.mxu1 %v8813_v8  ;;  %6036 = vmatprep.subr.bf16.mxu0 %v8939_v15  ;;  %v5347_v37 = vcombine.low %v8965_v19, %v8970_v21 }
 0x2ae   :  { %11110 = vst [vmem:[#allocation6_spill] sm:$0xff] %v8933_v42  ;;  %11111 = vst [vmem:[#allocation7_spill] sm:$0xff] %v8944_v54  ;;  %v5864_v22 = vpop.f32.mrb[48].mxu0  ;;  %2574 = vmatmul.mubr.bf16.vlgmr.msra.gmra.mrb[64].mxu1 %v5358_v40  ;;  %v5343_v40 = vcombine.low %v8792_v47, %v8797_v57 }
 0x2af   :  { %v5865_v51 = vpop.f32.mrb[49].mxu0  ;;  %6091 = vmatpush3.bf16.msra.mxu1 %v8822_v4  ;;  %2614 = vmatprep.mubr.bf16.mxu1 %v5361_v1 }
 0x2b0   :  { %v5866_v11 = vadd.f32 %v5865_v51, %v5864_v22  ;;  %4552 = vrot.lane.b32.xlu0 %v4324_v13, %s6802_s12  ;;  %v5867_v28 = vpop.f32.mrb[50].mxu0  ;;  %6037 = vmatpush3.bf16.msra.mxu0 %v8951_v32  ;;  %v5348_v22 = vcombine.high %v8965_v19, %v8970_v21  ;;  %v9014_v51 = vld [vmem:[%s10897_s2 + $0x198] sm:$0xff]  }
 0x2b1   :  { %v5868_v18 = vpop.f32.mrb[51].mxu0  ;;  %6092 = vmatprep.subr.bf16.mxu1 %v8829_v45  ;;  %6038 = vmatprep.subr.bf16.mxu0 %v8958_v30  ;;  %11113 = vst [vmem:[#allocation9_spill] sm:$0xff] %v9014_v51 }
 0x2b2   :  { %v5869_v33 = vadd.f32 %v5868_v18, %v5867_v28  ;;  %v1786_v13 = vadd.f32 %v5866_v11, %v8628_v12  ;;  %v8979_v12 = vld [vmem:[%s10897_s2 + $0xb8] sm:$0xff]  }
 0x2b3   :  { %6093 = vmatpush3.bf16.msra.mxu1 %v8841_v53  ;;  %11112 = vst [vmem:[#allocation8_spill] sm:$0xff] %v8979_v12 }
 0x2b4   :  { %v1827_v61 = vadd.f32 %v1826_v7, %v1786_v13  ;;  %v1789_v1 = vadd.f32 %v5869_v33, %v8631_v5  ;;  %6039 = vmatpush3.bf16.msra.mxu0 %v8979_v12  ;;  %6094 = vmatprep.subr.bf16.mxu1 %v8850_v46 }
 0x2b5   :  { %2446 = vmatprep.subr.bf16.mxu0 %v11089_v60 }
 0x2b6   :  { %1834 = vst.msk [vmem:[#allocation3 + $0x20] sm:$0xff] %vm745_vm2, %v1827_v61  ;;  %v1830_v47 = vadd.f32 %v1829_v20, %v1789_v1  ;;  %v9034_v1 = vld [vmem:[%s10899_s1 + $0x118] sm:$0xff] }
 0x2b7   :  { %2397 = vmatmul.mubr.bf16.vlgmr.msra.gmra.mrb[72].mxu0 %v5343_v40  ;;  %6095 = vmatpush3.bf16.msra.mxu1 %v8859_v29  ;;  %v9027_v40 = vld [vmem:[%s10897_s2 + $0x1a0] sm:$0xff]  }
 0x2b8   :  { %1835 = vst.msk [vmem:[#allocation3 + $0x28] sm:$0xff] %vm745_vm2, %v1830_v47  ;;  %2447 = vmatpush1.bf16.msra.mxu0 %v8463_v44  ;;  %6096 = vmatprep.subr.bf16.mxu1 %v8868_v50  ;;  %11114 = vst [vmem:[#allocation10_spill] sm:$0xff] %v9027_v40 }
 0x2b9   :  { %2448 = vmatprep.subr.bf16.mxu0 %v11089_v60  ;;  %5349 = vmatprep.mubr.msk.bf16.mxu0 %vm571_vm0, %v5348_v22  ;;  %v9039_v22 = vld [vmem:[%s10899_s1 + $0x138] sm:$0xff] }
 0x2bb   :  { %6097 = vmatpush3.bf16.msra.mxu1 %v8878_v34 }
 0x2bc   :  { %2449 = vmatpush1.bf16.msra.mxu0 %v8473_v52  ;;  %6098 = vmatprep.subr.bf16.mxu1 %v8885_v9 }
 0x2bd   :  { %v8996_v5 = vld [vmem:[#allocation3 + $0x20] sm:$0xff]  ;;  %2450 = vmatprep.subr.bf16.mxu0 %v11089_v60 }
 0x2be   :  { %4072 = vrot.lane.b32.xlu0 %v8996_v5, %s6801_s7 }
 0x2bf   :  { %6099 = vmatpush3.bf16.msra.mxu1 %v8895_v59  ;;  %v9002_v57 = vld [vmem:[#allocation3 + $0x28] sm:$0xf] }
 0x2c0   :  { %2451 = vmatpush1.bf16.msra.mxu0 %v8486_v16  ;;  %4074 = vrot.lane.b32.xlu1 %v9002_v57, %s6801_s7  ;;  %v4228_v7 = vld [vmem:[#allocation3 + $0x21] sm:$0xff]  ;;  %v4229_v20 = vld [vmem:[#allocation3 + $0x29] sm:$0xf] }
 0x2c1   :  { %6100 = vmatprep.subr.bf16.mxu1 %v8912_v63  ;;  %2452 = vmatprep.subr.bf16.mxu0 %v11089_v60  ;;  %v4613_v11 = vld [vmem:[#allocation3 + $0x2a] sm:$0xf]  ;;  %v4612_v47 = vld [vmem:[#allocation3 + $0x22] sm:$0xff] }
 0x2c2   :  { %4264 = vrot.lane.b32.xlu0 %v4228_v7, %s6802_s12 }
 0x2c3   :  { %6101 = vmatpush3.bf16.msra.mxu1 %v8926_v58 }
 0x2c4   :  { %2453 = vmatpush1.bf16.msra.mxu0 %v9014_v51  ;;  %4266 = vrot.lane.b32.xlu1 %v4229_v20, %s6802_s12 }
 0x2c5   :  { %6102 = vmatprep.subr.bf16.mxu1 %v8939_v15  ;;  %2454 = vmatprep.subr.bf16.mxu0 %v11089_v60  ;;  %v5930_v28 = vpop.f32.mrb[44].mxu1 }
 0x2c6   :  { %4650 = vrot.lane.b32.xlu0 %v4613_v11, %s6800_s26  ;;  %v5931_v18 = vpop.f32.mrb[45].mxu1 }
 0x2c7   :  { %6103 = vmatpush3.bf16.msra.mxu1 %v8951_v32  ;;  %v9022_v33 = vadd.f32 %v5931_v18, %v5930_v28  ;;  %v5933_v13 = vpop.f32.mrb[46].mxu1  ;;  %v5365_v28 = vcombine.high %v9034_v1, %v9039_v22  ;;  %v9054_v18 = vld [vmem:[%s10897_s2 + $0x1a8] sm:$0xff]  }
 0x2c8   :  { %2455 = vmatpush1.bf16.msra.mxu0 %v9027_v40  ;;  %4490 = vrot.lane.b32.xlu1 %v4229_v20, %s6799_s21  ;;  %v5934_v61 = vpop.f32.mrb[47].mxu1  ;;  %v5360_v20 = vcombine.low %v8901_v49, %v8906_v14  ;;  %11115 = vst [vmem:[#allocation11_spill] sm:$0xff] %v9054_v18 }
 0x2c9   :  { %6104 = vmatprep.subr.bf16.mxu1 %v8958_v30  ;;  %2456 = vmatprep.subr.bf16.mxu0 %v11089_v60  ;;  %v9043_v11 = vadd.f32 %v5934_v61, %v5933_v13 }
 0x2ca   :  { %4648 = vrot.lane.b32.xlu0 %v4612_v47, %s6800_s26  ;;  %v9067_v47 = vld [vmem:[%s10897_s2 + $0x1b0] sm:$0xff]  }
 0x2cb   :  { %6105 = vmatpush3.bf16.msra.mxu1 %v8979_v12  ;;  %11116 = vst [vmem:[#allocation12_spill] sm:$0xff] %v9067_v47 }
 0x2cc   :  { %2457 = vmatpush1.bf16.msra.mxu0 %v9054_v18  ;;  %4488 = vrot.lane.b32.xlu1 %v4228_v7, %s6799_s21 }
 0x2cd   :  { %2664 = vmatprep.subr.bf16.mxu1 %v11089_v60  ;;  %2458 = vmatprep.subr.bf16.mxu0 %v11089_v60 }
 0x2ce   :  { %v5886_v13 = vpop.f32.mrb[52].mxu0  ;;  %2615 = vmatmul.mubr.bf16.vlgmr.msra.gmra.mrb[68].mxu1 %v5360_v20 }
 0x2cf   :  { %v5887_v49 = vpop.f32.mrb[53].mxu0  ;;  %2665 = vmatpush1.bf16.msra.mxu1 %v8463_v44  ;;  %5366 = vmatprep.mubr.msk.bf16.mxu1 %vm571_vm0, %v5365_v28  ;;  %v9076_v44 = vld [vmem:[%s10897_s2 + $0x1b8] sm:$0xff]   ;;  %v9085_v28 = vld [vmem:[%s10897_s2 + $0x1c0] sm:$0xff]  }
 0x2d0   :  { %v9062_v14 = vadd.f32 %v5887_v49, %v5886_v13  ;;  %v5889_v61 = vpop.f32.mrb[54].mxu0  ;;  %2459 = vmatpush1.bf16.msra.mxu0 %v9067_v47  ;;  %2666 = vmatprep.subr.bf16.mxu1 %v11089_v60  ;;  %11117 = vst [vmem:[#allocation13_spill] sm:$0xff] %v9076_v44  ;;  %11118 = vst [vmem:[#allocation14_spill] sm:$0xff] %v9085_v28  ;;  %v9112_v13 = vld [vmem:[%s10897_s2 + $0x1d8] sm:$0xff]  }
 0x2d1   :  { %v5890_v7 = vpop.f32.mrb[55].mxu0  ;;  %2460 = vmatprep.subr.bf16.mxu0 %v11089_v60  ;;  %11121 = vst [vmem:[#allocation17_spill] sm:$0xff] %v9112_v13 }
 0x2d2   :  { %v5891_v20 = vadd.f32 %v5890_v7, %v5889_v61 }
 0x2d3   :  { %2667 = vmatpush1.bf16.msra.mxu1 %v8473_v52  ;;  %v9094_v52 = vld [vmem:[%s10897_s2 + $0x1c8] sm:$0xff]  }
 0x2d4   :  { %2461 = vmatpush1.bf16.msra.mxu0 %v9076_v44  ;;  %2668 = vmatprep.subr.bf16.mxu1 %v11089_v60  ;;  %11119 = vst [vmem:[#allocation15_spill] sm:$0xff] %v9094_v52 }
 0x2d5   :  { %2462 = vmatprep.subr.bf16.mxu0 %v11089_v60 }
 0x2d7   :  { %2669 = vmatpush1.bf16.msra.mxu1 %v8486_v16  ;;  %v9103_v16 = vld [vmem:[%s10897_s2 + $0x1d0] sm:$0xff]  }
 0x2d8   :  { %2463 = vmatpush1.bf16.msra.mxu0 %v9085_v28  ;;  %2670 = vmatprep.subr.bf16.mxu1 %v11089_v60  ;;  %11120 = vst [vmem:[#allocation16_spill] sm:$0xff] %v9103_v16 }
 0x2d9   :  { %2464 = vmatprep.subr.bf16.mxu0 %v11089_v60 }
 0x2db   :  { %2671 = vmatpush1.bf16.msra.mxu1 %v9014_v51 }
 0x2dc   :  { %2465 = vmatpush1.bf16.msra.mxu0 %v9094_v52  ;;  %2672 = vmatprep.subr.bf16.mxu1 %v11089_v60 }
 0x2dd   :  { %2466 = vmatprep.subr.bf16.mxu0 %v11089_v60 }
 0x2df   :  { %2673 = vmatpush1.bf16.msra.mxu1 %v9027_v40 }
 0x2e0   :  { %2467 = vmatpush1.bf16.msra.mxu0 %v9103_v16  ;;  %2674 = vmatprep.subr.bf16.mxu1 %v11089_v60 }
 0x2e1   :  { %2468 = vmatprep.subr.bf16.mxu0 %v11089_v60 }
 0x2e3   :  { %2675 = vmatpush1.bf16.msra.mxu1 %v9054_v18 }
 0x2e4   :  { %2469 = vmatpush1.bf16.msra.mxu0 %v9112_v13  ;;  %2676 = vmatprep.subr.bf16.mxu1 %v11089_v60 }
 0x2e5   :  { %2470 = vmatprep.subr.bf16.mxu0 %v11089_v60  ;;  %v5952_v49 = vpop.f32.mrb[48].mxu1 }
 0x2e6   :  { %v5953_v61 = vpop.f32.mrb[49].mxu1 }
 0x2e7   :  { %2677 = vmatpush1.bf16.msra.mxu1 %v9067_v47  ;;  %v9118_v7 = vadd.f32 %v5953_v61, %v5952_v49  ;;  %v5955_v39 = vpop.f32.mrb[50].mxu1  ;;  %v9134_v49 = vld [vmem:[%s10897_s2 + $0x1e8] sm:$0xff]   ;;  %v9157_v47 = vld [vmem:[%s10897_s2 + $0x140] sm:$0xff]  }
 0x2e8   :  { %2471 = vmatpush1.bf16.msra.mxu0 %v9123_v35  ;;  %2678 = vmatprep.subr.bf16.mxu1 %v11089_v60  ;;  %v5956_v54 = vpop.f32.mrb[51].mxu1  ;;  %11123 = vst [vmem:[#allocation19_spill] sm:$0xff] %v9134_v49 }
 0x2e9   :  { %2472 = vmatprep.subr.bf16.mxu0 %v11089_v60  ;;  %v9128_v42 = vadd.f32 %v5956_v54, %v5955_v39  ;;  %v9147_v39 = vld [vmem:[%s10899_s1 + $0x130] sm:$0xff] }
 0x2eb   :  { %2679 = vmatpush1.bf16.msra.mxu1 %v9076_v44 }
 0x2ec   :  { %2473 = vmatpush1.bf16.msra.mxu0 %v9134_v49  ;;  %2680 = vmatprep.subr.bf16.mxu1 %v11089_v60 }
 0x2ed   :  { %2474 = vmatprep.subr.bf16.mxu0 %v11089_v60 }
 0x2ee   :  { %v5908_v61 = vpop.f32.mrb[56].mxu0 }
 0x2ef   :  { %v5909_v54 = vpop.f32.mrb[57].mxu0  ;;  %2681 = vmatpush1.bf16.msra.mxu1 %v9085_v28  ;;  %v5363_v28 = vcombine.high %v9142_v17, %v9147_v39 }
 0x2f0   :  { %v5910_v48 = vadd.f32 %v5909_v54, %v5908_v61  ;;  %v5911_v41 = vpop.f32.mrb[58].mxu0  ;;  %2475 = vmatpush1.bf16.msra.mxu0 %v7133_v56  ;;  %2682 = vmatprep.subr.bf16.mxu1 %v11089_v60  ;;  %v9167_v61 = vld [vmem:[%s10897_s2 + $0x100] sm:$0xff]  }
 0x2f1   :  { %v5912_v44 = vpop.f32.mrb[59].mxu0  ;;  %6112 = vmatprep.subr.bf16.mxu0 %v9157_v47 }
 0x2f2   :  { %v1963_v18 = vadd.f32 %v5910_v48, %v9062_v14  ;;  %v5913_v19 = vadd.f32 %v5912_v44, %v5911_v41  ;;  %v9177_v41 = vld [vmem:[%s10897_s2 + $0x148] sm:$0xff]   ;;  %v9215_v14 = vld [vmem:[%s10897_s2 + $0x118] sm:$0xff]   ;;  %v9229_v44 = vld [vmem:[%s10897_s2 + $0x120] sm:$0xff]  }
 0x2f3   :  { %2479 = vmatmul.mubr.bf16.vlgmr.msra.gmra.mrb[76].mxu0 %v5347_v37  ;;  %2683 = vmatpush1.bf16.msra.mxu1 %v9094_v52  ;;  %v9187_v48 = vld [vmem:[%s10897_s2 + $0x108] sm:$0xff]   ;;  %11125 = vst [vmem:[#allocation21_spill] sm:$0xff] %v9229_v44 }
 0x2f4   :  { %v1966_v21 = vadd.f32 %v5913_v19, %v5891_v20  ;;  %6113 = vmatpush3.bf16.msra.mxu0 %v9167_v61  ;;  %2684 = vmatprep.subr.bf16.mxu1 %v11089_v60  ;;  %v9172_v54 = vadd.f32 %v9022_v33, %v1963_v18  ;;  %v9194_v33 = vld [vmem:[%s10897_s2 + $0x150] sm:$0xff]   ;;  %v9208_v18 = vld [vmem:[%s10897_s2 + $0x158] sm:$0xff]   ;;  %v9222_v20 = vld [vmem:[%s10897_s2 + $0x160] sm:$0xff]  }
 0x2f5   :  { %6114 = vmatprep.subr.bf16.mxu0 %v9177_v41  ;;  %2655 = vmatprep.mubr.bf16.mxu0 %v5363_v28  ;;  %11124 = vst [vmem:[#allocation20_spill] sm:$0xff] %v9222_v20  ;;  %v9236_v28 = vld [vmem:[%s10898_s0 + $0x150] sm:$0xff] }
 0x2f6   :  { %v9181_v37 = vadd.f32 %v9043_v11, %v1966_v21  ;;  %v9201_v11 = vld [vmem:[%s10897_s2 + $0x110] sm:$0xff]  }
 0x2f7   :  { %2685 = vmatpush1.bf16.msra.mxu1 %v9103_v16  ;;  %v9241_v19 = vld [vmem:[%s10898_s0 + $0x170] sm:$0xff] }
 0x2f8   :  { %6115 = vmatpush3.bf16.msra.mxu0 %v9187_v48  ;;  %2686 = vmatprep.subr.bf16.mxu1 %v11089_v60  ;;  %v5380_v40 = vcombine.high %v9236_v28, %v9241_v19 }
 0x2f9   :  { %6116 = vmatprep.subr.bf16.mxu0 %v9194_v33 }
 0x2fb   :  { %2687 = vmatpush1.bf16.msra.mxu1 %v9112_v13  ;;  %v5364_v13 = vcombine.low %v9034_v1, %v9039_v22  ;;  %v9267_v1 = vld [vmem:[%s10897_s2 + $0x170] sm:$0xff]  }
 0x2fc   :  { %6117 = vmatpush3.bf16.msra.mxu0 %v9201_v11  ;;  %2688 = vmatprep.subr.bf16.mxu1 %v11089_v60  ;;  %11128 = vst [vmem:[#allocation28_spill] sm:$0xff] %v9267_v1 }
 0x2fd   :  { %6118 = vmatprep.subr.bf16.mxu0 %v9208_v18 }
 0x2ff   :  { %2689 = vmatpush1.bf16.msra.mxu1 %v9123_v35 }
 0x300   :  { %6119 = vmatpush3.bf16.msra.mxu0 %v9215_v14  ;;  %2690 = vmatprep.subr.bf16.mxu1 %v11089_v60 }
 0x301   :  { %6120 = vmatprep.subr.bf16.mxu0 %v9222_v20 }
 0x303   :  { %2691 = vmatpush1.bf16.msra.mxu1 %v9134_v49  ;;  %v9246_v49 = vld [vmem:[%s10897_s2 + $0x168] sm:$0xff]  }
 0x304   :  { %6121 = vmatpush3.bf16.msra.mxu0 %v9229_v44  ;;  %2692 = vmatprep.subr.bf16.mxu1 %v11089_v60  ;;  %11126 = vst [vmem:[#allocation22_spill] sm:$0xff] %v9246_v49  ;;  %v9257_v60 = vld [vmem:[%s10897_s2 + $0x128] sm:$0xff]  }
 0x305   :  { %v5974_v21 = vpop.f32.mrb[52].mxu1  ;;  %6122 = vmatprep.subr.bf16.mxu0 %v9246_v49  ;;  %11127 = vst [vmem:[#allocation27_spill] sm:$0xff] %v9257_v60 }
 0x306   :  { %v5975_v35 = vpop.f32.mrb[53].mxu1 }
 0x307   :  { %v5976_v16 = vadd.f32 %v5975_v35, %v5974_v21  ;;  %v5977_v52 = vpop.f32.mrb[54].mxu1  ;;  %2693 = vmatpush1.bf16.msra.mxu1 %v7133_v56 }
 0x308   :  { %v5978_v51 = vpop.f32.mrb[55].mxu1  ;;  %6123 = vmatpush3.bf16.msra.mxu0 %v9257_v60  ;;  %6178 = vmatprep.subr.bf16.mxu1 %v9157_v47 }
 0x309   :  { %v9262_v12 = vadd.f32 %v5976_v16, %v9118_v7  ;;  %v5979_v35 = vadd.f32 %v5978_v51, %v5977_v52  ;;  %6124 = vmatprep.subr.bf16.mxu0 %v9267_v1  ;;  %v9277_v16 = vld [vmem:[%s10897_s2 + $0x130] sm:$0xff]   ;;  %v9284_v51 = vld [vmem:[%s10897_s2 + $0x178] sm:$0xff]   ;;  %v9297_v52 = vld [vmem:[%s10898_s0 + $0x160] sm:$0xff] }
 0x30a   :  { %2697 = vmatmul.mubr.bf16.vlgmr.msra.gmra.mrb[72].mxu1 %v5364_v13  ;;  %11129 = vst [vmem:[#allocation29_spill] sm:$0xff] %v9277_v16  ;;  %11130 = vst [vmem:[#allocation30_spill] sm:$0xff] %v9284_v51  ;;  %v5362_v13 = vcombine.low %v9142_v17, %v9147_v39  ;;  %v9305_v7 = vld [vmem:[%s10897_s2 + $0x138] sm:$0xff]  }
 0x30b   :  { %v9271_v22 = vadd.f32 %v5979_v35, %v9128_v42  ;;  %6179 = vmatpush3.bf16.msra.mxu1 %v9167_v61  ;;  %2873 = vmatprep.mubr.bf16.mxu1 %v5380_v40  ;;  %v9292_v40 = vld [vmem:[%s10898_s0 + $0x140] sm:$0xff]  ;;  %11131 = vst [vmem:[#allocation31_spill] sm:$0xff] %v9305_v7 }
 0x30c   :  { %6125 = vmatpush3.bf16.msra.mxu0 %v9277_v16  ;;  %6180 = vmatprep.subr.bf16.mxu1 %v9177_v41  ;;  %v5376_v21 = vcombine.high %v9292_v40, %v9297_v52 }
 0x30d   :  { %6126 = vmatprep.subr.bf16.mxu0 %v9284_v51 }
 0x30e   :  { %v9287_v42 = vpop.permute.xlu0 %4168 }
 0x30f   :  { %6181 = vmatpush3.bf16.msra.mxu1 %v9187_v48 }
 0x310   :  { %6127 = vmatpush3.bf16.msra.mxu0 %v9305_v7  ;;  %6182 = vmatprep.subr.bf16.mxu1 %v9194_v33 }
 0x311   :  { %6134 = vmatprep.subr.bf16.mxu0 %v8655_v31 }
 0x312   :  { %v9313_v35 = vpop.permute.xlu0 %4360 }
 0x313   :  { %2656 = vmatmul.mubr.bf16.vlgmr.msra.gmra.mrb[80].mxu0 %v5362_v13  ;;  %6183 = vmatpush3.bf16.msra.mxu1 %v9201_v11  ;;  %v9340_v13 = vld [vmem:[%s10899_s1 + $0x140] sm:$0xff] }
 0x314   :  { %6135 = vmatpush3.bf16.msra.mxu0 %v8666_v36  ;;  %6184 = vmatprep.subr.bf16.mxu1 %v9208_v18 }
 0x315   :  { %6136 = vmatprep.subr.bf16.mxu0 %v8673_v23  ;;  %2791 = vmatprep.mubr.bf16.mxu0 %v5376_v21  ;;  %v9345_v21 = vld [vmem:[%s10899_s1 + $0x160] sm:$0xff] }
 0x316   :  { %v9322_v17 = vpop.permute.xlu0 %4426 }
 0x317   :  { %6185 = vmatpush3.bf16.msra.mxu1 %v9215_v14 }
 0x318   :  { %6137 = vmatpush3.bf16.msra.mxu0 %v8680_v25  ;;  %6186 = vmatprep.subr.bf16.mxu1 %v9222_v20 }
 0x319   :  { %6138 = vmatprep.subr.bf16.mxu0 %v8687_v62 }
 0x31a   :  { %v9329_v39 = vpop.permute.xlu0 %4424 }
 0x31b   :  { %6187 = vmatpush3.bf16.msra.mxu1 %v9229_v44 }
 0x31c   :  { %6139 = vmatpush3.bf16.msra.mxu0 %v8696_v10  ;;  %6188 = vmatprep.subr.bf16.mxu1 %v9246_v49 }
 0x31d   :  { %6140 = vmatprep.subr.bf16.mxu0 %v8703_v24 }
 0x31f   :  { %6189 = vmatpush3.bf16.msra.mxu1 %v9257_v60  ;;  %v4171_v60 = vpop.permute.xlu1 %4170 }
 0x320   :  { %6141 = vmatpush3.bf16.msra.mxu0 %v8712_v3  ;;  %6190 = vmatprep.subr.bf16.mxu1 %v9267_v1  ;;  %v9348_v1 = vpop.permute.xlu0 %4554 }
 0x321   :  { %6142 = vmatprep.subr.bf16.mxu0 %v8719_v55 }
 0x323   :  { %6191 = vmatpush3.bf16.msra.mxu1 %v9277_v16  ;;  %v5379_v16 = vcombine.low %v9236_v28, %v9241_v19 }
 0x324   :  { %6143 = vmatpush3.bf16.msra.mxu0 %v8728_v6  ;;  %6192 = vmatprep.subr.bf16.mxu1 %v9284_v51  ;;  %v5393_v51 = vcombine.high %v9340_v13, %v9345_v21  ;;  %v9360_v28 = vpop.permute.xlu0 %4552 }
 0x325   :  { %6144 = vmatprep.subr.bf16.mxu0 %v8745_v27 }
 0x327   :  { %6193 = vmatpush3.bf16.msra.mxu1 %v9305_v7 }
 0x328   :  { %6145 = vmatpush3.bf16.msra.mxu0 %v8760_v26  ;;  %6200 = vmatprep.subr.bf16.mxu1 %v8655_v31 }
 0x329   :  { %6146 = vmatprep.subr.bf16.mxu0 %v8767_v2 }
 0x32a   :  { %v2044_v49 = vpop.f32.mrb[60].mxu0  ;;  %2874 = vmatmul.mubr.bf16.vlgmr.msra.gmra.mrb[76].mxu1 %v5379_v16  ;;  %v4363_v16 = vpop.permute.xlu1 %4362 }
 0x32b   :  { %v2045_v44 = vadd.f32 %v2044_v49, %v9172_v54  ;;  %v2046_v20 = vpop.f32.mrb[61].mxu0  ;;  %6201 = vmatpush3.bf16.msra.mxu1 %v8666_v36  ;;  %3009 = vmatprep.mubr.bf16.mxu1 %v5393_v51  ;;  %v9370_v36 = vld [vmem:[%s10898_s0 + $0x148] sm:$0xff] }
 0x32c   :  { %v2047_v19 = vpop.f32.mrb[62].mxu0  ;;  %6147 = vmatpush3.bf16.msra.mxu0 %v8777_v38  ;;  %6202 = vmatprep.subr.bf16.mxu1 %v8673_v23  ;;  %v9375_v49 = vld [vmem:[%s10898_s0 + $0x168] sm:$0xff]  ;;  %v5375_v23 = vcombine.low %v9292_v40, %v9297_v52 }
 0x32d   :  { %2052 = vst.msk [vmem:[#allocation2 + $0x30] sm:$0xff] %vm745_vm2, %v2045_v44  ;;  %v2048_v31 = vadd.f32 %v2047_v19, %v9181_v37  ;;  %v2049_v7 = vpop.f32.mrb[63].mxu0  ;;  %6148 = vmatprep.subr.bf16.mxu0 %v8786_v0  ;;  %v5378_v37 = vcombine.high %v9370_v36, %v9375_v49  ;;  %v4021_v20 = vld [vmem:[#allocation2 + $0x28] sm:$0xf] }
 0x32f   :  { %2053 = vst.msk [vmem:[#allocation2 + $0x38] sm:$0xff] %vm745_vm2, %v2048_v31  ;;  %6203 = vmatpush3.bf16.msra.mxu1 %v8680_v25  ;;  %v4020_v25 = vld [vmem:[#allocation2 + $0x20] sm:$0xff] }
 0x330   :  { %6149 = vmatpush3.bf16.msra.mxu0 %v8806_v43  ;;  %v4073_v54 = vpop.permute.xlu0 %4072  ;;  %6204 = vmatprep.subr.bf16.mxu1 %v8687_v62 }
 0x331   :  { %6156 = vmatprep.subr.bf16.mxu0 %v8813_v8  ;;  %v4116_v62 = vadd.f32 %v4073_v54, %v4020_v25 }
 0x332   :  { %v4075_v44 = vpop.permute.xlu1 %4074 }
 0x333   :  { %v4117_v51 = vadd.f32 %v4075_v44, %v4021_v20  ;;  %2792 = vmatmul.mubr.bf16.vlgmr.msra.gmra.mrb[84].mxu0 %v5375_v23  ;;  %6205 = vmatpush3.bf16.msra.mxu1 %v8696_v10  ;;  %v4469_v10 = vadd.f32 %v9322_v17, %v9002_v57 }
 0x334   :  { %6157 = vmatpush3.bf16.msra.mxu0 %v8822_v4  ;;  %6206 = vmatprep.subr.bf16.mxu1 %v8703_v24  ;;  %v4265_v40 = vpop.permute.xlu0 %4264  ;;  %v4212_v24 = vadd.f32 %v9287_v42, %v4116_v62 }
 0x335   :  { %6158 = vmatprep.subr.bf16.mxu0 %v8829_v45  ;;  %2832 = vmatprep.mubr.bf16.mxu0 %v5378_v37  ;;  %v4213_v31 = vadd.f32 %v4171_v60, %v4117_v51 }
 0x336   :  { %v4267_v52 = vpop.permute.xlu1 %4266  ;;  %v4135_v7 = vld [vmem:[#allocation2 + $0x39] sm:$0xf]  ;;  %v4134_v19 = vld [vmem:[#allocation2 + $0x31] sm:$0xff]  ;;  %v4308_v42 = vadd.f32 %v4265_v40, %v4212_v24  ;;  %v9421_v40 = vld [vmem:[%s10900_s3] ss:$0 sm:$0xff] }
 0x337   :  { %6207 = vmatpush3.bf16.msra.mxu1 %v8712_v3  ;;  %4174 = vrot.lane.b32.xlu1 %v4135_v7, %s6799_s21  ;;  %v4327_v54 = vld [vmem:[#allocation2 + $0x3a] sm:$0xf]  ;;  %v4309_v60 = vadd.f32 %v4267_v52, %v4213_v31  ;;  %v4326_v3 = vld [vmem:[#allocation2 + $0x32] sm:$0xff]  ;;  %v9451_v24 = vld [vmem:[%s10901_s4 + $0x8] sm:$0xf] }
 0x338   :  { %4172 = vrot.lane.b32.xlu0 %v4134_v19, %s6799_s21  ;;  %6159 = vmatpush3.bf16.msra.mxu0 %v8841_v53  ;;  %v4651_v20 = vpop.permute.xlu0 %4650  ;;  %v4404_v25 = vadd.f32 %v9313_v35, %v4308_v42  ;;  %v9429_v35 = vld [vmem:[%s10899_s1 + $0x148] sm:$0xff]  ;;  %v5377_v42 = vcombine.low %v9370_v36, %v9375_v49 }
 0x339   :  { %6208 = vmatprep.subr.bf16.mxu1 %v8719_v55  ;;  %6160 = vmatprep.subr.bf16.mxu0 %v8850_v46  ;;  %v4468_v55 = vadd.f32 %v9329_v39, %v8996_v5 }
 0x33a   :  { %v4491_v23 = vpop.permute.xlu1 %4490 }
 0x33b   :  { %v4533_v37 = vadd.f32 %v4491_v23, %v4469_v10  ;;  %6209 = vmatpush3.bf16.msra.mxu1 %v8728_v6  ;;  %4366 = vrot.lane.b32.xlu1 %v4327_v54, %s6800_s26  ;;  %v4405_v6 = vadd.f32 %v4363_v16, %v4309_v60 }
 0x33c   :  { %4364 = vrot.lane.b32.xlu0 %v4326_v3, %s6800_s26  ;;  %6161 = vmatpush3.bf16.msra.mxu0 %v8859_v29  ;;  %v4649_v39 = vpop.permute.xlu0 %4648 }
 0x33d   :  { %v4597_v57 = vadd.f32 %v9348_v1, %v4533_v37  ;;  %6210 = vmatprep.subr.bf16.mxu1 %v8745_v27  ;;  %6162 = vmatprep.subr.bf16.mxu0 %v8868_v50  ;;  %v9466_v37 = vld [vmem:[%s10901_s4] sm:$0xff] }
 0x33e   :  { %v4489_v17 = vpop.permute.xlu1 %4488 }
 0x33f   :  { %v4693_v44 = vadd.f32 %v4651_v20, %v4597_v57  ;;  %v4532_v51 = vadd.f32 %v4489_v17, %v4468_v55  ;;  %6211 = vmatpush3.bf16.msra.mxu1 %v8760_v26  ;;  %4430 = vrot.lane.b32.xlu1 %v4135_v7, %s6801_s7  ;;  %v9477_v57 = vld [vmem:[%s10898_s0 + $0x158] sm:$0xff] }
 0x340   :  { %4428 = vrot.lane.b32.xlu0 %v4134_v19, %s6801_s7  ;;  %6163 = vmatpush3.bf16.msra.mxu0 %v8878_v34  ;;  %v5392_v19 = vcombine.low %v9340_v13, %v9345_v21 }
 0x341   :  { %v4709_v5 = vmax.f32 %v4405_v6, %v4693_v44  ;;  %v4596_v1 = vadd.f32 %v9360_v28, %v4532_v51  ;;  %6212 = vmatprep.subr.bf16.mxu1 %v8767_v2  ;;  %6164 = vmatprep.subr.bf16.mxu0 %v8885_v9  ;;  %v2262_v27 = vpop.f32.mrb[56].mxu1  ;;  %v11136_v44 = vld [vmem:[#allocation8_spill] sm:$0xff] }
 0x342   :  { %v2264_v16 = vpop.f32.mrb[57].mxu1 }
 0x343   :  { %v4692_v62 = vadd.f32 %v4649_v39, %v4596_v1  ;;  %6213 = vmatpush3.bf16.msra.mxu1 %v8777_v38  ;;  %4558 = vrot.lane.b32.xlu1 %v4327_v54, %s6802_s12  ;;  %v2265_v26 = vpop.f32.mrb[58].mxu1  ;;  %v4732_v2 = vadd.f32 %v9421_v40, %v4709_v5  ;;  %v9434_v38 = vld [vmem:[%s10899_s1 + $0x168] sm:$0xff]  ;;  %v9551_v39 = vld [vmem:[%s10899_s1 + $0x178] sm:$0xff] }
 0x344   :  { %6165 = vmatpush3.bf16.msra.mxu0 %v8895_v59  ;;  %6214 = vmatprep.subr.bf16.mxu1 %v8786_v0  ;;  %v2267_v28 = vpop.f32.mrb[59].mxu1  ;;  %v5395_v0 = vcombine.high %v9429_v35, %v9434_v38 }
 0x345   :  { %v4708_v52 = vmax.f32 %v4404_v25, %v4692_v62  ;;  %6166 = vmatprep.subr.bf16.mxu0 %v8912_v63  ;;  %vm4748_vm7 = vcmp.gt.f32.partialorder %v4732_v2, 0.0  ;;  %v4764_v7 = vmul.f32 0.01, %v4732_v2  ;;  %v5394_v25 = vcombine.low %v9429_v35, %v9434_v38 }
 0x347   :  { %6215 = vmatpush3.bf16.msra.mxu1 %v8806_v43  ;;  %4556 = vrot.lane.b32.xlu1 %v4326_v3, %s6802_s12  ;;  %v9443_v31 = vsel %vm4748_vm7, %v4732_v2, %v4764_v7  ;;  %v4731_v10 = vadd.f32 %v9421_v40, %v4708_v52  ;;  %v11140_v2 = vld [vmem:[#allocation11_spill] sm:$0xff]  ;;  %v11141_v52 = vld [vmem:[#allocation12_spill] sm:$0xff]  ;;  %vm4951_vm7 = vcmask 1042434  }
 0x348   :  { %11132 = vst [vmem:[#allocation32_spill] sm:$0xff] %v9443_v31  ;;  %6167 = vmatpush3.bf16.msra.mxu0 %v8926_v58  ;;  %6222 = vmatprep.subr.bf16.mxu1 %v8813_v8  ;;  %v9455_v43 = vmul.f32 %v9451_v24, %v9443_v31 }
 0x349   :  { %6168 = vmatprep.subr.bf16.mxu0 %v8939_v15  ;;  %vm4747_vm8 = vcmp.gt.f32.partialorder %v4731_v10, 0.0  ;;  %v4763_v13 = vmul.f32 0.01, %v4731_v10 }
 0x34a   :  { %11133 = vst [vmem:[#allocation33_spill] sm:$0xff] %v9455_v43  ;;  %v5996_v21 = vpop.f32.mrb[64].mxu0  ;;  %3010 = vmatmul.mubr.bf16.vlgmr.msra.gmra.mrb[80].mxu1 %v5392_v19 }
 0x34b   :  { %v5997_v23 = vpop.f32.mrb[65].mxu0  ;;  %6223 = vmatpush3.bf16.msra.mxu1 %v8822_v4  ;;  %3050 = vmatprep.mubr.bf16.mxu1 %v5395_v0  ;;  %v9459_v8 = vsel %vm4747_vm8, %v4731_v10, %v4763_v13  ;;  %v11142_v0 = vld [vmem:[#allocation13_spill] sm:$0xff]  ;;  %v11143_v10 = vld [vmem:[#allocation14_spill] sm:$0xff]  ;;  %v11144_v13 = vld [vmem:[#allocation15_spill] sm:$0xff]  ;;  %vm4954_vm8 = vcmask 1043459  }
 0x34c   :  { %11134 = vst [vmem:[#allocation34_spill] sm:$0xff] %v9459_v8  ;;  %v5998_v54 = vadd.f32 %v5997_v23, %v5996_v21  ;;  %v5999_v60 = vpop.f32.mrb[66].mxu0  ;;  %6169 = vmatpush3.bf16.msra.mxu0 %v8951_v32  ;;  %6224 = vmatprep.subr.bf16.mxu1 %v8829_v45  ;;  %v9470_v3 = vmul.f32 %v9466_v37, %v9459_v8  ;;  %v9482_v45 = vld [vmem:[%s10898_s0 + $0x178] sm:$0xff]  ;;  %v11145_v21 = vld [vmem:[#allocation16_spill] sm:$0xff]  ;;  %v11146_v23 = vld [vmem:[#allocation17_spill] sm:$0xff] }
 0x34d   :  { %v6000_v20 = vpop.f32.mrb[67].mxu0  ;;  %6170 = vmatprep.subr.bf16.mxu0 %v8958_v30  ;;  %v5382_v51 = vcombine.high %v9477_v57, %v9482_v45 }
 0x34e   :  { %11135 = vst [vmem:[#allocation35_spill] sm:$0xff] %v9470_v3  ;;  %v6001_v4 = vadd.f32 %v6000_v20, %v5999_v60  ;;  %v2222_v55 = vadd.f32 %v5998_v54, %v9262_v12  ;;  %v11137_v12 = vmov 0   ;;  %v10099_v3 = vld [vmem:[%s10897_s2 + $0x1b0] sm:$0xff]  }
 0x34f   :  { %6225 = vmatpush3.bf16.msra.mxu1 %v8841_v53  ;;  %v9499_v53 = vld [vmem:[%s10897_s2 + $0x180] sm:$0xff]   ;;  %11165 = vst [vmem:[#allocation16_spill] sm:$0xff] %v10099_v3 }
 0x350   :  { %v2263_v17 = vadd.f32 %v2262_v27, %v2222_v55  ;;  %v2225_v6 = vadd.f32 %v6001_v4, %v9271_v22  ;;  %6171 = vmatpush3.bf16.msra.mxu0 %v11136_v44  ;;  %6226 = vmatprep.subr.bf16.mxu1 %v8850_v46  ;;  %v9509_v46 = vld [vmem:[%s10897_s2 + $0x188] sm:$0xff]   ;;  %v11139_v27 = vld [vmem:[#allocation10_spill] sm:$0xff] }
 0x351   :  { %2882 = vmatprep.subr.bf16.mxu0 %v11137_v12  ;;  %v11138_v22 = vld [vmem:[#allocation9_spill] sm:$0xff]  ;;  %v11147_v55 = vld [vmem:[#allocation18_spill] sm:$0xff] }
 0x352   :  { %2270 = vst.msk [vmem:[#allocation3 + $0x30] sm:$0xff] %vm745_vm2, %v2263_v17  ;;  %v2266_v5 = vadd.f32 %v2265_v26, %v2225_v6  ;;  %v11148_v6 = vld [vmem:[#allocation19_spill] sm:$0xff] }
 0x353   :  { %2833 = vmatmul.mubr.bf16.vlgmr.msra.gmra.mrb[88].mxu0 %v5377_v42  ;;  %6227 = vmatpush3.bf16.msra.mxu1 %v8859_v29 }
 0x354   :  { %2271 = vst.msk [vmem:[#allocation3 + $0x38] sm:$0xff] %vm745_vm2, %v2266_v5  ;;  %2883 = vmatpush1.bf16.msra.mxu0 %v9499_v53  ;;  %6228 = vmatprep.subr.bf16.mxu1 %v8868_v50  ;;  %v9610_v5 = vld [vmem:[%s10899_s1 + $0x170] sm:$0xff] }
 0x355   :  { %2884 = vmatprep.subr.bf16.mxu0 %v11137_v12  ;;  %5383 = vmatprep.mubr.msk.bf16.mxu0 %vm571_vm0, %v5382_v51  ;;  %v9605_v51 = vld [vmem:[%s10899_s1 + $0x150] sm:$0xff] }
 0x357   :  { %6229 = vmatpush3.bf16.msra.mxu1 %v8878_v34  ;;  %v9524_v34 = vld [vmem:[%s10897_s2 + $0x190] sm:$0xff]  }
 0x358   :  { %2885 = vmatpush1.bf16.msra.mxu0 %v9509_v46  ;;  %6230 = vmatprep.subr.bf16.mxu1 %v8885_v9 }
 0x359   :  { %v9513_v29 = vld [vmem:[#allocation3 + $0x30] sm:$0xff]  ;;  %2886 = vmatprep.subr.bf16.mxu0 %v11137_v12 }
 0x35a   :  { %4076 = vrot.lane.b32.xlu0 %v9513_v29, %s6801_s7 }
 0x35b   :  { %6231 = vmatpush3.bf16.msra.mxu1 %v8895_v59  ;;  %v9519_v50 = vld [vmem:[#allocation3 + $0x38] sm:$0xf] }
 0x35c   :  { %2887 = vmatpush1.bf16.msra.mxu0 %v9524_v34  ;;  %4078 = vrot.lane.b32.xlu1 %v9519_v50, %s6801_s7  ;;  %v4230_v9 = vld [vmem:[#allocation3 + $0x31] sm:$0xff]  ;;  %v4231_v59 = vld [vmem:[#allocation3 + $0x39] sm:$0xf] }
 0x35d   :  { %6232 = vmatprep.subr.bf16.mxu1 %v8912_v63  ;;  %2888 = vmatprep.subr.bf16.mxu0 %v11137_v12  ;;  %v4615_v62 = vld [vmem:[#allocation3 + $0x3a] sm:$0xf] }
 0x35e   :  { %4268 = vrot.lane.b32.xlu0 %v4230_v9, %s6802_s12 }
 0x35f   :  { %6233 = vmatpush3.bf16.msra.mxu1 %v8926_v58 }
 0x360   :  { %2889 = vmatpush1.bf16.msra.mxu0 %v11138_v22  ;;  %4270 = vrot.lane.b32.xlu1 %v4231_v59, %s6802_s12 }
 0x361   :  { %6234 = vmatprep.subr.bf16.mxu1 %v8939_v15  ;;  %2890 = vmatprep.subr.bf16.mxu0 %v11137_v12  ;;  %v6062_v36 = vpop.f32.mrb[60].mxu1  ;;  %v9546_v15 = vld [vmem:[%s10899_s1 + $0x158] sm:$0xff] }
 0x362   :  { %4494 = vrot.lane.b32.xlu0 %v4231_v59, %s6799_s21  ;;  %v6063_v63 = vpop.f32.mrb[61].mxu1  ;;  %v5399_v26 = vcombine.high %v9546_v15, %v9551_v39  ;;  %v5381_v59 = vcombine.low %v9477_v57, %v9482_v45 }
 0x363   :  { %6235 = vmatpush3.bf16.msra.mxu1 %v8951_v32  ;;  %v9539_v49 = vadd.f32 %v6063_v63, %v6062_v36  ;;  %v6065_v1 = vpop.f32.mrb[62].mxu1  ;;  %v4614_v32 = vld [vmem:[#allocation3 + $0x32] sm:$0xff] }
 0x364   :  { %2891 = vmatpush1.bf16.msra.mxu0 %v11139_v27  ;;  %4492 = vrot.lane.b32.xlu1 %v4230_v9, %s6799_s21  ;;  %v6066_v58 = vpop.f32.mrb[63].mxu1 }
 0x365   :  { %6236 = vmatprep.subr.bf16.mxu1 %v8958_v30  ;;  %2892 = vmatprep.subr.bf16.mxu0 %v11137_v12  ;;  %v9555_v16 = vadd.f32 %v6066_v58, %v6065_v1  ;;  %v5397_v1 = vcombine.high %v9605_v51, %v9610_v5 }
 0x366   :  { %4652 = vrot.lane.b32.xlu0 %v4614_v32, %s6800_s26 }
 0x367   :  { %6237 = vmatpush3.bf16.msra.mxu1 %v11136_v44 }
 0x368   :  { %2893 = vmatpush1.bf16.msra.mxu0 %v11140_v2  ;;  %4654 = vrot.lane.b32.xlu1 %v4615_v62, %s6800_s26  ;;  %v9653_v62 = vld [vmem:[%s10898_s0 + $0x1b0] sm:$0xff] }
 0x369   :  { %3100 = vmatprep.subr.bf16.mxu1 %v11137_v12  ;;  %2894 = vmatprep.subr.bf16.mxu0 %v11137_v12 }
 0x36a   :  { %v6018_v30 = vpop.f32.mrb[68].mxu0  ;;  %3051 = vmatmul.mubr.bf16.vlgmr.msra.gmra.mrb[84].mxu1 %v5394_v25  ;;  %v9648_v25 = vld [vmem:[%s10898_s0 + $0x190] sm:$0xff] }
 0x36b   :  { %v6019_v28 = vpop.f32.mrb[69].mxu0  ;;  %3101 = vmatpush1.bf16.msra.mxu1 %v9499_v53  ;;  %5400 = vmatprep.mubr.msk.bf16.mxu1 %vm571_vm0, %v5399_v26 }
 0x36c   :  { %v6020_v35 = vadd.f32 %v6019_v28, %v6018_v30  ;;  %v6021_v38 = vpop.f32.mrb[70].mxu0  ;;  %2895 = vmatpush1.bf16.msra.mxu0 %v11141_v52  ;;  %3102 = vmatprep.subr.bf16.mxu1 %v11137_v12  ;;  %v5398_v28 = vcombine.low %v9546_v15, %v9551_v39  ;;  %v11154_v39 = vld [vmem:[#allocation29_spill] sm:$0xff] }
 0x36d   :  { %v6022_v7 = vpop.f32.mrb[71].mxu0  ;;  %2896 = vmatprep.subr.bf16.mxu0 %v11137_v12 }
 0x36e   :  { %v6023_v19 = vadd.f32 %v6022_v7, %v6021_v38 }
 0x36f   :  { %3103 = vmatpush1.bf16.msra.mxu1 %v9509_v46 }
 0x370   :  { %2897 = vmatpush1.bf16.msra.mxu0 %v11142_v0  ;;  %3104 = vmatprep.subr.bf16.mxu1 %v11137_v12 }
 0x371   :  { %2898 = vmatprep.subr.bf16.mxu0 %v11137_v12 }
 0x373   :  { %3105 = vmatpush1.bf16.msra.mxu1 %v9524_v34 }
 0x374   :  { %2899 = vmatpush1.bf16.msra.mxu0 %v11143_v10  ;;  %3106 = vmatprep.subr.bf16.mxu1 %v11137_v12 }
 0x375   :  { %2900 = vmatprep.subr.bf16.mxu0 %v11137_v12 }
 0x377   :  { %3107 = vmatpush1.bf16.msra.mxu1 %v11138_v22 }
 0x378   :  { %2901 = vmatpush1.bf16.msra.mxu0 %v11144_v13  ;;  %3108 = vmatprep.subr.bf16.mxu1 %v11137_v12 }
 0x379   :  { %2902 = vmatprep.subr.bf16.mxu0 %v11137_v12 }
 0x37b   :  { %3109 = vmatpush1.bf16.msra.mxu1 %v11139_v27 }
 0x37c   :  { %2903 = vmatpush1.bf16.msra.mxu0 %v11145_v21  ;;  %3110 = vmatprep.subr.bf16.mxu1 %v11137_v12 }
 0x37d   :  { %2904 = vmatprep.subr.bf16.mxu0 %v11137_v12 }
 0x37f   :  { %3111 = vmatpush1.bf16.msra.mxu1 %v11140_v2  ;;  %v11151_v2 = vld [vmem:[#allocation22_spill] sm:$0xff] }
 0x380   :  { %2905 = vmatpush1.bf16.msra.mxu0 %v11146_v23  ;;  %3112 = vmatprep.subr.bf16.mxu1 %v11137_v12 }
 0x381   :  { %2906 = vmatprep.subr.bf16.mxu0 %v11137_v12  ;;  %v6084_v54 = vpop.f32.mrb[64].mxu1 }
 0x382   :  { %v6085_v60 = vpop.f32.mrb[65].mxu1 }
 0x383   :  { %3113 = vmatpush1.bf16.msra.mxu1 %v11141_v52  ;;  %v9593_v20 = vadd.f32 %v6085_v60, %v6084_v54  ;;  %v6087_v4 = vpop.f32.mrb[66].mxu1  ;;  %v5414_v52 = vcombine.high %v9648_v25, %v9653_v62  ;;  %v11156_v54 = vld [vmem:[#allocation31_spill] sm:$0xff] }
 0x384   :  { %2907 = vmatpush1.bf16.msra.mxu0 %v11147_v55  ;;  %3114 = vmatprep.subr.bf16.mxu1 %v11137_v12  ;;  %v6088_v42 = vpop.f32.mrb[67].mxu1 }
 0x385   :  { %2908 = vmatprep.subr.bf16.mxu0 %v11137_v12  ;;  %v6089_v17 = vadd.f32 %v6088_v42, %v6087_v4 }
 0x387   :  { %3115 = vmatpush1.bf16.msra.mxu1 %v11142_v0 }
 0x388   :  { %2909 = vmatpush1.bf16.msra.mxu0 %v11148_v6  ;;  %3116 = vmatprep.subr.bf16.mxu1 %v11137_v12 }
 0x389   :  { %2910 = vmatprep.subr.bf16.mxu0 %v11137_v12 }
 0x38a   :  { %v6040_v44 = vpop.f32.mrb[72].mxu0 }
 0x38b   :  { %v6041_v9 = vpop.f32.mrb[73].mxu0  ;;  %3117 = vmatpush1.bf16.msra.mxu1 %v11143_v10 }
 0x38c   :  { %v6042_v22 = vadd.f32 %v6041_v9, %v6040_v44  ;;  %v6043_v36 = vpop.f32.mrb[74].mxu0  ;;  %2911 = vmatpush1.bf16.msra.mxu0 %v7133_v56  ;;  %3118 = vmatprep.subr.bf16.mxu1 %v11137_v12  ;;  %v9776_v9 = vld [vmem:[%s10899_s1 + $0x1a0] sm:$0xff] }
 0x38d   :  { %v6044_v63 = vpop.f32.mrb[75].mxu0  ;;  %6244 = vmatprep.subr.bf16.mxu0 %v9157_v47 }
 0x38e   :  { %v2399_v27 = vadd.f32 %v6042_v22, %v6020_v35  ;;  %v6045_v58 = vadd.f32 %v6044_v63, %v6043_v36  ;;  %v5413_v36 = vcombine.low %v9648_v25, %v9653_v62 }
 0x38f   :  { %2915 = vmatmul.mubr.bf16.vlgmr.msra.gmra.mrb[92].mxu0 %v5381_v59  ;;  %3119 = vmatpush1.bf16.msra.mxu1 %v11144_v13  ;;  %v11153_v13 = vld [vmem:[#allocation28_spill] sm:$0xff]  ;;  %v9781_v59 = vld [vmem:[%s10897_s2 + $0x68] sm:$0xff]  }
 0x390   :  { %v2402_v32 = vadd.f32 %v6045_v58, %v6023_v19  ;;  %6245 = vmatpush3.bf16.msra.mxu0 %v9167_v61  ;;  %3120 = vmatprep.subr.bf16.mxu1 %v11137_v12  ;;  %v9624_v57 = vadd.f32 %v9539_v49, %v2399_v27  ;;  %v11149_v49 = vld [vmem:[#allocation20_spill] sm:$0xff]  ;;  %v11152_v19 = vld [vmem:[#allocation27_spill] sm:$0xff]  ;;  %v9796_v27 = vld [vmem:[%s10897_s2 + $0x28] sm:$0xff]  }
 0x391   :  { %6246 = vmatprep.subr.bf16.mxu0 %v9177_v41  ;;  %3091 = vmatprep.mubr.bf16.mxu0 %v5397_v1  ;;  %v9803_v58 = vld [vmem:[%s10897_s2 + $0x70] sm:$0xff]  }
 0x392   :  { %v9628_v45 = vadd.f32 %v9555_v16, %v2402_v32  ;;  %v11150_v16 = vld [vmem:[#allocation21_spill] sm:$0xff] }
 0x393   :  { %3121 = vmatpush1.bf16.msra.mxu1 %v11145_v21  ;;  %v11155_v21 = vld [vmem:[#allocation30_spill] sm:$0xff] }
 0x394   :  { %6247 = vmatpush3.bf16.msra.mxu0 %v9187_v48  ;;  %3122 = vmatprep.subr.bf16.mxu1 %v11137_v12 }
 0x395   :  { %6248 = vmatprep.subr.bf16.mxu0 %v9194_v33 }
 0x397   :  { %3123 = vmatpush1.bf16.msra.mxu1 %v11146_v23  ;;  %v9681_v23 = vld [vmem:[%s10898_s0 + $0x1a0] sm:$0xff] }
 0x398   :  { %6249 = vmatpush3.bf16.msra.mxu0 %v9201_v11  ;;  %3124 = vmatprep.subr.bf16.mxu1 %v11137_v12 }
 0x399   :  { %6250 = vmatprep.subr.bf16.mxu0 %v9208_v18 }
 0x39b   :  { %3125 = vmatpush1.bf16.msra.mxu1 %v11147_v55  ;;  %v9739_v55 = vld [vmem:[%s10897_s2 + $0x58] sm:$0xff]  }
 0x39c   :  { %6251 = vmatpush3.bf16.msra.mxu0 %v9215_v14  ;;  %3126 = vmatprep.subr.bf16.mxu1 %v11137_v12 }
 0x39d   :  { %6252 = vmatprep.subr.bf16.mxu0 %v11149_v49 }
 0x39f   :  { %3127 = vmatpush1.bf16.msra.mxu1 %v11148_v6  ;;  %v9755_v6 = vld [vmem:[%s10897_s2 + $0x60] sm:$0xff]  }
 0x3a0   :  { %6253 = vmatpush3.bf16.msra.mxu0 %v11150_v16  ;;  %3128 = vmatprep.subr.bf16.mxu1 %v11137_v12 }
 0x3a1   :  { %v6106_v26 = vpop.f32.mrb[68].mxu1  ;;  %6254 = vmatprep.subr.bf16.mxu0 %v11151_v2 }
 0x3a2   :  { %v6107_v30 = vpop.f32.mrb[69].mxu1 }
 0x3a3   :  { %v6108_v35 = vadd.f32 %v6107_v30, %v6106_v26  ;;  %v6109_v38 = vpop.f32.mrb[70].mxu1  ;;  %3129 = vmatpush1.bf16.msra.mxu1 %v7133_v56  ;;  %v9811_v26 = vld [vmem:[%s10897_s2 + $0x30] sm:$0xff]   ;;  %v9820_v30 = vld [vmem:[%s10897_s2 + $0x78] sm:$0xff]  }
 0x3a4   :  { %v6110_v7 = vpop.f32.mrb[71].mxu1  ;;  %6255 = vmatpush3.bf16.msra.mxu0 %v11152_v19  ;;  %6310 = vmatprep.subr.bf16.mxu1 %v9157_v47  ;;  %v9676_v47 = vld [vmem:[%s10898_s0 + $0x180] sm:$0xff] }
 0x3a5   :  { %v9664_v0 = vadd.f32 %v6108_v35, %v9593_v20  ;;  %v6111_v10 = vadd.f32 %v6110_v7, %v6109_v38  ;;  %6256 = vmatprep.subr.bf16.mxu0 %v11153_v13  ;;  %v5410_v60 = vcombine.high %v9676_v47, %v9681_v23  ;;  %v9826_v35 = vld [vmem:[%s10898_s0 + $0x188] sm:$0xff] }
 0x3a6   :  { %3133 = vmatmul.mubr.bf16.vlgmr.msra.gmra.mrb[88].mxu1 %v5398_v28  ;;  %v9831_v38 = vld [vmem:[%s10898_s0 + $0x1a8] sm:$0xff] }
 0x3a7   :  { %v9667_v15 = vadd.f32 %v6111_v10, %v6089_v17  ;;  %6311 = vmatpush3.bf16.msra.mxu1 %v9167_v61  ;;  %3309 = vmatprep.mubr.bf16.mxu1 %v5414_v52  ;;  %v5396_v61 = vcombine.low %v9605_v51, %v9610_v5  ;;  %v9748_v17 = vld [vmem:[%s10897_s2 + $0x18] sm:$0xff]   ;;  %v9764_v51 = vld [vmem:[%s10897_s2 + $0x20] sm:$0xff]  }
 0x3a8   :  { %6257 = vmatpush3.bf16.msra.mxu0 %v11154_v39  ;;  %6312 = vmatprep.subr.bf16.mxu1 %v9177_v41  ;;  %v9691_v41 = vld [vmem:[%s10897_s2 + $0x40] sm:$0xff]   ;;  %v9840_v52 = vld [vmem:[%s10897_s2 + $0x38] sm:$0xff]  }
 0x3a9   :  { %6258 = vmatprep.subr.bf16.mxu0 %v11155_v21  ;;  %v9710_v20 = vpop.permute.xlu1 %4174  ;;  %v9771_v5 = vld [vmem:[%s10899_s1 + $0x180] sm:$0xff] }
 0x3aa   :  { %v9743_v42 = vpop.permute.xlu0 %4172  ;;  %v5427_v63 = vcombine.high %v9771_v5, %v9776_v9  ;;  %v9847_v10 = vld [vmem:[%s10897_s2 + $0xc0] sm:$0xff]  }
 0x3ab   :  { %6313 = vmatpush3.bf16.msra.mxu1 %v9187_v48  ;;  %v9700_v48 = vld [vmem:[%s10897_s2] sm:$0xff]  }
 0x3ac   :  { %6259 = vmatpush3.bf16.msra.mxu0 %v11156_v54  ;;  %6314 = vmatprep.subr.bf16.mxu1 %v9194_v33  ;;  %v9707_v33 = vld [vmem:[%s10897_s2 + $0x48] sm:$0xff]  }
 0x3ad   :  { %6266 = vmatprep.subr.bf16.mxu0 %v9691_v41  ;;  %v9727_v4 = vpop.permute.xlu1 %4366 }
 0x3ae   :  { %v9784_v22 = vpop.permute.xlu0 %4364 }
 0x3af   :  { %3092 = vmatmul.mubr.bf16.vlgmr.msra.gmra.mrb[96].mxu0 %v5396_v61  ;;  %6315 = vmatpush3.bf16.msra.mxu1 %v9201_v11  ;;  %v9716_v11 = vld [vmem:[%s10897_s2 + $0x8] sm:$0xff]   ;;  %v9856_v61 = vld [vmem:[%s10897_s2 + $0x80] sm:$0xff]  }
 0x3b0   :  { %6267 = vmatpush3.bf16.msra.mxu0 %v9700_v48  ;;  %6316 = vmatprep.subr.bf16.mxu1 %v9208_v18  ;;  %v9723_v18 = vld [vmem:[%s10897_s2 + $0x50] sm:$0xff]  }
 0x3b1   :  { %6268 = vmatprep.subr.bf16.mxu0 %v9707_v33  ;;  %3227 = vmatprep.mubr.bf16.mxu0 %v5410_v60  ;;  %v9758_v44 = vpop.permute.xlu1 %4430 }
 0x3b2   :  { %v4429_v25 = vpop.permute.xlu0 %4428 }
 0x3b3   :  { %6317 = vmatpush3.bf16.msra.mxu1 %v9215_v14  ;;  %v9732_v14 = vld [vmem:[%s10897_s2 + $0x10] sm:$0xff]  }
 0x3b4   :  { %6269 = vmatpush3.bf16.msra.mxu0 %v9716_v11  ;;  %6318 = vmatprep.subr.bf16.mxu1 %v11149_v49 }
 0x3b5   :  { %6270 = vmatprep.subr.bf16.mxu0 %v9723_v18  ;;  %v9791_v1 = vpop.permute.xlu1 %4558 }
 0x3b7   :  { %6319 = vmatpush3.bf16.msra.mxu1 %v11150_v16 }
 0x3b8   :  { %6271 = vmatpush3.bf16.msra.mxu0 %v9732_v14  ;;  %6320 = vmatprep.subr.bf16.mxu1 %v11151_v2 }
 0x3b9   :  { %6272 = vmatprep.subr.bf16.mxu0 %v9739_v55  ;;  %v4557_v28 = vpop.permute.xlu1 %4556 }
 0x3bb   :  { %6321 = vmatpush3.bf16.msra.mxu1 %v11152_v19  ;;  %v4022_v19 = vld [vmem:[#allocation2 + $0x30] sm:$0xff] }
 0x3bc   :  { %6273 = vmatpush3.bf16.msra.mxu0 %v9748_v17  ;;  %6322 = vmatprep.subr.bf16.mxu1 %v11153_v13  ;;  %v5412_v13 = vcombine.high %v9826_v35, %v9831_v38 }
 0x3bd   :  { %6274 = vmatprep.subr.bf16.mxu0 %v9755_v6 }
 0x3bf   :  { %6323 = vmatpush3.bf16.msra.mxu1 %v11154_v39 }
 0x3c0   :  { %6275 = vmatpush3.bf16.msra.mxu0 %v9764_v51  ;;  %6324 = vmatprep.subr.bf16.mxu1 %v11155_v21  ;;  %v4023_v21 = vld [vmem:[#allocation2 + $0x38] sm:$0xf] }
 0x3c1   :  { %6276 = vmatprep.subr.bf16.mxu0 %v9781_v59 }
 0x3c3   :  { %6325 = vmatpush3.bf16.msra.mxu1 %v11156_v54 }
 0x3c4   :  { %6277 = vmatpush3.bf16.msra.mxu0 %v9796_v27  ;;  %6332 = vmatprep.subr.bf16.mxu1 %v9691_v41 }
 0x3c5   :  { %6278 = vmatprep.subr.bf16.mxu0 %v9803_v58 }
 0x3c6   :  { %v2480_v32 = vpop.f32.mrb[76].mxu0  ;;  %3310 = vmatmul.mubr.bf16.vlgmr.msra.gmra.mrb[92].mxu1 %v5413_v36  ;;  %v9864_v36 = vld [vmem:[%s10897_s2 + $0xc8] sm:$0xff]  }
 0x3c7   :  { %v2481_v49 = vadd.f32 %v2480_v32, %v9624_v57  ;;  %v2482_v16 = vpop.f32.mrb[77].mxu0  ;;  %6333 = vmatpush3.bf16.msra.mxu1 %v9700_v48  ;;  %3445 = vmatprep.mubr.bf16.mxu1 %v5427_v63 }
 0x3c8   :  { %v2483_v62 = vpop.f32.mrb[78].mxu0  ;;  %6279 = vmatpush3.bf16.msra.mxu0 %v9811_v26  ;;  %6334 = vmatprep.subr.bf16.mxu1 %v9707_v33 }
 0x3c9   :  { %2488 = vst.msk [vmem:[#allocation2 + $0x40] sm:$0xff] %vm745_vm2, %v2481_v49  ;;  %v2484_v2 = vadd.f32 %v2483_v62, %v9628_v45  ;;  %v2485_v57 = vpop.f32.mrb[79].mxu0  ;;  %6280 = vmatprep.subr.bf16.mxu0 %v9820_v30  ;;  %v5409_v45 = vcombine.low %v9676_v47, %v9681_v23  ;;  %v4471_v62 = vadd.f32 %v9758_v44, %v9519_v50  ;;  %v9884_v50 = vld [vmem:[%s10897_s2 + $0xd0] sm:$0xff]  }
 0x3ca   :  { %v4470_v57 = vadd.f32 %v4429_v25, %v9513_v29  ;;  %v9893_v29 = vld [vmem:[%s10897_s2 + $0x90] sm:$0xff]  }
 0x3cb   :  { %2489 = vst.msk [vmem:[#allocation2 + $0x48] sm:$0xff] %vm745_vm2, %v2484_v2  ;;  %6335 = vmatpush3.bf16.msra.mxu1 %v9716_v11 }
 0x3cc   :  { %6281 = vmatpush3.bf16.msra.mxu0 %v9840_v52  ;;  %v4077_v7 = vpop.permute.xlu0 %4076  ;;  %6336 = vmatprep.subr.bf16.mxu1 %v9723_v18 }
 0x3cd   :  { %6288 = vmatprep.subr.bf16.mxu0 %v9847_v10  ;;  %v4118_v39 = vadd.f32 %v4077_v7, %v4022_v19 }
 0x3ce   :  { %v4079_v47 = vpop.permute.xlu1 %4078 }
 0x3cf   :  { %v4119_v23 = vadd.f32 %v4079_v47, %v4023_v21  ;;  %3228 = vmatmul.mubr.bf16.vlgmr.msra.gmra.mrb[100].mxu0 %v5409_v45  ;;  %6337 = vmatpush3.bf16.msra.mxu1 %v9732_v14  ;;  %v4214_v63 = vadd.f32 %v9743_v42, %v4118_v39  ;;  %v9901_v47 = vld [vmem:[%s10897_s2 + $0xd8] sm:$0xff]  }
 0x3d0   :  { %6289 = vmatpush3.bf16.msra.mxu0 %v9856_v61  ;;  %v4269_v54 = vpop.permute.xlu0 %4268  ;;  %6338 = vmatprep.subr.bf16.mxu1 %v9739_v55 }
 0x3d1   :  { %v4215_v60 = vadd.f32 %v9710_v20, %v4119_v23  ;;  %6290 = vmatprep.subr.bf16.mxu0 %v9864_v36  ;;  %3268 = vmatprep.mubr.bf16.mxu0 %v5412_v13  ;;  %v9876_v20 = vld [vmem:[%s10897_s2 + $0x88] sm:$0xff]   ;;  %v4310_v44 = vadd.f32 %v4269_v54, %v4214_v63 }
 0x3d2   :  { %v4271_v32 = vpop.permute.xlu1 %4270  ;;  %v4137_v49 = vld [vmem:[#allocation2 + $0x49] sm:$0xf]  ;;  %v4136_v16 = vld [vmem:[#allocation2 + $0x41] sm:$0xff] }
 0x3d3   :  { %v4311_v2 = vadd.f32 %v4271_v32, %v4215_v60  ;;  %6339 = vmatpush3.bf16.msra.mxu1 %v9748_v17  ;;  %4178 = vrot.lane.b32.xlu1 %v4137_v49, %s6799_s21  ;;  %v4329_v19 = vld [vmem:[#allocation2 + $0x4a] sm:$0xf]  ;;  %v4328_v39 = vld [vmem:[#allocation2 + $0x42] sm:$0xff]  ;;  %v4406_v23 = vadd.f32 %v9784_v22, %v4310_v44 }
 0x3d4   :  { %4176 = vrot.lane.b32.xlu0 %v4136_v16, %s6799_s21  ;;  %6291 = vmatpush3.bf16.msra.mxu0 %v9876_v20  ;;  %v4495_v42 = vpop.permute.xlu0 %4494 }
 0x3d5   :  { %v4535_v45 = vadd.f32 %v4495_v42, %v4471_v62  ;;  %6340 = vmatprep.subr.bf16.mxu1 %v9755_v6  ;;  %6292 = vmatprep.subr.bf16.mxu0 %v9884_v50  ;;  %v4407_v63 = vadd.f32 %v9727_v4, %v4311_v2  ;;  %v9919_v4 = vld [vmem:[%s10897_s2 + $0xe0] sm:$0xff]  }
 0x3d6   :  { %v4493_v7 = vpop.permute.xlu1 %4492 }
 0x3d7   :  { %v4534_v13 = vadd.f32 %v4493_v7, %v4470_v57  ;;  %6341 = vmatpush3.bf16.msra.mxu1 %v9764_v51  ;;  %4370 = vrot.lane.b32.xlu1 %v4329_v19, %s6800_s26  ;;  %v4599_v21 = vadd.f32 %v9791_v1, %v4535_v45  ;;  %v9912_v1 = vld [vmem:[%s10897_s2 + $0x98] sm:$0xff]   ;;  %v9930_v45 = vld [vmem:[%s10897_s2 + $0xa0] sm:$0xff]   ;;  %v9936_v7 = vld [vmem:[%s10899_s1 + $0x188] sm:$0xff] }
 0x3d8   :  { %4368 = vrot.lane.b32.xlu0 %v4328_v39, %s6800_s26  ;;  %6293 = vmatpush3.bf16.msra.mxu0 %v9893_v29  ;;  %v4653_v54 = vpop.permute.xlu0 %4652 }
 0x3d9   :  { %v4598_v25 = vadd.f32 %v4557_v28, %v4534_v13  ;;  %6342 = vmatprep.subr.bf16.mxu1 %v9781_v59  ;;  %6294 = vmatprep.subr.bf16.mxu0 %v9901_v47 }
 0x3da   :  { %v4655_v60 = vpop.permute.xlu1 %4654 }
 0x3db   :  { %v4694_v32 = vadd.f32 %v4653_v54, %v4598_v25  ;;  %v4695_v62 = vadd.f32 %v4655_v60, %v4599_v21  ;;  %6343 = vmatpush3.bf16.msra.mxu1 %v9796_v27  ;;  %4434 = vrot.lane.b32.xlu1 %v4137_v49, %s6801_s7  ;;  %v9960_v54 = vld [vmem:[%s10897_s2 + $0xa8] sm:$0xff]  }
 0x3dc   :  { %4432 = vrot.lane.b32.xlu0 %v4136_v16, %s6801_s7  ;;  %6295 = vmatpush3.bf16.msra.mxu0 %v9912_v1 }
 0x3dd   :  { %v4710_v22 = vmax.f32 %v4406_v23, %v4694_v32  ;;  %v4711_v28 = vmax.f32 %v4407_v63, %v4695_v62  ;;  %6344 = vmatprep.subr.bf16.mxu1 %v9803_v58  ;;  %6296 = vmatprep.subr.bf16.mxu0 %v9919_v4  ;;  %v2698_v49 = vpop.f32.mrb[72].mxu1 }
 0x3de   :  { %v2700_v16 = vpop.f32.mrb[73].mxu1 }
 0x3df   :  { %v4733_v2 = vadd.f32 %v9421_v40, %v4710_v22  ;;  %v4734_v42 = vadd.f32 %v9421_v40, %v4711_v28  ;;  %6345 = vmatpush3.bf16.msra.mxu1 %v9811_v26  ;;  %4560 = vrot.lane.b32.xlu1 %v4328_v39, %s6802_s12  ;;  %v2701_v57 = vpop.f32.mrb[74].mxu1  ;;  %v9941_v40 = vld [vmem:[%s10899_s1 + $0x1a8] sm:$0xff]  ;;  %v5426_v39 = vcombine.low %v9771_v5, %v9776_v9  ;;  %v9973_v9 = vld [vmem:[%s10897_s2 + $0xf0] sm:$0xff]  }
 0x3e0   :  { %4562 = vrot.lane.b32.xlu0 %v4329_v19, %s6802_s12  ;;  %6297 = vmatpush3.bf16.msra.mxu0 %v9930_v45  ;;  %v2703_v44 = vpop.f32.mrb[75].mxu1  ;;  %v9947_v19 = vld [vmem:[%s10897_s2 + $0xe8] sm:$0xff]   ;;  %v5429_v21 = vcombine.high %v9936_v7, %v9941_v40  ;;  %v9984_v28 = vld [vmem:[%s10897_s2 + $0xb0] sm:$0xff]  }
 0x3e1   :  { %v4766_v13 = vmul.f32 0.01, %v4734_v42  ;;  %6346 = vmatprep.subr.bf16.mxu1 %v9820_v30  ;;  %6298 = vmatprep.subr.bf16.mxu0 %v9947_v19  ;;  %vm4750_vm9 = vcmp.gt.f32.partialorder %v4734_v42, 0.0  ;;  %vm4749_vm10 = vcmp.gt.f32.partialorder %v4733_v2, 0.0  ;;  %v4765_v25 = vmul.f32 0.01, %v4733_v2 }
 0x3e2   :  { %v9998_v44 = vld [vmem:[%s10898_s0 + $0x198] sm:$0xff] }
 0x3e3   :  { %6347 = vmatpush3.bf16.msra.mxu1 %v9840_v52  ;;  %v9955_v23 = vsel %vm4750_vm9, %v4734_v42, %v4766_v13  ;;  %v9964_v60 = vsel %vm4749_vm10, %v4733_v2, %v4765_v25  ;;  %v10003_v13 = vld [vmem:[%s10898_s0 + $0x1b8] sm:$0xff]  ;;  %vm4957_vm9 = vcmask 1044484   ;;  %vm4960_vm10 = vcmask 1045509  }
 0x3e4   :  { %11157 = vst [vmem:[#allocation8_spill] sm:$0xff] %v9955_v23  ;;  %6299 = vmatpush3.bf16.msra.mxu0 %v9960_v54  ;;  %6354 = vmatprep.subr.bf16.mxu1 %v9847_v10  ;;  %11158 = vst [vmem:[#allocation9_spill] sm:$0xff] %v9964_v60  ;;  %v9968_v5 = vmul.f32 %v9451_v24, %v9955_v23  ;;  %v9978_v63 = vmul.f32 %v9466_v37, %v9964_v60  ;;  %v9991_v37 = vld [vmem:[%s10897_s2 + $0xf8] sm:$0xff]   ;;  %v10175_v60 = vld [vmem:[%s10899_s1 + $0x190] sm:$0xff] }
 0x3e5   :  { %6300 = vmatprep.subr.bf16.mxu0 %v9973_v9  ;;  %v5415_v23 = vcombine.low %v9998_v44, %v10003_v13 }
 0x3e6   :  { %11159 = vst [vmem:[#allocation10_spill] sm:$0xff] %v9968_v5  ;;  %11160 = vst [vmem:[#allocation11_spill] sm:$0xff] %v9978_v63  ;;  %v6128_v32 = vpop.f32.mrb[80].mxu0  ;;  %3446 = vmatmul.mubr.bf16.vlgmr.msra.gmra.mrb[96].mxu1 %v5426_v39  ;;  %v5411_v39 = vcombine.low %v9826_v35, %v9831_v38  ;;  %v10156_v63 = vld [vmem:[%s10897_s2 + $0x1e0] sm:$0xff]  }
 0x3e7   :  { %v6129_v62 = vpop.f32.mrb[81].mxu0  ;;  %6355 = vmatpush3.bf16.msra.mxu1 %v9856_v61  ;;  %3486 = vmatprep.mubr.bf16.mxu1 %v5429_v21  ;;  %11171 = vst [vmem:[#allocation22_spill] sm:$0xff] %v10156_v63 }
 0x3e8   :  { %v6130_v22 = vadd.f32 %v6129_v62, %v6128_v32  ;;  %v6131_v24 = vpop.f32.mrb[82].mxu0  ;;  %6301 = vmatpush3.bf16.msra.mxu0 %v9984_v28  ;;  %6356 = vmatprep.subr.bf16.mxu1 %v9864_v36  ;;  %v5416_v32 = vcombine.high %v9998_v44, %v10003_v13  ;;  %v10047_v62 = vld [vmem:[%s10897_s2 + $0x198] sm:$0xff]  }
 0x3e9   :  { %v6132_v16 = vpop.f32.mrb[83].mxu0  ;;  %6302 = vmatprep.subr.bf16.mxu0 %v9991_v37  ;;  %11162 = vst [vmem:[#allocation13_spill] sm:$0xff] %v10047_v62 }
 0x3ea   :  { %v6133_v2 = vadd.f32 %v6132_v16, %v6131_v24  ;;  %v2658_v42 = vadd.f32 %v6130_v22, %v9664_v0  ;;  %v10012_v0 = vld [vmem:[%s10897_s2 + $0xb8] sm:$0xff]  }
 0x3eb   :  { %6357 = vmatpush3.bf16.msra.mxu1 %v9876_v20  ;;  %11161 = vst [vmem:[#allocation12_spill] sm:$0xff] %v10012_v0 }
 0x3ec   :  { %v2699_v25 = vadd.f32 %v2698_v49, %v2658_v42  ;;  %v2661_v21 = vadd.f32 %v6133_v2, %v9667_v15  ;;  %6303 = vmatpush3.bf16.msra.mxu0 %v10012_v0  ;;  %6358 = vmatprep.subr.bf16.mxu1 %v9884_v50  ;;  %v10060_v42 = vld [vmem:[%s10897_s2 + $0x1a0] sm:$0xff]  }
 0x3ed   :  { %3318 = vmatprep.subr.bf16.mxu0 %v11137_v12  ;;  %11163 = vst [vmem:[#allocation14_spill] sm:$0xff] %v10060_v42 }
 0x3ee   :  { %2706 = vst.msk [vmem:[#allocation3 + $0x40] sm:$0xff] %vm745_vm2, %v2699_v25  ;;  %v2702_v35 = vadd.f32 %v2701_v57, %v2661_v21  ;;  %v10067_v25 = vld [vmem:[%s10899_s1 + $0x198] sm:$0xff] }
 0x3ef   :  { %3269 = vmatmul.mubr.bf16.vlgmr.msra.gmra.mrb[104].mxu0 %v5411_v39  ;;  %6359 = vmatpush3.bf16.msra.mxu1 %v9893_v29  ;;  %v10072_v21 = vld [vmem:[%s10899_s1 + $0x1b8] sm:$0xff] }
 0x3f0   :  { %2707 = vst.msk [vmem:[#allocation3 + $0x48] sm:$0xff] %vm745_vm2, %v2702_v35  ;;  %3319 = vmatpush1.bf16.msra.mxu0 %v9499_v53  ;;  %6360 = vmatprep.subr.bf16.mxu1 %v9901_v47  ;;  %v5428_v35 = vcombine.low %v9936_v7, %v9941_v40 }
 0x3f1   :  { %3320 = vmatprep.subr.bf16.mxu0 %v11137_v12  ;;  %5417 = vmatprep.mubr.msk.bf16.mxu0 %vm571_vm0, %v5416_v32 }
 0x3f3   :  { %6361 = vmatpush3.bf16.msra.mxu1 %v9912_v1 }
 0x3f4   :  { %3321 = vmatpush1.bf16.msra.mxu0 %v9509_v46  ;;  %6362 = vmatprep.subr.bf16.mxu1 %v9919_v4 }
 0x3f5   :  { %v10029_v15 = vld [vmem:[#allocation3 + $0x40] sm:$0xff]  ;;  %3322 = vmatprep.subr.bf16.mxu0 %v11137_v12 }
 0x3f6   :  { %4080 = vrot.lane.b32.xlu0 %v10029_v15, %s6801_s7 }
 0x3f7   :  { %6363 = vmatpush3.bf16.msra.mxu1 %v9930_v45  ;;  %v10035_v38 = vld [vmem:[#allocation3 + $0x48] sm:$0xf] }
 0x3f8   :  { %3323 = vmatpush1.bf16.msra.mxu0 %v9524_v34  ;;  %4082 = vrot.lane.b32.xlu1 %v10035_v38, %s6801_s7  ;;  %v4232_v49 = vld [vmem:[#allocation3 + $0x41] sm:$0xff]  ;;  %v4233_v57 = vld [vmem:[#allocation3 + $0x49] sm:$0xf] }
 0x3f9   :  { %6364 = vmatprep.subr.bf16.mxu1 %v9947_v19  ;;  %3324 = vmatprep.subr.bf16.mxu0 %v11137_v12 }
 0x3fa   :  { %4272 = vrot.lane.b32.xlu0 %v4232_v49, %s6802_s12 }
 0x3fb   :  { %6365 = vmatpush3.bf16.msra.mxu1 %v9960_v54 }
 0x3fc   :  { %3325 = vmatpush1.bf16.msra.mxu0 %v10047_v62  ;;  %4274 = vrot.lane.b32.xlu1 %v4233_v57, %s6802_s12 }
 0x3fd   :  { %6366 = vmatprep.subr.bf16.mxu1 %v9973_v9  ;;  %3326 = vmatprep.subr.bf16.mxu0 %v11137_v12  ;;  %v6194_v22 = vpop.f32.mrb[76].mxu1 }
 0x3fe   :  { %4498 = vrot.lane.b32.xlu0 %v4233_v57, %s6799_s21  ;;  %v6195_v24 = vpop.f32.mrb[77].mxu1  ;;  %v5433_v57 = vcombine.high %v10067_v25, %v10072_v21 }
 0x3ff   :  { %6367 = vmatpush3.bf16.msra.mxu1 %v9984_v28  ;;  %v10055_v16 = vadd.f32 %v6195_v24, %v6194_v22  ;;  %v6197_v2 = vpop.f32.mrb[78].mxu1  ;;  %v10086_v22 = vld [vmem:[%s10897_s2 + $0x1a8] sm:$0xff]  }
 0x400   :  { %3327 = vmatpush1.bf16.msra.mxu0 %v10060_v42  ;;  %4496 = vrot.lane.b32.xlu1 %v4232_v49, %s6799_s21  ;;  %v6198_v39 = vpop.f32.mrb[79].mxu1  ;;  %v4617_v49 = vld [vmem:[#allocation3 + $0x4a] sm:$0xf]  ;;  %11164 = vst [vmem:[#allocation15_spill] sm:$0xff] %v10086_v22  ;;  %v4616_v24 = vld [vmem:[#allocation3 + $0x42] sm:$0xff] }
 0x401   :  { %6368 = vmatprep.subr.bf16.mxu1 %v9991_v37  ;;  %3328 = vmatprep.subr.bf16.mxu0 %v11137_v12  ;;  %v10076_v32 = vadd.f32 %v6198_v39, %v6197_v2 }
 0x403   :  { %6369 = vmatpush3.bf16.msra.mxu1 %v10012_v0 }
 0x404   :  { %3329 = vmatpush1.bf16.msra.mxu0 %v10086_v22  ;;  %4658 = vrot.lane.b32.xlu1 %v4617_v49, %s6800_s26 }
 0x405   :  { %3536 = vmatprep.subr.bf16.mxu1 %v11137_v12  ;;  %3330 = vmatprep.subr.bf16.mxu0 %v11137_v12 }
 0x406   :  { %v6150_v7 = vpop.f32.mrb[84].mxu0  ;;  %3487 = vmatmul.mubr.bf16.vlgmr.msra.gmra.mrb[100].mxu1 %v5428_v35  ;;  %v10109_v35 = vld [vmem:[%s10897_s2 + $0x1b8] sm:$0xff]  }
 0x407   :  { %v6151_v40 = vpop.f32.mrb[85].mxu0  ;;  %3537 = vmatpush1.bf16.msra.mxu1 %v9499_v53  ;;  %5434 = vmatprep.mubr.msk.bf16.mxu1 %vm571_vm0, %v5433_v57  ;;  %11166 = vst [vmem:[#allocation17_spill] sm:$0xff] %v10109_v35  ;;  %v10118_v57 = vld [vmem:[%s10897_s2 + $0x1c0] sm:$0xff]  }
 0x408   :  { %v10094_v2 = vadd.f32 %v6151_v40, %v6150_v7  ;;  %v6153_v39 = vpop.f32.mrb[86].mxu0  ;;  %3331 = vmatpush1.bf16.msra.mxu0 %v10099_v3  ;;  %4656 = vrot.lane.b32.xlu1 %v4616_v24, %s6800_s26  ;;  %11167 = vst [vmem:[#allocation18_spill] sm:$0xff] %v10118_v57  ;;  %v10145_v7 = vld [vmem:[%s10897_s2 + $0x1d8] sm:$0xff]  }
 0x409   :  { %v6154_v49 = vpop.f32.mrb[87].mxu0  ;;  %3538 = vmatprep.subr.bf16.mxu1 %v11137_v12  ;;  %3332 = vmatprep.subr.bf16.mxu0 %v11137_v12  ;;  %11170 = vst [vmem:[#allocation21_spill] sm:$0xff] %v10145_v7 }
 0x40a   :  { %v6155_v53 = vadd.f32 %v6154_v49, %v6153_v39 }
 0x40b   :  { %3539 = vmatpush1.bf16.msra.mxu1 %v9509_v46  ;;  %v10127_v46 = vld [vmem:[%s10897_s2 + $0x1c8] sm:$0xff]  }
 0x40c   :  { %3333 = vmatpush1.bf16.msra.mxu0 %v10109_v35  ;;  %3540 = vmatprep.subr.bf16.mxu1 %v11137_v12  ;;  %11168 = vst [vmem:[#allocation19_spill] sm:$0xff] %v10127_v46 }
 0x40d   :  { %3334 = vmatprep.subr.bf16.mxu0 %v11137_v12 }
 0x40f   :  { %3541 = vmatpush1.bf16.msra.mxu1 %v9524_v34  ;;  %v10136_v34 = vld [vmem:[%s10897_s2 + $0x1d0] sm:$0xff]  }
 0x410   :  { %3335 = vmatpush1.bf16.msra.mxu0 %v10118_v57  ;;  %3542 = vmatprep.subr.bf16.mxu1 %v11137_v12  ;;  %11169 = vst [vmem:[#allocation20_spill] sm:$0xff] %v10136_v34 }
 0x411   :  { %3336 = vmatprep.subr.bf16.mxu0 %v11137_v12 }
 0x413   :  { %3543 = vmatpush1.bf16.msra.mxu1 %v10047_v62 }
 0x414   :  { %3337 = vmatpush1.bf16.msra.mxu0 %v10127_v46  ;;  %3544 = vmatprep.subr.bf16.mxu1 %v11137_v12 }
 0x415   :  { %3338 = vmatprep.subr.bf16.mxu0 %v11137_v12 }
 0x417   :  { %3545 = vmatpush1.bf16.msra.mxu1 %v10060_v42 }
 0x418   :  { %3339 = vmatpush1.bf16.msra.mxu0 %v10136_v34  ;;  %3546 = vmatprep.subr.bf16.mxu1 %v11137_v12 }
 0x419   :  { %3340 = vmatprep.subr.bf16.mxu0 %v11137_v12 }
 0x41b   :  { %3547 = vmatpush1.bf16.msra.mxu1 %v10086_v22 }
 0x41c   :  { %3341 = vmatpush1.bf16.msra.mxu0 %v10145_v7  ;;  %3548 = vmatprep.subr.bf16.mxu1 %v11137_v12 }
 0x41d   :  { %3342 = vmatprep.subr.bf16.mxu0 %v11137_v12  ;;  %v6216_v40 = vpop.f32.mrb[80].mxu1 }
 0x41e   :  { %v6217_v24 = vpop.f32.mrb[81].mxu1 }
 0x41f   :  { %3549 = vmatpush1.bf16.msra.mxu1 %v10099_v3  ;;  %v10151_v39 = vadd.f32 %v6217_v24, %v6216_v40  ;;  %v6219_v49 = vpop.f32.mrb[82].mxu1  ;;  %v10167_v40 = vld [vmem:[%s10897_s2 + $0x1e8] sm:$0xff]   ;;  %v10190_v3 = vld [vmem:[%s10897_s2 + $0x140] sm:$0xff]  }
 0x420   :  { %3343 = vmatpush1.bf16.msra.mxu0 %v10156_v63  ;;  %3550 = vmatprep.subr.bf16.mxu1 %v11137_v12  ;;  %v6220_v5 = vpop.f32.mrb[83].mxu1  ;;  %11172 = vst [vmem:[#allocation27_spill] sm:$0xff] %v10167_v40 }
 0x421   :  { %3344 = vmatprep.subr.bf16.mxu0 %v11137_v12  ;;  %v10161_v43 = vadd.f32 %v6220_v5, %v6219_v49  ;;  %v10180_v5 = vld [vmem:[%s10899_s1 + $0x1b0] sm:$0xff] }
 0x423   :  { %3551 = vmatpush1.bf16.msra.mxu1 %v10109_v35 }
 0x424   :  { %3345 = vmatpush1.bf16.msra.mxu0 %v10167_v40  ;;  %3552 = vmatprep.subr.bf16.mxu1 %v11137_v12 }
 0x425   :  { %3346 = vmatprep.subr.bf16.mxu0 %v11137_v12 }
 0x426   :  { %v6172_v24 = vpop.f32.mrb[88].mxu0 }
 0x427   :  { %v6173_v49 = vpop.f32.mrb[89].mxu0  ;;  %3553 = vmatpush1.bf16.msra.mxu1 %v10118_v57  ;;  %v5431_v57 = vcombine.high %v10175_v60, %v10180_v5 }
 0x428   :  { %v6174_v8 = vadd.f32 %v6173_v49, %v6172_v24  ;;  %v6175_v31 = vpop.f32.mrb[90].mxu0  ;;  %3347 = vmatpush1.bf16.msra.mxu0 %v7133_v56  ;;  %3554 = vmatprep.subr.bf16.mxu1 %v11137_v12  ;;  %v10200_v24 = vld [vmem:[%s10897_s2 + $0x100] sm:$0xff]  }
 0x429   :  { %v6176_v35 = vpop.f32.mrb[91].mxu0  ;;  %6376 = vmatprep.subr.bf16.mxu0 %v10190_v3 }
 0x42a   :  { %v2835_v22 = vadd.f32 %v6174_v8, %v10094_v2  ;;  %v6177_v44 = vadd.f32 %v6176_v35, %v6175_v31  ;;  %v10210_v31 = vld [vmem:[%s10897_s2 + $0x148] sm:$0xff]   ;;  %v10248_v2 = vld [vmem:[%s10897_s2 + $0x118] sm:$0xff]   ;;  %v10262_v35 = vld [vmem:[%s10897_s2 + $0x120] sm:$0xff]  }
 0x42b   :  { %3351 = vmatmul.mubr.bf16.vlgmr.msra.gmra.mrb[108].mxu0 %v5415_v23  ;;  %3555 = vmatpush1.bf16.msra.mxu1 %v10127_v46  ;;  %v10220_v23 = vld [vmem:[%s10897_s2 + $0x108] sm:$0xff]   ;;  %11173 = vst [vmem:[#allocation28_spill] sm:$0xff] %v10248_v2  ;;  %11175 = vst [vmem:[#allocation30_spill] sm:$0xff] %v10262_v35 }
 0x42c   :  { %v2838_v13 = vadd.f32 %v6177_v44, %v6155_v53  ;;  %6377 = vmatpush3.bf16.msra.mxu0 %v10200_v24  ;;  %3556 = vmatprep.subr.bf16.mxu1 %v11137_v12  ;;  %v10205_v49 = vadd.f32 %v10055_v16, %v2835_v22  ;;  %v10227_v16 = vld [vmem:[%s10897_s2 + $0x150] sm:$0xff]   ;;  %v10241_v22 = vld [vmem:[%s10897_s2 + $0x158] sm:$0xff]   ;;  %v10255_v53 = vld [vmem:[%s10897_s2 + $0x160] sm:$0xff]  }
 0x42d   :  { %6378 = vmatprep.subr.bf16.mxu0 %v10210_v31  ;;  %3527 = vmatprep.mubr.bf16.mxu0 %v5431_v57  ;;  %11174 = vst [vmem:[#allocation29_spill] sm:$0xff] %v10255_v53  ;;  %v10269_v57 = vld [vmem:[%s10898_s0 + $0x1d0] sm:$0xff] }
 0x42e   :  { %v10214_v8 = vadd.f32 %v10076_v32, %v2838_v13  ;;  %v10234_v32 = vld [vmem:[%s10897_s2 + $0x110] sm:$0xff]  }
 0x42f   :  { %3557 = vmatpush1.bf16.msra.mxu1 %v10136_v34  ;;  %v10274_v44 = vld [vmem:[%s10898_s0 + $0x1f0] sm:$0xff] }
 0x430   :  { %6379 = vmatpush3.bf16.msra.mxu0 %v10220_v23  ;;  %3558 = vmatprep.subr.bf16.mxu1 %v11137_v12  ;;  %v5448_v42 = vcombine.high %v10269_v57, %v10274_v44 }
 0x431   :  { %6380 = vmatprep.subr.bf16.mxu0 %v10227_v16 }
 0x433   :  { %3559 = vmatpush1.bf16.msra.mxu1 %v10145_v7  ;;  %v5432_v7 = vcombine.low %v10067_v25, %v10072_v21  ;;  %v10300_v25 = vld [vmem:[%s10897_s2 + $0x170] sm:$0xff]  }
 0x434   :  { %6381 = vmatpush3.bf16.msra.mxu0 %v10234_v32  ;;  %3560 = vmatprep.subr.bf16.mxu1 %v11137_v12  ;;  %11178 = vst [vmem:[#allocation37_spill] sm:$0xff] %v10300_v25 }
 0x435   :  { %6382 = vmatprep.subr.bf16.mxu0 %v10241_v22 }
 0x437   :  { %3561 = vmatpush1.bf16.msra.mxu1 %v10156_v63 }
 0x438   :  { %6383 = vmatpush3.bf16.msra.mxu0 %v10248_v2  ;;  %3562 = vmatprep.subr.bf16.mxu1 %v11137_v12 }
 0x439   :  { %6384 = vmatprep.subr.bf16.mxu0 %v10255_v53 }
 0x43b   :  { %3563 = vmatpush1.bf16.msra.mxu1 %v10167_v40  ;;  %v10279_v40 = vld [vmem:[%s10897_s2 + $0x168] sm:$0xff]  }
 0x43c   :  { %6385 = vmatpush3.bf16.msra.mxu0 %v10262_v35  ;;  %3564 = vmatprep.subr.bf16.mxu1 %v11137_v12  ;;  %11176 = vst [vmem:[#allocation31_spill] sm:$0xff] %v10279_v40  ;;  %v10290_v12 = vld [vmem:[%s10897_s2 + $0x128] sm:$0xff]  }
 0x43d   :  { %v6238_v13 = vpop.f32.mrb[84].mxu1  ;;  %6386 = vmatprep.subr.bf16.mxu0 %v10279_v40  ;;  %11177 = vst [vmem:[#allocation36_spill] sm:$0xff] %v10290_v12 }
 0x43e   :  { %v6239_v63 = vpop.f32.mrb[85].mxu1 }
 0x43f   :  { %v6240_v34 = vadd.f32 %v6239_v63, %v6238_v13  ;;  %v6241_v46 = vpop.f32.mrb[86].mxu1  ;;  %3565 = vmatpush1.bf16.msra.mxu1 %v7133_v56 }
 0x440   :  { %v6242_v62 = vpop.f32.mrb[87].mxu1  ;;  %6387 = vmatpush3.bf16.msra.mxu0 %v10290_v12  ;;  %6442 = vmatprep.subr.bf16.mxu1 %v10190_v3 }
 0x441   :  { %v10295_v0 = vadd.f32 %v6240_v34, %v10151_v39  ;;  %v6243_v63 = vadd.f32 %v6242_v62, %v6241_v46  ;;  %6388 = vmatprep.subr.bf16.mxu0 %v10300_v25  ;;  %v10310_v34 = vld [vmem:[%s10897_s2 + $0x130] sm:$0xff]   ;;  %v10317_v62 = vld [vmem:[%s10897_s2 + $0x178] sm:$0xff]   ;;  %v5430_v46 = vcombine.low %v10175_v60, %v10180_v5 }
 0x442   :  { %3569 = vmatmul.mubr.bf16.vlgmr.msra.gmra.mrb[104].mxu1 %v5432_v7  ;;  %11179 = vst [vmem:[#allocation38_spill] sm:$0xff] %v10310_v34  ;;  %11180 = vst [vmem:[#allocation39_spill] sm:$0xff] %v10317_v62  ;;  %v10336_v7 = vld [vmem:[%s10897_s2 + $0x138] sm:$0xff]  }
 0x443   :  { %v10304_v21 = vadd.f32 %v6243_v63, %v10161_v43  ;;  %6443 = vmatpush3.bf16.msra.mxu1 %v10200_v24  ;;  %3745 = vmatprep.mubr.bf16.mxu1 %v5448_v42  ;;  %v10323_v43 = vld [vmem:[%s10898_s0 + $0x1c0] sm:$0xff]  ;;  %11181 = vst [vmem:[#allocation40_spill] sm:$0xff] %v10336_v7 }
 0x444   :  { %6389 = vmatpush3.bf16.msra.mxu0 %v10310_v34  ;;  %6444 = vmatprep.subr.bf16.mxu1 %v10210_v31  ;;  %v10328_v42 = vld [vmem:[%s10898_s0 + $0x1e0] sm:$0xff] }
 0x445   :  { %6390 = vmatprep.subr.bf16.mxu0 %v10317_v62  ;;  %v5444_v39 = vcombine.high %v10323_v43, %v10328_v42  ;;  %v4179_v5 = vpop.permute.xlu1 %4178 }
 0x446   :  { %v10351_v60 = vpop.permute.xlu0 %4176 }
 0x447   :  { %6445 = vmatpush3.bf16.msra.mxu1 %v10220_v23 }
 0x448   :  { %6391 = vmatpush3.bf16.msra.mxu0 %v10336_v7  ;;  %6446 = vmatprep.subr.bf16.mxu1 %v10227_v16 }
 0x449   :  { %6398 = vmatprep.subr.bf16.mxu0 %v9691_v41  ;;  %v10363_v63 = vpop.permute.xlu1 %4370 }
 0x44a   :  { %v10358_v13 = vpop.permute.xlu0 %4368 }
 0x44b   :  { %3528 = vmatmul.mubr.bf16.vlgmr.msra.gmra.mrb[112].mxu0 %v5430_v46  ;;  %6447 = vmatpush3.bf16.msra.mxu1 %v10234_v32  ;;  %v10371_v46 = vld [vmem:[%s10899_s1 + $0x1c0] sm:$0xff] }
 0x44c   :  { %6399 = vmatpush3.bf16.msra.mxu0 %v9700_v48  ;;  %6448 = vmatprep.subr.bf16.mxu1 %v10241_v22 }
 0x44d   :  { %6400 = vmatprep.subr.bf16.mxu0 %v9707_v33  ;;  %3663 = vmatprep.mubr.bf16.mxu0 %v5444_v39  ;;  %v10376_v39 = vld [vmem:[%s10899_s1 + $0x1e0] sm:$0xff] }
 0x44f   :  { %6449 = vmatpush3.bf16.msra.mxu1 %v10248_v2 }
 0x450   :  { %6401 = vmatpush3.bf16.msra.mxu0 %v9716_v11  ;;  %6450 = vmatprep.subr.bf16.mxu1 %v10255_v53 }
 0x451   :  { %6402 = vmatprep.subr.bf16.mxu0 %v9723_v18 }
 0x453   :  { %6451 = vmatpush3.bf16.msra.mxu1 %v10262_v35 }
 0x454   :  { %6403 = vmatpush3.bf16.msra.mxu0 %v9732_v14  ;;  %6452 = vmatprep.subr.bf16.mxu1 %v10279_v40 }
 0x455   :  { %6404 = vmatprep.subr.bf16.mxu0 %v9739_v55 }
 0x457   :  { %6453 = vmatpush3.bf16.msra.mxu1 %v10290_v12  ;;  %v4435_v12 = vpop.permute.xlu1 %4434 }
 0x458   :  { %6405 = vmatpush3.bf16.msra.mxu0 %v9748_v17  ;;  %6454 = vmatprep.subr.bf16.mxu1 %v10300_v25  ;;  %v4433_v25 = vpop.permute.xlu0 %4432 }
 0x459   :  { %6406 = vmatprep.subr.bf16.mxu0 %v9755_v6 }
 0x45b   :  { %6455 = vmatpush3.bf16.msra.mxu1 %v10310_v34  ;;  %v5447_v34 = vcombine.low %v10269_v57, %v10274_v44 }
 0x45c   :  { %6407 = vmatpush3.bf16.msra.mxu0 %v9764_v51  ;;  %6456 = vmatprep.subr.bf16.mxu1 %v10317_v62  ;;  %v5461_v62 = vcombine.high %v10371_v46, %v10376_v39  ;;  %v4563_v57 = vpop.permute.xlu0 %4562 }
 0x45d   :  { %6408 = vmatprep.subr.bf16.mxu0 %v9781_v59 }
 0x45f   :  { %6457 = vmatpush3.bf16.msra.mxu1 %v10336_v7 }
 0x460   :  { %6409 = vmatpush3.bf16.msra.mxu0 %v9796_v27  ;;  %6464 = vmatprep.subr.bf16.mxu1 %v9691_v41 }
 0x461   :  { %6410 = vmatprep.subr.bf16.mxu0 %v9803_v58 }
 0x462   :  { %v2916_v40 = vpop.f32.mrb[92].mxu0  ;;  %3746 = vmatmul.mubr.bf16.vlgmr.msra.gmra.mrb[108].mxu1 %v5447_v34  ;;  %v4561_v34 = vpop.permute.xlu1 %4560 }
 0x463   :  { %v2917_v35 = vadd.f32 %v2916_v40, %v10205_v49  ;;  %v2918_v53 = vpop.f32.mrb[93].mxu0  ;;  %6465 = vmatpush3.bf16.msra.mxu1 %v9700_v48  ;;  %3881 = vmatprep.mubr.bf16.mxu1 %v5461_v62  ;;  %v10397_v40 = vld [vmem:[%s10898_s0 + $0x1c8] sm:$0xff] }
 0x464   :  { %v2919_v44 = vpop.f32.mrb[94].mxu0  ;;  %6411 = vmatpush3.bf16.msra.mxu0 %v9811_v26  ;;  %6466 = vmatprep.subr.bf16.mxu1 %v9707_v33  ;;  %v10402_v48 = vld [vmem:[%s10898_s0 + $0x1e8] sm:$0xff]  ;;  %v5443_v33 = vcombine.low %v10323_v43, %v10328_v42 }
 0x465   :  { %2924 = vst.msk [vmem:[#allocation2 + $0x50] sm:$0xff] %vm745_vm2, %v2917_v35  ;;  %v2920_v41 = vadd.f32 %v2919_v44, %v10214_v8  ;;  %v2921_v7 = vpop.f32.mrb[95].mxu0  ;;  %6412 = vmatprep.subr.bf16.mxu0 %v9820_v30  ;;  %v5446_v8 = vcombine.high %v10397_v40, %v10402_v48  ;;  %v4025_v53 = vld [vmem:[#allocation2 + $0x48] sm:$0xf] }
 0x467   :  { %2925 = vst.msk [vmem:[#allocation2 + $0x58] sm:$0xff] %vm745_vm2, %v2920_v41  ;;  %6467 = vmatpush3.bf16.msra.mxu1 %v9716_v11  ;;  %v4473_v41 = vadd.f32 %v4435_v12, %v10035_v38  ;;  %v4472_v12 = vadd.f32 %v4433_v25, %v10029_v15 }
 0x468   :  { %6413 = vmatpush3.bf16.msra.mxu0 %v9840_v52  ;;  %v4081_v49 = vpop.permute.xlu0 %4080  ;;  %6468 = vmatprep.subr.bf16.mxu1 %v9723_v18  ;;  %v4024_v18 = vld [vmem:[#allocation2 + $0x40] sm:$0xff] }
 0x469   :  { %6420 = vmatprep.subr.bf16.mxu0 %v9847_v10  ;;  %v4120_v2 = vadd.f32 %v4081_v49, %v4024_v18 }
 0x46a   :  { %v4083_v35 = vpop.permute.xlu1 %4082 }
 0x46b   :  { %v4121_v62 = vadd.f32 %v4083_v35, %v4025_v53  ;;  %3664 = vmatmul.mubr.bf16.vlgmr.msra.gmra.mrb[116].mxu0 %v5443_v33  ;;  %6469 = vmatpush3.bf16.msra.mxu1 %v9732_v14  ;;  %v4216_v38 = vadd.f32 %v10351_v60, %v4120_v2 }
 0x46c   :  { %6421 = vmatpush3.bf16.msra.mxu0 %v9856_v61  ;;  %v4273_v11 = vpop.permute.xlu0 %4272  ;;  %6470 = vmatprep.subr.bf16.mxu1 %v9739_v55 }
 0x46d   :  { %v4217_v43 = vadd.f32 %v4179_v5, %v4121_v62  ;;  %6422 = vmatprep.subr.bf16.mxu0 %v9864_v36  ;;  %3704 = vmatprep.mubr.bf16.mxu0 %v5446_v8  ;;  %v4312_v8 = vadd.f32 %v4273_v11, %v4216_v38 }
 0x46e   :  { %v4275_v42 = vpop.permute.xlu1 %4274  ;;  %v4139_v7 = vld [vmem:[#allocation2 + $0x59] sm:$0xf]  ;;  %v4138_v44 = vld [vmem:[#allocation2 + $0x51] sm:$0xff] }
 0x46f   :  { %v4313_v53 = vadd.f32 %v4275_v42, %v4217_v43  ;;  %6471 = vmatpush3.bf16.msra.mxu1 %v9748_v17  ;;  %4182 = vrot.lane.b32.xlu1 %v4139_v7, %s6799_s21  ;;  %v4330_v49 = vld [vmem:[#allocation2 + $0x52] sm:$0xff]  ;;  %v4408_v35 = vadd.f32 %v10358_v13, %v4312_v8  ;;  %v10453_v13 = vld [vmem:[%s10899_s1 + $0x1c8] sm:$0xff]  ;;  %v5460_v42 = vcombine.low %v10371_v46, %v10376_v39  ;;  %v11182_v8 = vld [vmem:[#allocation12_spill] sm:$0xff] }
 0x470   :  { %4180 = vrot.lane.b32.xlu0 %v4138_v44, %s6799_s21  ;;  %6423 = vmatpush3.bf16.msra.mxu0 %v9876_v20  ;;  %v4499_v14 = vpop.permute.xlu0 %4498  ;;  %v10458_v43 = vld [vmem:[%s10899_s1 + $0x1e8] sm:$0xff] }
 0x471   :  { %v4409_v55 = vadd.f32 %v10363_v63, %v4313_v53  ;;  %v4537_v5 = vadd.f32 %v4499_v14, %v4473_v41  ;;  %6472 = vmatprep.subr.bf16.mxu1 %v9755_v6  ;;  %6424 = vmatprep.subr.bf16.mxu0 %v9884_v50 }
 0x472   :  { %v4497_v33 = vpop.permute.xlu1 %4496 }
 0x473   :  { %6473 = vmatpush3.bf16.msra.mxu1 %v9764_v51  ;;  %4438 = vrot.lane.b32.xlu1 %v4139_v7, %s6801_s7  ;;  %v4536_v17 = vadd.f32 %v4497_v33, %v4472_v12  ;;  %v4601_v63 = vadd.f32 %v4563_v57, %v4537_v5  ;;  %v4331_v51 = vld [vmem:[#allocation2 + $0x5a] sm:$0xf]  ;;  %v10490_v5 = vld [vmem:[%s10901_s4] sm:$0xff] }
 0x474   :  { %4436 = vrot.lane.b32.xlu0 %v4138_v44, %s6801_s7  ;;  %6425 = vmatpush3.bf16.msra.mxu0 %v9893_v29  ;;  %v5463_v44 = vcombine.high %v10453_v13, %v10458_v43 }
 0x475   :  { %6474 = vmatprep.subr.bf16.mxu1 %v9781_v59  ;;  %6426 = vmatprep.subr.bf16.mxu0 %v9901_v47  ;;  %v4600_v59 = vadd.f32 %v4561_v34, %v4536_v17  ;;  %v10501_v17 = vld [vmem:[%s10898_s0 + $0x1d8] sm:$0xff] }
 0x476   :  { %v4659_v6 = vpop.permute.xlu1 %4658 }
 0x477   :  { %v4697_v15 = vadd.f32 %v4659_v6, %v4601_v63  ;;  %6475 = vmatpush3.bf16.msra.mxu1 %v9796_v27  ;;  %4564 = vrot.lane.b32.xlu1 %v4330_v49, %s6802_s12  ;;  %v10443_v27 = vld [vmem:[%s10900_s3] ss:$0 sm:$0xff]  ;;  %v5445_v63 = vcombine.low %v10397_v40, %v10402_v48 }
 0x478   :  { %4566 = vrot.lane.b32.xlu0 %v4331_v51, %s6802_s12  ;;  %6427 = vmatpush3.bf16.msra.mxu0 %v9912_v1 }
 0x479   :  { %v4713_v2 = vmax.f32 %v4409_v55, %v4697_v15  ;;  %6476 = vmatprep.subr.bf16.mxu1 %v9803_v58  ;;  %6428 = vmatprep.subr.bf16.mxu0 %v9919_v4  ;;  %v3134_v25 = vpop.f32.mrb[88].mxu1 }
 0x47a   :  { %v4657_v60 = vpop.permute.xlu1 %4656  ;;  %v3136_v57 = vpop.f32.mrb[89].mxu1 }
 0x47b   :  { %v4736_v62 = vadd.f32 %v10443_v27, %v4713_v2  ;;  %v4696_v11 = vadd.f32 %v4657_v60, %v4600_v59  ;;  %6477 = vmatpush3.bf16.msra.mxu1 %v9811_v26  ;;  %4372 = vrot.lane.b32.xlu1 %v4330_v49, %s6800_s26  ;;  %v3137_v58 = vpop.f32.mrb[90].mxu1  ;;  %v11185_v59 = vld [vmem:[#allocation14_spill] sm:$0xff]  ;;  %v11186_v57 = vld [vmem:[#allocation15_spill] sm:$0xff] }
 0x47c   :  { %4374 = vrot.lane.b32.xlu0 %v4331_v51, %s6800_s26  ;;  %6429 = vmatpush3.bf16.msra.mxu0 %v9930_v45  ;;  %v3139_v34 = vpop.f32.mrb[91].mxu1 }
 0x47d   :  { %v4768_v18 = vmul.f32 0.01, %v4736_v62  ;;  %v4712_v26 = vmax.f32 %v4408_v35, %v4696_v11  ;;  %6478 = vmatprep.subr.bf16.mxu1 %v9820_v30  ;;  %6430 = vmatprep.subr.bf16.mxu0 %v9947_v19  ;;  %vm4752_vm11 = vcmp.gt.f32.partialorder %v4736_v62, 0.0  ;;  %v10475_v30 = vld [vmem:[%s10901_s4 + $0x8] sm:$0xf] }
 0x47f   :  { %v4735_v7 = vadd.f32 %v10443_v27, %v4712_v26  ;;  %6479 = vmatpush3.bf16.msra.mxu1 %v9840_v52  ;;  %v10468_v41 = vsel %vm4752_vm11, %v4736_v62, %v4768_v18  ;;  %vm4963_vm11 = vcmask 1046534  }
 0x480   :  { %6431 = vmatpush3.bf16.msra.mxu0 %v9960_v54  ;;  %6486 = vmatprep.subr.bf16.mxu1 %v9847_v10  ;;  %v10479_v46 = vmul.f32 %v10475_v30, %v10468_v41 }
 0x481   :  { %v4767_v39 = vmul.f32 0.01, %v4735_v7  ;;  %6432 = vmatprep.subr.bf16.mxu0 %v9973_v9  ;;  %vm4751_vm12 = vcmp.gt.f32.partialorder %v4735_v7, 0.0 }
 0x482   :  { %v6260_v52 = vpop.f32.mrb[96].mxu0  ;;  %3882 = vmatmul.mubr.bf16.vlgmr.msra.gmra.mrb[112].mxu1 %v5460_v42  ;;  %v11188_v42 = vld [vmem:[#allocation17_spill] sm:$0xff] }
 0x483   :  { %v6261_v53 = vpop.f32.mrb[97].mxu0  ;;  %6487 = vmatpush3.bf16.msra.mxu1 %v9856_v61  ;;  %3922 = vmatprep.mubr.bf16.mxu1 %v5463_v44  ;;  %v10483_v10 = vsel %vm4751_vm12, %v4735_v7, %v4767_v39  ;;  %v11189_v7 = vld [vmem:[#allocation18_spill] sm:$0xff]  ;;  %v11190_v44 = vld [vmem:[#allocation19_spill] sm:$0xff]  ;;  %v11191_v39 = vld [vmem:[#allocation20_spill] sm:$0xff]  ;;  %vm4966_vm12 = vcmask 1047559  }
 0x484   :  { %v6262_v14 = vadd.f32 %v6261_v53, %v6260_v52  ;;  %v6263_v55 = vpop.f32.mrb[98].mxu0  ;;  %6433 = vmatpush3.bf16.msra.mxu0 %v9984_v28  ;;  %6488 = vmatprep.subr.bf16.mxu1 %v9864_v36  ;;  %v10494_v33 = vmul.f32 %v10490_v5, %v10483_v10  ;;  %v10506_v36 = vld [vmem:[%s10898_s0 + $0x1f8] sm:$0xff]  ;;  %v11192_v52 = vld [vmem:[#allocation21_spill] sm:$0xff] }
 0x485   :  { %v6264_v12 = vpop.f32.mrb[99].mxu0  ;;  %6434 = vmatprep.subr.bf16.mxu0 %v9991_v37  ;;  %v5450_v15 = vcombine.high %v10501_v17, %v10506_v36 }
 0x486   :  { %v6265_v61 = vadd.f32 %v6264_v12, %v6263_v55  ;;  %v3094_v38 = vadd.f32 %v6262_v14, %v10295_v0  ;;  %v11183_v0 = vmov 0  }
 0x487   :  { %6489 = vmatpush3.bf16.msra.mxu1 %v9876_v20  ;;  %v6792_v20 = vld [vmem:[%s10897_s2 + $0x180] sm:$0xff]  }
 0x488   :  { %v3135_v6 = vadd.f32 %v3134_v25, %v3094_v38  ;;  %v3097_v49 = vadd.f32 %v6265_v61, %v10304_v21  ;;  %6435 = vmatpush3.bf16.msra.mxu0 %v11182_v8  ;;  %6490 = vmatprep.subr.bf16.mxu1 %v9884_v50  ;;  %v6793_v50 = vld [vmem:[%s10897_s2 + $0x188] sm:$0xff]   ;;  %v10566_v25 = vld [vmem:[%s10899_s1 + $0x1f8] sm:$0xff]  ;;  %v11193_v61 = vld [vmem:[#allocation22_spill] sm:$0xff] }
 0x489   :  { %3754 = vmatprep.subr.bf16.mxu0 %v11183_v0  ;;  %v11184_v21 = vld [vmem:[#allocation13_spill] sm:$0xff] }
 0x48a   :  { %3142 = vst.msk [vmem:[#allocation3 + $0x50] sm:$0xff] %vm745_vm2, %v3135_v6  ;;  %v3138_v51 = vadd.f32 %v3137_v58, %v3097_v49  ;;  %v11194_v6 = vld [vmem:[#allocation27_spill] sm:$0xff] }
 0x48b   :  { %3705 = vmatmul.mubr.bf16.vlgmr.msra.gmra.mrb[120].mxu0 %v5445_v63  ;;  %6491 = vmatpush3.bf16.msra.mxu1 %v9893_v29 }
 0x48c   :  { %3143 = vst.msk [vmem:[#allocation3 + $0x58] sm:$0xff] %vm745_vm2, %v3138_v51  ;;  %3755 = vmatpush1.bf16.msra.mxu0 %v6792_v20  ;;  %6492 = vmatprep.subr.bf16.mxu1 %v9901_v47 }
 0x48d   :  { %3756 = vmatprep.subr.bf16.mxu0 %v11183_v0  ;;  %5451 = vmatprep.mubr.msk.bf16.mxu0 %vm571_vm0, %v5450_v15  ;;  %v5458_v15 = vld [vmem:[%s10899_s1 + $0x1f0] sm:$0xff] }
 0x48f   :  { %6493 = vmatpush3.bf16.msra.mxu1 %v9912_v1  ;;  %v6794_v1 = vld [vmem:[%s10897_s2 + $0x190] sm:$0xff]  }
 0x490   :  { %3757 = vmatpush1.bf16.msra.mxu0 %v6793_v50  ;;  %6494 = vmatprep.subr.bf16.mxu1 %v9919_v4 }
 0x491   :  { %v10531_v29 = vld [vmem:[#allocation3 + $0x50] sm:$0xff]  ;;  %3758 = vmatprep.subr.bf16.mxu0 %v11183_v0 }
 0x492   :  { %4084 = vrot.lane.b32.xlu0 %v10531_v29, %s6801_s7 }
 0x493   :  { %6495 = vmatpush3.bf16.msra.mxu1 %v9930_v45  ;;  %v10537_v47 = vld [vmem:[#allocation3 + $0x58] sm:$0xf] }
 0x494   :  { %3759 = vmatpush1.bf16.msra.mxu0 %v6794_v1  ;;  %4086 = vrot.lane.b32.xlu1 %v10537_v47, %s6801_s7  ;;  %v4234_v4 = vld [vmem:[#allocation3 + $0x51] sm:$0xff]  ;;  %v4235_v45 = vld [vmem:[#allocation3 + $0x59] sm:$0xf] }
 0x495   :  { %6496 = vmatprep.subr.bf16.mxu1 %v9947_v19  ;;  %3760 = vmatprep.subr.bf16.mxu0 %v11183_v0  ;;  %v4619_v35 = vld [vmem:[#allocation3 + $0x5a] sm:$0xf]  ;;  %v4618_v18 = vld [vmem:[#allocation3 + $0x52] sm:$0xff] }
 0x496   :  { %4276 = vrot.lane.b32.xlu0 %v4234_v4, %s6802_s12 }
 0x497   :  { %6497 = vmatpush3.bf16.msra.mxu1 %v9960_v54 }
 0x498   :  { %3761 = vmatpush1.bf16.msra.mxu0 %v11184_v21  ;;  %4278 = vrot.lane.b32.xlu1 %v4235_v45, %s6802_s12 }
 0x499   :  { %6498 = vmatprep.subr.bf16.mxu1 %v9973_v9  ;;  %3762 = vmatprep.subr.bf16.mxu0 %v11183_v0  ;;  %v6326_v40 = vpop.f32.mrb[92].mxu1  ;;  %v10561_v9 = vld [vmem:[%s10899_s1 + $0x1d8] sm:$0xff] }
 0x49a   :  { %4502 = vrot.lane.b32.xlu0 %v4235_v45, %s6799_s21  ;;  %v6327_v19 = vpop.f32.mrb[93].mxu1  ;;  %v5467_v60 = vcombine.high %v10561_v9, %v10566_v25 }
 0x49b   :  { %6499 = vmatpush3.bf16.msra.mxu1 %v9984_v28  ;;  %v10554_v48 = vadd.f32 %v6327_v19, %v6326_v40  ;;  %v6329_v2 = vpop.f32.mrb[94].mxu1 }
 0x49c   :  { %3763 = vmatpush1.bf16.msra.mxu0 %v11185_v59  ;;  %6500 = vmatprep.subr.bf16.mxu1 %v9991_v37  ;;  %v6330_v54 = vpop.f32.mrb[95].mxu1  ;;  %v5462_v37 = vcombine.low %v10453_v13, %v10458_v43  ;;  %v11187_v13 = vld [vmem:[#allocation16_spill] sm:$0xff] }
 0x49d   :  { %3764 = vmatprep.subr.bf16.mxu0 %v11183_v0  ;;  %v10569_v28 = vadd.f32 %v6330_v54, %v6329_v2  ;;  %v11199_v54 = vld [vmem:[#allocation36_spill] sm:$0xff] }
 0x49e   :  { %4500 = vrot.lane.b32.xlu0 %v4234_v4, %s6799_s21 }
 0x49f   :  { %6501 = vmatpush3.bf16.msra.mxu1 %v11182_v8  ;;  %v5454_v8 = vld [vmem:[%s10899_s1 + $0x1d0] sm:$0xff] }
 0x4a0   :  { %3765 = vmatpush1.bf16.msra.mxu0 %v11186_v57  ;;  %3972 = vmatprep.subr.bf16.mxu1 %v11183_v0  ;;  %v5465_v45 = vcombine.high %v5454_v8, %v5458_v15 }
 0x4a1   :  { %3766 = vmatprep.subr.bf16.mxu0 %v11183_v0 }
 0x4a2   :  { %v6282_v62 = vpop.f32.mrb[100].mxu0  ;;  %3923 = vmatmul.mubr.bf16.vlgmr.msra.gmra.mrb[116].mxu1 %v5462_v37  ;;  %4662 = vrot.lane.b32.xlu0 %v4619_v35, %s6800_s26  ;;  %v11202_v35 = vld [vmem:[#allocation39_spill] sm:$0xff] }
 0x4a3   :  { %v6283_v11 = vpop.f32.mrb[101].mxu0  ;;  %3973 = vmatpush1.bf16.msra.mxu1 %v6792_v20  ;;  %5468 = vmatprep.mubr.msk.bf16.mxu1 %vm571_vm0, %v5467_v60  ;;  %v5449_v20 = vcombine.low %v10501_v17, %v10506_v36  ;;  %v11200_v60 = vld [vmem:[#allocation37_spill] sm:$0xff] }
 0x4a4   :  { %v6284_v58 = vadd.f32 %v6283_v11, %v6282_v62  ;;  %v6285_v34 = vpop.f32.mrb[102].mxu0  ;;  %3767 = vmatpush1.bf16.msra.mxu0 %v11187_v13  ;;  %3974 = vmatprep.subr.bf16.mxu1 %v11183_v0 }
 0x4a5   :  { %v6286_v43 = vpop.f32.mrb[103].mxu0  ;;  %3768 = vmatprep.subr.bf16.mxu0 %v11183_v0 }
 0x4a6   :  { %v6287_v26 = vadd.f32 %v6286_v43, %v6285_v34  ;;  %4660 = vrot.lane.b32.xlu0 %v4618_v18, %s6800_s26 }
 0x4a7   :  { %3975 = vmatpush1.bf16.msra.mxu1 %v6793_v50 }
 0x4a8   :  { %3769 = vmatpush1.bf16.msra.mxu0 %v11188_v42  ;;  %3976 = vmatprep.subr.bf16.mxu1 %v11183_v0 }
 0x4a9   :  { %3770 = vmatprep.subr.bf16.mxu0 %v11183_v0 }
 0x4ab   :  { %3977 = vmatpush1.bf16.msra.mxu1 %v6794_v1 }
 0x4ac   :  { %3771 = vmatpush1.bf16.msra.mxu0 %v11189_v7  ;;  %3978 = vmatprep.subr.bf16.mxu1 %v11183_v0 }
 0x4ad   :  { %3772 = vmatprep.subr.bf16.mxu0 %v11183_v0 }
 0x4af   :  { %3979 = vmatpush1.bf16.msra.mxu1 %v11184_v21 }
 0x4b0   :  { %3773 = vmatpush1.bf16.msra.mxu0 %v11190_v44  ;;  %3980 = vmatprep.subr.bf16.mxu1 %v11183_v0 }
 0x4b1   :  { %3774 = vmatprep.subr.bf16.mxu0 %v11183_v0 }
 0x4b3   :  { %3981 = vmatpush1.bf16.msra.mxu1 %v11185_v59 }
 0x4b4   :  { %3775 = vmatpush1.bf16.msra.mxu0 %v11191_v39  ;;  %3982 = vmatprep.subr.bf16.mxu1 %v11183_v0 }
 0x4b5   :  { %3776 = vmatprep.subr.bf16.mxu0 %v11183_v0 }
 0x4b7   :  { %3983 = vmatpush1.bf16.msra.mxu1 %v11186_v57  ;;  %v11201_v57 = vld [vmem:[#allocation38_spill] sm:$0xff] }
 0x4b8   :  { %3777 = vmatpush1.bf16.msra.mxu0 %v11192_v52  ;;  %3984 = vmatprep.subr.bf16.mxu1 %v11183_v0 }
 0x4b9   :  { %3778 = vmatprep.subr.bf16.mxu0 %v11183_v0  ;;  %v6348_v53 = vpop.f32.mrb[96].mxu1 }
 0x4ba   :  { %v6349_v14 = vpop.f32.mrb[97].mxu1 }
 0x4bb   :  { %v6350_v55 = vadd.f32 %v6349_v14, %v6348_v53  ;;  %3985 = vmatpush1.bf16.msra.mxu1 %v11187_v13  ;;  %v6351_v12 = vpop.f32.mrb[98].mxu1 }
 0x4bc   :  { %3779 = vmatpush1.bf16.msra.mxu0 %v11193_v61  ;;  %v6352_v38 = vpop.f32.mrb[99].mxu1  ;;  %3986 = vmatprep.subr.bf16.mxu1 %v11183_v0 }
 0x4bd   :  { %3780 = vmatprep.subr.bf16.mxu0 %v11183_v0  ;;  %v6353_v63 = vadd.f32 %v6352_v38, %v6351_v12 }
 0x4bf   :  { %3987 = vmatpush1.bf16.msra.mxu1 %v11188_v42 }
 0x4c0   :  { %3781 = vmatpush1.bf16.msra.mxu0 %v11194_v6  ;;  %3988 = vmatprep.subr.bf16.mxu1 %v11183_v0 }
 0x4c1   :  { %3782 = vmatprep.subr.bf16.mxu0 %v11183_v0 }
 0x4c2   :  { %v6304_v49 = vpop.f32.mrb[104].mxu0 }
 0x4c3   :  { %v6305_v51 = vpop.f32.mrb[105].mxu0  ;;  %3989 = vmatpush1.bf16.msra.mxu1 %v11189_v7 }
 0x4c4   :  { %v6306_v50 = vadd.f32 %v6305_v51, %v6304_v49  ;;  %v6307_v1 = vpop.f32.mrb[106].mxu0  ;;  %3783 = vmatpush1.bf16.msra.mxu0 %v7133_v56  ;;  %3990 = vmatprep.subr.bf16.mxu1 %v11183_v0 }
 0x4c5   :  { %v6308_v4 = vpop.f32.mrb[107].mxu0  ;;  %6508 = vmatprep.subr.bf16.mxu0 %v10190_v3  ;;  %v11195_v3 = vld [vmem:[#allocation28_spill] sm:$0xff] }
 0x4c6   :  { %v3271_v21 = vadd.f32 %v6306_v50, %v6284_v58  ;;  %v6309_v40 = vadd.f32 %v6308_v4, %v6307_v1 }
 0x4c7   :  { %3787 = vmatmul.mubr.bf16.vlgmr.msra.gmra.mrb[124].mxu0 %v5449_v20  ;;  %3991 = vmatpush1.bf16.msra.mxu1 %v11190_v44 }
 0x4c8   :  { %v3274_v19 = vadd.f32 %v6309_v40, %v6287_v26  ;;  %6509 = vmatpush3.bf16.msra.mxu0 %v10200_v24  ;;  %3992 = vmatprep.subr.bf16.mxu1 %v11183_v0  ;;  %v3312_v17 = vadd.f32 %v10554_v48, %v3271_v21  ;;  %v11196_v24 = vld [vmem:[#allocation29_spill] sm:$0xff] }
 0x4c9   :  { %6510 = vmatprep.subr.bf16.mxu0 %v10210_v31  ;;  %3963 = vmatprep.mubr.bf16.mxu0 %v5465_v45  ;;  %v11197_v31 = vld [vmem:[#allocation30_spill] sm:$0xff] }
 0x4ca   :  { %v3315_v36 = vadd.f32 %v10569_v28, %v3274_v19 }
 0x4cb   :  { %3993 = vmatpush1.bf16.msra.mxu1 %v11191_v39 }
 0x4cc   :  { %6511 = vmatpush3.bf16.msra.mxu0 %v10220_v23  ;;  %3994 = vmatprep.subr.bf16.mxu1 %v11183_v0 }
 0x4cd   :  { %6512 = vmatprep.subr.bf16.mxu0 %v10227_v16  ;;  %v11198_v16 = vld [vmem:[#allocation31_spill] sm:$0xff] }
 0x4cf   :  { %3995 = vmatpush1.bf16.msra.mxu1 %v11192_v52 }
 0x4d0   :  { %6513 = vmatpush3.bf16.msra.mxu0 %v10234_v32  ;;  %3996 = vmatprep.subr.bf16.mxu1 %v11183_v0 }
 0x4d1   :  { %6514 = vmatprep.subr.bf16.mxu0 %v10241_v22  ;;  %v5466_v22 = vcombine.low %v10561_v9, %v10566_v25  ;;  %v5464_v9 = vcombine.low %v5454_v8, %v5458_v15  ;;  %v11203_v25 = vld [vmem:[#allocation40_spill] sm:$0xff] }
 0x4d3   :  { %3997 = vmatpush1.bf16.msra.mxu1 %v11193_v61 }
 0x4d4   :  { %6515 = vmatpush3.bf16.msra.mxu0 %v11195_v3  ;;  %3998 = vmatprep.subr.bf16.mxu1 %v11183_v0 }
 0x4d5   :  { %6516 = vmatprep.subr.bf16.mxu0 %v11196_v24 }
 0x4d7   :  { %3999 = vmatpush1.bf16.msra.mxu1 %v11194_v6  ;;  %v4026_v6 = vld [vmem:[#allocation2 + $0x50] sm:$0xff] }
 0x4d8   :  { %6517 = vmatpush3.bf16.msra.mxu0 %v11197_v31  ;;  %4000 = vmatprep.subr.bf16.mxu1 %v11183_v0 }
 0x4d9   :  { %v6370_v23 = vpop.f32.mrb[100].mxu1  ;;  %6518 = vmatprep.subr.bf16.mxu0 %v11198_v16 }
 0x4da   :  { %v6371_v32 = vpop.f32.mrb[101].mxu1 }
 0x4db   :  { %v6372_v48 = vadd.f32 %v6371_v32, %v6370_v23  ;;  %v6373_v2 = vpop.f32.mrb[102].mxu1  ;;  %4001 = vmatpush1.bf16.msra.mxu1 %v7133_v56 }
 0x4dc   :  { %v6374_v59 = vpop.f32.mrb[103].mxu1  ;;  %6519 = vmatpush3.bf16.msra.mxu0 %v11199_v54 }
 0x4dd   :  { %v10650_v28 = vadd.f32 %v6372_v48, %v6350_v55  ;;  %v6375_v37 = vadd.f32 %v6374_v59, %v6373_v2  ;;  %6520 = vmatprep.subr.bf16.mxu0 %v11200_v60  ;;  %v4027_v55 = vld [vmem:[#allocation2 + $0x58] sm:$0xf] }
 0x4de   :  { %4005 = vmatmul.mubr.bf16.vlgmr.msra.gmra.mrb[120].mxu1 %v5466_v22 }
 0x4df   :  { %v10653_v0 = vadd.f32 %v6375_v37, %v6353_v63 }
 0x4e0   :  { %6521 = vmatpush3.bf16.msra.mxu0 %v11201_v57 }
 0x4e1   :  { %6522 = vmatprep.subr.bf16.mxu0 %v11202_v35  ;;  %v4183_v62 = vpop.permute.xlu1 %4182 }
 0x4e2   :  { %v4181_v56 = vpop.permute.xlu0 %4180 }
 0x4e4   :  { %6523 = vmatpush3.bf16.msra.mxu0 %v11203_v25 }
 0x4e5   :  { %v4439_v58 = vpop.permute.xlu1 %4438 }
 0x4e6   :  { %v4437_v11 = vpop.permute.xlu0 %4436  ;;  %v4475_v8 = vadd.f32 %v4439_v58, %v10537_v47 }
 0x4e7   :  { %3964 = vmatmul.mubr.bf16.vlgmr.msra.gmra.mrb[128].mxu0 %v5464_v9  ;;  %v4474_v45 = vadd.f32 %v4437_v11, %v10531_v29 }
 0x4e9   :  { %v4565_v13 = vpop.permute.xlu1 %4564 }
 0x4ea   :  { %v4567_v34 = vpop.permute.xlu0 %4566 }
 0x4ed   :  { %v4373_v52 = vpop.permute.xlu1 %4372 }
 0x4ee   :  { %v4375_v42 = vpop.permute.xlu0 %4374 }
 0x4fe   :  { %v3352_v43 = vpop.f32.mrb[108].mxu0 }
 0x4ff   :  { %v3353_v18 = vadd.f32 %v3352_v43, %v3312_v17  ;;  %v3354_v26 = vpop.f32.mrb[109].mxu0 }
 0x500   :  { %v3355_v7 = vpop.f32.mrb[110].mxu0 }
 0x501   :  { %3360 = vst.msk [vmem:[#allocation2 + $0x60] sm:$0xff] %vm745_vm2, %v3353_v18  ;;  %v3356_v44 = vadd.f32 %v3355_v7, %v3315_v36  ;;  %v3357_v39 = vpop.f32.mrb[111].mxu0 }
 0x503   :  { %3361 = vst.msk [vmem:[#allocation2 + $0x68] sm:$0xff] %vm745_vm2, %v3356_v44 }
 0x504   :  { %v4085_v53 = vpop.permute.xlu0 %4084 }
 0x505   :  { %v4122_v15 = vadd.f32 %v4085_v53, %v4026_v6 }
 0x506   :  { %v4087_v14 = vpop.permute.xlu1 %4086 }
 0x507   :  { %v4123_v61 = vadd.f32 %v4087_v14, %v4027_v55  ;;  %v4218_v21 = vadd.f32 %v4181_v56, %v4122_v15 }
 0x508   :  { %v4277_v12 = vpop.permute.xlu0 %4276 }
 0x509   :  { %v4219_v51 = vadd.f32 %v4183_v62, %v4123_v61  ;;  %v4314_v36 = vadd.f32 %v4277_v12, %v4218_v21 }
 0x50a   :  { %v4141_v38 = vld [vmem:[#allocation2 + $0x69] sm:$0xf]  ;;  %v4140_v63 = vld [vmem:[#allocation2 + $0x61] sm:$0xff]  ;;  %v4279_v20 = vpop.permute.xlu1 %4278 }
 0x50b   :  { %4186 = vrot.lane.b32.xlu1 %v4141_v38, %s6799_s21  ;;  %4184 = vrot.lane.b32.xlu0 %v4140_v63, %s6799_s21  ;;  %v4333_v50 = vld [vmem:[#allocation2 + $0x6a] sm:$0xf]  ;;  %v4315_v40 = vadd.f32 %v4279_v20, %v4219_v51  ;;  %v4332_v23 = vld [vmem:[#allocation2 + $0x62] sm:$0xff]  ;;  %v4410_v59 = vadd.f32 %v4373_v52, %v4314_v36 }
 0x50c   :  { %v4503_v49 = vpop.permute.xlu0 %4502 }
 0x50d   :  { %v4539_v1 = vadd.f32 %v4503_v49, %v4475_v8  ;;  %v4411_v3 = vadd.f32 %v4375_v42, %v4315_v40 }
 0x50f   :  { %4442 = vrot.lane.b32.xlu1 %v4141_v38, %s6801_s7  ;;  %4570 = vrot.lane.b32.xlu0 %v4333_v50, %s6802_s12  ;;  %v4603_v47 = vadd.f32 %v4567_v34, %v4539_v1 }
 0x510   :  { %v4501_v4 = vpop.permute.xlu0 %4500 }
 0x511   :  { %v4538_v19 = vadd.f32 %v4501_v4, %v4474_v45 }
 0x513   :  { %4440 = vrot.lane.b32.xlu1 %v4140_v63, %s6801_s7  ;;  %4378 = vrot.lane.b32.xlu0 %v4333_v50, %s6800_s26  ;;  %v4602_v29 = vadd.f32 %v4565_v13, %v4538_v19 }
 0x514   :  { %v4663_v17 = vpop.permute.xlu0 %4662 }
 0x515   :  { %v4699_v24 = vadd.f32 %v4663_v17, %v4603_v47  ;;  %v3570_v31 = vpop.f32.mrb[104].mxu1 }
 0x516   :  { %v3572_v16 = vpop.f32.mrb[105].mxu1 }
 0x517   :  { %v4715_v32 = vmax.f32 %v4411_v3, %v4699_v24  ;;  %4568 = vrot.lane.b32.xlu1 %v4332_v23, %s6802_s12  ;;  %4376 = vrot.lane.b32.xlu0 %v4332_v23, %s6800_s26  ;;  %v3573_v22 = vpop.f32.mrb[106].mxu1 }
 0x518   :  { %v4661_v48 = vpop.permute.xlu0 %4660  ;;  %v3575_v2 = vpop.f32.mrb[107].mxu1 }
 0x519   :  { %v4738_v54 = vadd.f32 %v10443_v27, %v4715_v32  ;;  %v4698_v37 = vadd.f32 %v4661_v48, %v4602_v29 }
 0x51b   :  { %v4770_v60 = vmul.f32 0.01, %v4738_v54  ;;  %v4714_v57 = vmax.f32 %v4410_v59, %v4698_v37  ;;  %vm4754_vm13 = vcmp.gt.f32.partialorder %v4738_v54, 0.0 }
 0x51d   :  { %v4737_v35 = vadd.f32 %v10443_v27, %v4714_v57  ;;  %v10672_v9 = vsel %vm4754_vm13, %v4738_v54, %v4770_v60  ;;  %vm4969_vm13 = vcmask 7168  }
 0x51e   :  { %v6392_v25 = vpop.f32.mrb[112].mxu0  ;;  %v10676_v56 = vmul.f32 %v10475_v30, %v10672_v9 }
 0x51f   :  { %v4769_v62 = vmul.f32 0.01, %v4737_v35  ;;  %v6393_v11 = vpop.f32.mrb[113].mxu0  ;;  %vm4753_vm14 = vcmp.gt.f32.partialorder %v4737_v35, 0.0 }
 0x520   :  { %v6394_v58 = vadd.f32 %v6393_v11, %v6392_v25  ;;  %v6395_v34 = vpop.f32.mrb[114].mxu0 }
 0x521   :  { %v6396_v13 = vpop.f32.mrb[115].mxu0  ;;  %v10678_v43 = vsel %vm4753_vm14, %v4737_v35, %v4769_v62  ;;  %vm5144_vm14 = vcmask 15368  }
 0x522   :  { %v6397_v18 = vadd.f32 %v6396_v13, %v6395_v34  ;;  %v3530_v26 = vadd.f32 %v6394_v58, %v10650_v28  ;;  %v10683_v42 = vmul.f32 %v10490_v5, %v10678_v43 }
 0x524   :  { %v3571_v7 = vadd.f32 %v3570_v31, %v3530_v26  ;;  %v3533_v44 = vadd.f32 %v6397_v18, %v10653_v0 }
 0x526   :  { %3578 = vst.msk [vmem:[#allocation3 + $0x60] sm:$0xff] %vm745_vm2, %v3571_v7  ;;  %v3574_v39 = vadd.f32 %v3573_v22, %v3533_v44 }
 0x528   :  { %3579 = vst.msk [vmem:[#allocation3 + $0x68] sm:$0xff] %vm745_vm2, %v3574_v39 }
 0x52d   :  { %v10688_v52 = vld [vmem:[#allocation3 + $0x60] sm:$0xff] }
 0x52e   :  { %4088 = vrot.lane.b32.xlu0 %v10688_v52, %s6801_s7 }
 0x52f   :  { %v10692_v53 = vld [vmem:[#allocation3 + $0x68] sm:$0xf] }
 0x530   :  { %4090 = vrot.lane.b32.xlu1 %v10692_v53, %s6801_s7  ;;  %v4236_v28 = vld [vmem:[#allocation3 + $0x61] sm:$0xff]  ;;  %v4237_v14 = vld [vmem:[#allocation3 + $0x69] sm:$0xf] }
 0x531   :  { %v4620_v0 = vld [vmem:[#allocation3 + $0x62] sm:$0xff]  ;;  %v4621_v15 = vld [vmem:[#allocation3 + $0x6a] sm:$0xf] }
 0x532   :  { %4280 = vrot.lane.b32.xlu0 %v4236_v28, %s6802_s12 }
 0x534   :  { %4282 = vrot.lane.b32.xlu1 %v4237_v14, %s6802_s12 }
 0x535   :  { %v6458_v55 = vpop.f32.mrb[108].mxu1 }
 0x536   :  { %4664 = vrot.lane.b32.xlu0 %v4620_v0, %s6800_s26  ;;  %v6459_v12 = vpop.f32.mrb[109].mxu1 }
 0x537   :  { %v6460_v61 = vadd.f32 %v6459_v12, %v6458_v55  ;;  %v6461_v38 = vpop.f32.mrb[110].mxu1 }
 0x538   :  { %4506 = vrot.lane.b32.xlu1 %v4237_v14, %s6799_s21  ;;  %v6462_v63 = vpop.f32.mrb[111].mxu1 }
 0x539   :  { %v6463_v6 = vadd.f32 %v6462_v63, %v6461_v38  ;;  %v4029_v38 = vld [vmem:[#allocation2 + $0x68] sm:$0xf] }
 0x53c   :  { %4504 = vrot.lane.b32.xlu1 %v4236_v28, %s6799_s21 }
 0x53e   :  { %v6414_v49 = vpop.f32.mrb[116].mxu0 }
 0x53f   :  { %v6415_v8 = vpop.f32.mrb[117].mxu0 }
 0x540   :  { %v6416_v51 = vadd.f32 %v6415_v8, %v6414_v49  ;;  %v6417_v20 = vpop.f32.mrb[118].mxu0  ;;  %4666 = vrot.lane.b32.xlu1 %v4621_v15, %s6800_s26 }
 0x541   :  { %v6418_v50 = vpop.f32.mrb[119].mxu0 }
 0x542   :  { %v6419_v1 = vadd.f32 %v6418_v50, %v6417_v20 }
 0x555   :  { %v6480_v4 = vpop.f32.mrb[112].mxu1 }
 0x556   :  { %v6481_v45 = vpop.f32.mrb[113].mxu1 }
 0x557   :  { %v6482_v21 = vadd.f32 %v6481_v45, %v6480_v4  ;;  %v6483_v40 = vpop.f32.mrb[114].mxu1 }
 0x558   :  { %v6484_v19 = vpop.f32.mrb[115].mxu1 }
 0x559   :  { %v6485_v47 = vadd.f32 %v6484_v19, %v6483_v40 }
 0x55e   :  { %v6436_v17 = vpop.f32.mrb[120].mxu0 }
 0x55f   :  { %v6437_v36 = vpop.f32.mrb[121].mxu0 }
 0x560   :  { %v6438_v3 = vadd.f32 %v6437_v36, %v6436_v17  ;;  %v6439_v24 = vpop.f32.mrb[122].mxu0 }
 0x561   :  { %v6440_v31 = vpop.f32.mrb[123].mxu0 }
 0x562   :  { %v3707_v23 = vadd.f32 %v6438_v3, %v6416_v51  ;;  %v6441_v16 = vadd.f32 %v6440_v31, %v6439_v24 }
 0x564   :  { %v3710_v32 = vadd.f32 %v6441_v16, %v6419_v1  ;;  %v3748_v29 = vadd.f32 %v6460_v61, %v3707_v23  ;;  %v4028_v61 = vld [vmem:[#allocation2 + $0x60] sm:$0xff] }
 0x566   :  { %v3751_v22 = vadd.f32 %v6463_v6, %v3710_v32 }
 0x575   :  { %v6502_v48 = vpop.f32.mrb[116].mxu1 }
 0x576   :  { %v6503_v2 = vpop.f32.mrb[117].mxu1 }
 0x577   :  { %v6504_v59 = vadd.f32 %v6503_v2, %v6502_v48  ;;  %v6505_v54 = vpop.f32.mrb[118].mxu1 }
 0x578   :  { %v6506_v37 = vpop.f32.mrb[119].mxu1 }
 0x579   :  { %v10702_v60 = vadd.f32 %v6504_v59, %v6482_v21  ;;  %v6507_v57 = vadd.f32 %v6506_v37, %v6505_v54 }
 0x57b   :  { %v10704_v35 = vadd.f32 %v6507_v57, %v6485_v47 }
 0x57d   :  { %v4187_v25 = vpop.permute.xlu1 %4186  ;;  %v4185_v62 = vpop.permute.xlu0 %4184 }
 0x581   :  { %v4443_v11 = vpop.permute.xlu1 %4442  ;;  %v4571_v58 = vpop.permute.xlu0 %4570 }
 0x582   :  { %v4477_v20 = vadd.f32 %v4443_v11, %v10692_v53 }
 0x585   :  { %v4441_v34 = vpop.permute.xlu1 %4440  ;;  %v4379_v13 = vpop.permute.xlu0 %4378 }
 0x586   :  { %v4476_v45 = vadd.f32 %v4441_v34, %v10688_v52 }
 0x589   :  { %v4569_v14 = vpop.permute.xlu1 %4568  ;;  %v4377_v0 = vpop.permute.xlu0 %4376 }
 0x59a   :  { %v3788_v18 = vpop.f32.mrb[124].mxu0 }
 0x59b   :  { %v3789_v26 = vadd.f32 %v3788_v18, %v3748_v29  ;;  %v3790_v7 = vpop.f32.mrb[125].mxu0 }
 0x59c   :  { %v3791_v44 = vpop.f32.mrb[126].mxu0 }
 0x59d   :  { %3796 = vst.msk [vmem:[#allocation2 + $0x70] sm:$0xff] %vm745_vm2, %v3789_v26  ;;  %v3792_v39 = vadd.f32 %v3791_v44, %v3751_v22  ;;  %v3793_v28 = vpop.f32.mrb[127].mxu0 }
 0x59f   :  { %3797 = vst.msk [vmem:[#allocation2 + $0x78] sm:$0xff] %vm745_vm2, %v3792_v39 }
 0x5a0   :  { %v4089_v12 = vpop.permute.xlu0 %4088 }
 0x5a1   :  { %v4124_v8 = vadd.f32 %v4089_v12, %v4028_v61 }
 0x5a2   :  { %v4091_v55 = vpop.permute.xlu1 %4090 }
 0x5a3   :  { %v4125_v15 = vadd.f32 %v4091_v55, %v4029_v38  ;;  %v4220_v50 = vadd.f32 %v4185_v62, %v4124_v8  ;;  %v10760_v8 = vld [vmem:[%s10901_s4 + $0x10] sm:$0xff] }
 0x5a4   :  { %v4281_v1 = vpop.permute.xlu0 %4280 }
 0x5a5   :  { %v4221_v4 = vadd.f32 %v4187_v25, %v4125_v15  ;;  %v4316_v17 = vadd.f32 %v4281_v1, %v4220_v50  ;;  %v11205_v15 = vld [vmem:[#allocation5_spill] sm:$0xff]  ;;  %v11206_v50 = vld [vmem:[#allocation32_spill] sm:$0xff] }
 0x5a6   :  { %v4283_v63 = vpop.permute.xlu1 %4282  ;;  %v4143_v6 = vld [vmem:[#allocation2 + $0x79] sm:$0xf]  ;;  %v4142_v49 = vld [vmem:[#allocation2 + $0x71] sm:$0xff] }
 0x5a7   :  { %4190 = vrot.lane.b32.xlu1 %v4143_v6, %s6799_s21  ;;  %4188 = vrot.lane.b32.xlu0 %v4142_v49, %s6799_s21  ;;  %v4334_v19 = vld [vmem:[#allocation2 + $0x72] sm:$0xff]  ;;  %v4335_v47 = vld [vmem:[#allocation2 + $0x7a] sm:$0xf]  ;;  %v4317_v36 = vadd.f32 %v4283_v63, %v4221_v4  ;;  %v4412_v29 = vadd.f32 %v4377_v0, %v4316_v17 }
 0x5a8   :  { %v4665_v53 = vpop.permute.xlu0 %4664  ;;  %v10753_v63 = vld [vmem:[%s10901_s4 + $0x18] sm:$0xf] }
 0x5a9   :  { %v4413_v22 = vadd.f32 %v4379_v13, %v4317_v36  ;;  %v4979_v1 = vmul.f32 %v10753_v63, %v11206_v50  ;;  %v11209_v36 = vld [vmem:[#allocation25_spill] sm:$0xff] }
 0x5aa   :  { %v4507_v51 = vpop.permute.xlu1 %4506 }
 0x5ab   :  { %4444 = vrot.lane.b32.xlu1 %v4142_v49, %s6801_s7  ;;  %4446 = vrot.lane.b32.xlu0 %v4143_v6, %s6801_s7  ;;  %v4541_v21 = vadd.f32 %v4507_v51, %v4477_v20  ;;  %v11204_v6 = vld [vmem:[#allocation4_spill] sm:$0xff]  ;;  %v4976_v51 = vmul.f32 %v10760_v8, %v11205_v15 }
 0x5ac   :  { %v4977_v49 = vmul.f32 %v10753_v63, %v11204_v6 }
 0x5ad   :  { %v4605_v31 = vadd.f32 %v4571_v58, %v4541_v21 }
 0x5ae   :  { %v4505_v40 = vpop.permute.xlu1 %4504  ;;  %v4999_v20 = vsel %vm4813_vm1, %v4977_v49, 0.0 }
 0x5af   :  { %v4540_v3 = vadd.f32 %v4505_v40, %v4476_v45  ;;  %4572 = vrot.lane.b32.xlu1 %v4334_v19, %s6802_s12  ;;  %4574 = vrot.lane.b32.xlu0 %v4335_v47, %s6802_s12  ;;  %v11207_v45 = vld [vmem:[#allocation34_spill] sm:$0xff]  ;;  %v5005_v40 = vsel %vm4813_vm1, %v4979_v1, 0.0 }
 0x5b0   :  { %v4978_v21 = vmul.f32 %v10760_v8, %v11207_v45 }
 0x5b1   :  { %v4604_v24 = vadd.f32 %v4569_v14, %v4540_v3  ;;  %v4006_v23 = vpop.f32.mrb[120].mxu1  ;;  %v4974_v3 = vmul.f32 %v10760_v8, %v11209_v36 }
 0x5b2   :  { %v4667_v16 = vpop.permute.xlu1 %4666  ;;  %v4008_v32 = vpop.f32.mrb[121].mxu1 }
 0x5b3   :  { %v4700_v52 = vadd.f32 %v4665_v53, %v4604_v24  ;;  %v4701_v48 = vadd.f32 %v4667_v16, %v4605_v31  ;;  %4382 = vrot.lane.b32.xlu1 %v4335_v47, %s6800_s26  ;;  %v4009_v2 = vpop.f32.mrb[122].mxu1  ;;  %v11210_v24 = vld [vmem:[#allocation8_spill] sm:$0xff]  ;;  %v4983_v16 = vmul.f32 %v10753_v63, %v10468_v41 }
 0x5b4   :  { %v4011_v59 = vpop.f32.mrb[123].mxu1  ;;  %v4981_v31 = vmul.f32 %v10753_v63, %v11210_v24 }
 0x5b5   :  { %v4716_v54 = vmax.f32 %v4412_v29, %v4700_v52  ;;  %v4717_v37 = vmax.f32 %v4413_v22, %v4701_v48  ;;  %v11211_v29 = vld [vmem:[#allocation9_spill] sm:$0xff]  ;;  %v5017_v52 = vsel %vm4813_vm1, %v4983_v16, 0.0  ;;  %v4985_v48 = vmul.f32 %v10753_v63, %v10672_v9 }
 0x5b6   :  { %v5011_v32 = vsel %vm4813_vm1, %v4981_v31, 0.0  ;;  %v4980_v22 = vmul.f32 %v10760_v8, %v11211_v29  ;;  %v4982_v59 = vmul.f32 %v10760_v8, %v10483_v10 }
 0x5b7   :  { %v4739_v57 = vadd.f32 %v10443_v27, %v4716_v54  ;;  %v4740_v25 = vadd.f32 %v10443_v27, %v4717_v37  ;;  %v5023_v41 = vsel %vm4813_vm1, %v4985_v48, 0.0 }
 0x5b9   :  { %v4772_v62 = vmul.f32 0.01, %v4740_v25  ;;  %vm4756_vm15 = vcmp.gt.f32.partialorder %v4740_v25, 0.0  ;;  %vm4755_vm0 = vcmp.gt.f32.partialorder %v4739_v57, 0.0  ;;  %v4771_v11 = vmul.f32 0.01, %v4739_v57 }
 0x5ba   :  { %v6524_v58 = vpop.f32.mrb[128].mxu0 }
 0x5bb   :  { %v6525_v34 = vpop.f32.mrb[129].mxu0  ;;  %v10719_v18 = vsel %vm4756_vm15, %v4740_v25, %v4772_v62  ;;  %v10721_v13 = vsel %vm4755_vm0, %v4739_v57, %v4771_v11  ;;  %v4984_v57 = vmul.f32 %v10760_v8, %v10678_v43 }
 0x5bc   :  { %v6526_v26 = vadd.f32 %v6525_v34, %v6524_v58  ;;  %v6527_v7 = vpop.f32.mrb[130].mxu0  ;;  %v10725_v44 = vmul.f32 %v10475_v30, %v10719_v18  ;;  %v10729_v27 = vmul.f32 %v10490_v5, %v10721_v13  ;;  %v4987_v54 = vmul.f32 %v10753_v63, %v10719_v18 }
 0x5bd   :  { %v6528_v39 = vpop.f32.mrb[131].mxu0  ;;  %v4986_v10 = vmul.f32 %v10760_v8, %v10721_v13 }
 0x5be   :  { %v3966_v28 = vadd.f32 %v6526_v26, %v10702_v60  ;;  %v6529_v14 = vadd.f32 %v6528_v39, %v6527_v7  ;;  %v5029_v9 = vsel %vm4813_vm1, %v4987_v54, 0.0  ;;  %v11213_v54 = vld [vmem:[#allocation7_spill] sm:$0xff] }
 0x5c0   :  { %v4007_v0 = vadd.f32 %v4006_v23, %v3966_v28  ;;  %v3969_v55 = vadd.f32 %v6529_v14, %v10704_v35  ;;  %v4031_v28 = vld [vmem:[#allocation2 + $0x78] sm:$0xf] }
 0x5c2   :  { %4014 = vst.msk [vmem:[#allocation3 + $0x70] sm:$0xff] %vm745_vm2, %v4007_v0  ;;  %v4010_v12 = vadd.f32 %v4009_v2, %v3969_v55 }
 0x5c4   :  { %4015 = vst.msk [vmem:[#allocation3 + $0x78] sm:$0xff] %vm745_vm2, %v4010_v12  ;;  %vm4809_vm2 = vcmask 130048  }
 0x5c5   :  { %v4996_v4 = vsel %vm4809_vm2, %v4976_v51, 0.0  ;;  %v5002_v17 = vsel %vm4809_vm2, %v4978_v21, 0.0  ;;  %v4990_v23 = vsel %vm4809_vm2, %v4974_v3, 0.0  ;;  %v5008_v2 = vsel %vm4809_vm2, %v4980_v22, 0.0 }
 0x5c6   :  { %v5014_v37 = vsel %vm4809_vm2, %v4982_v59, 0.0  ;;  %v5020_v25 = vsel %vm4809_vm2, %v4984_v57, 0.0  ;;  %v5026_v62 = vsel %vm4809_vm2, %v4986_v10, 0.0  ;;  %v11212_v59 = vld [vmem:[#allocation6_spill] sm:$0xff]  ;;  %v11214_v57 = vld [vmem:[#allocation33_spill] sm:$0xff] }
 0x5c7   :  { %v11216_v10 = vld [vmem:[#allocation10_spill] sm:$0xff] }
 0x5c9   :  { %v10735_v61 = vld [vmem:[#allocation3 + $0x70] sm:$0xff] }
 0x5ca   :  { %4092 = vrot.lane.b32.xlu0 %v10735_v61, %s6801_s7 }
 0x5cb   :  { %v10739_v30 = vld [vmem:[#allocation3 + $0x78] sm:$0xf] }
 0x5cc   :  { %4094 = vrot.lane.b32.xlu1 %v10739_v30, %s6801_s7  ;;  %v4238_v5 = vld [vmem:[#allocation3 + $0x71] sm:$0xff]  ;;  %v4239_v60 = vld [vmem:[#allocation3 + $0x79] sm:$0xf] }
 0x5cd   :  { %v4623_v35 = vld [vmem:[#allocation3 + $0x7a] sm:$0xf]  ;;  %v4622_v38 = vld [vmem:[#allocation3 + $0x72] sm:$0xff] }
 0x5ce   :  { %4284 = vrot.lane.b32.xlu0 %v4238_v5, %s6802_s12 }
 0x5d0   :  { %4286 = vrot.lane.b32.xlu1 %v4239_v60, %s6802_s12 }
 0x5d2   :  { %4510 = vrot.lane.b32.xlu0 %v4239_v60, %s6799_s21 }
 0x5d4   :  { %4670 = vrot.lane.b32.xlu1 %v4623_v35, %s6800_s26 }
 0x5d6   :  { %4508 = vrot.lane.b32.xlu0 %v4238_v5, %s6799_s21  ;;  %v4030_v5 = vld [vmem:[#allocation2 + $0x70] sm:$0xff] }
 0x5d8   :  { %4668 = vrot.lane.b32.xlu1 %v4622_v38, %s6800_s26 }
 0x5da   :  { %4380 = vrot.lane.b32.xlu0 %v4334_v19, %s6800_s26  ;;  %v11208_v19 = vld [vmem:[#allocation23_spill] sm:$0xff] }
 0x5db   :  { %v4975_v47 = vmul.f32 %v10753_v63, %v11208_v19 }
 0x5dd   :  { %v4993_v53 = vsel %vm4813_vm1, %v4975_v47, 0.0 }
 0x5f9   :  { %5000 = vadd.xlane.f32.xlu0 %v4999_v20 }
 0x5fc   :  { %4997 = vadd.xlane.f32.xlu1 %v4996_v4 }
 0x5fd   :  { %5006 = vadd.xlane.f32.xlu0 %v5005_v40 }
 0x600   :  { %5003 = vadd.xlane.f32.xlu1 %v5002_v17 }
 0x601   :  { %4994 = vadd.xlane.f32.xlu0 %v4993_v53 }
 0x604   :  { %4991 = vadd.xlane.f32.xlu1 %v4990_v23 }
 0x605   :  { %5012 = vadd.xlane.f32.xlu0 %v5011_v32 }
 0x608   :  { %5018 = vadd.xlane.f32.xlu1 %v5017_v52 }
 0x609   :  { %5009 = vadd.xlane.f32.xlu0 %v5008_v2 }
 0x60c   :  { %5024 = vadd.xlane.f32.xlu1 %v5023_v41  ;;  %v4820_v41 = vsel %vm4813_vm1, %v11212_v59, 0.0 }
 0x60d   :  { %5015 = vadd.xlane.f32.xlu0 %v5014_v37  ;;  %v4817_v37 = vsel %vm4809_vm2, %v11213_v54, 0.0 }
 0x610   :  { %5030 = vadd.xlane.f32.xlu1 %v5029_v9  ;;  %v4826_v9 = vsel %vm4813_vm1, %v11214_v57, 0.0 }
 0x611   :  { %5021 = vadd.xlane.f32.xlu0 %v5020_v25 }
 0x615   :  { %5027 = vadd.xlane.f32.xlu0 %v5026_v62  ;;  %v4832_v62 = vsel %vm4813_vm1, %v11216_v10, 0.0 }
 0x619   :  { %v4191_v11 = vpop.permute.xlu1 %4190  ;;  %v4189_v58 = vpop.permute.xlu0 %4188 }
 0x61d   :  { %v4445_v34 = vpop.permute.xlu1 %4444  ;;  %v4447_v18 = vpop.permute.xlu0 %4446 }
 0x61e   :  { %v4479_v13 = vadd.f32 %v4447_v18, %v10739_v30  ;;  %v4478_v51 = vadd.f32 %v4445_v34, %v10735_v61  ;;  %v6795_v30 = vld [vmem:[%s10900_s3] ss:$0 sm:$0xff]  ;;  %v11218_v34 = vld [vmem:[#allocation11_spill] sm:$0xff] }
 0x61f   :  { %v4829_v18 = vsel %vm4809_vm2, %v11218_v34, 0.0 }
 0x621   :  { %v4573_v26 = vpop.permute.xlu1 %4572  ;;  %v4575_v7 = vpop.permute.xlu0 %4574 }
 0x625   :  { %v4383_v43 = vpop.permute.xlu1 %4382 }
 0x63c   :  { %v4093_v39 = vpop.permute.xlu0 %4092 }
 0x63d   :  { %v4126_v35 = vadd.f32 %v4093_v39, %v4030_v5  ;;  %v4841_v39 = vsel %vm4809_vm2, %v10683_v42, 0.0  ;;  %v6797_v42 = vld [vmem:[%s10901_s4] sm:$0xff] }
 0x63e   :  { %v4095_v14 = vpop.permute.xlu1 %4094 }
 0x63f   :  { %v4127_v0 = vadd.f32 %v4095_v14, %v4031_v28  ;;  %v4222_v20 = vadd.f32 %v4189_v58, %v4126_v35  ;;  %v4850_v28 = vsel %vm4813_vm1, %v10725_v44, 0.0  ;;  %v11219_v14 = vld [vmem:[#allocation35_spill] sm:$0xff] }
 0x640   :  { %v4285_v55 = vpop.permute.xlu0 %4284 }
 0x641   :  { %v4223_v12 = vadd.f32 %v4191_v11, %v4127_v0  ;;  %v4318_v40 = vadd.f32 %v4285_v55, %v4222_v20  ;;  %v11217_v11 = vld [vmem:[#allocation26_spill] sm:$0xff] }
 0x642   :  { %v4287_v60 = vpop.permute.xlu1 %4286  ;;  %v4810_v58 = vsel %vm4809_vm2, %v11217_v11, 0.0 }
 0x643   :  { %v4319_v6 = vadd.f32 %v4287_v60, %v4223_v12 }
 0x644   :  { %v4511_v38 = vpop.permute.xlu0 %4510 }
 0x645   :  { %v4543_v49 = vadd.f32 %v4511_v38, %v4479_v13  ;;  %v4415_v4 = vadd.f32 %v4383_v43, %v4319_v6  ;;  %v4844_v43 = vsel %vm4813_vm1, %v10676_v56, 0.0  ;;  %v4847_v56 = vsel %vm4809_vm2, %v10729_v27, 0.0 }
 0x646   :  { %v4671_v15 = vpop.permute.xlu1 %4670 }
 0x647   :  { %v4607_v50 = vadd.f32 %v4575_v7, %v4543_v49  ;;  %v4835_v7 = vsel %vm4809_vm2, %v10494_v33, 0.0  ;;  %v6796_v33 = vld [vmem:[%s10901_s4 + $0x8] sm:$0xf]  ;;  %s6804_s4 = smov 1  }
 0x648   :  { %v4509_v1 = vpop.permute.xlu0 %4508 }
 0x649   :  { %v4703_v45 = vadd.f32 %v4671_v15, %v4607_v50  ;;  %v4542_v21 = vadd.f32 %v4509_v1, %v4478_v51 }
 0x64a   :  { %v4669_v17 = vpop.permute.xlu1 %4668 }
 0x64b   :  { %v4719_v19 = vmax.f32 %v4415_v4, %v4703_v45  ;;  %v4606_v47 = vadd.f32 %v4573_v26, %v4542_v21  ;;  %v4838_v26 = vsel %vm4813_vm1, %v10479_v46, 0.0  ;;  %v4823_v46 = vsel %vm4809_vm2, %v11219_v14, 0.0 }
 0x64c   :  { %v4381_v36 = vpop.permute.xlu0 %4380 }
 0x64d   :  { %v4742_v3 = vadd.f32 %v6795_v30, %v4719_v19  ;;  %v4702_v53 = vadd.f32 %v4669_v17, %v4606_v47  ;;  %v4414_v24 = vadd.f32 %v4381_v36, %v4318_v40 }
 0x64f   :  { %v4774_v31 = vmul.f32 0.01, %v4742_v3  ;;  %v4718_v61 = vmax.f32 %v4414_v24, %v4702_v53  ;;  %vm4758_vm3 = vcmp.gt.f32.partialorder %v4742_v3, 0.0 }
 0x651   :  { %v4741_v23 = vadd.f32 %v6795_v30, %v4718_v61  ;;  %v4790_v16 = vsel %vm4758_vm3, %v4742_v3, %v4774_v31 }
 0x652   :  { %v4989_v32 = vmul.f32 %v10753_v63, %v4790_v16  ;;  %v10818_v63 = vld [vmem:[%s10902_s5] ss:$0 sm:$0xff]  ;;  %v4808_v0 = vmul.f32 %v6796_v33, %v4790_v16 }
 0x653   :  { %v4773_v29 = vmul.f32 0.01, %v4741_v23  ;;  %vm4757_vm4 = vcmp.gt.f32.partialorder %v4741_v23, 0.0 }
 0x654   :  { %v5035_v22 = vsel %vm4813_vm1, %v4989_v32, 0.0  ;;  %v4856_v44 = vsel %vm4813_vm1, %v4808_v0, 0.0 }
 0x655   :  { %5036 = vadd.xlane.f32.xlu1 %v5035_v22  ;;  %v4789_v52 = vsel %vm4757_vm4, %v4741_v23, %v4773_v29 }
 0x656   :  { %v4988_v48 = vmul.f32 %v10760_v8, %v4789_v52  ;;  %v11215_v8 = vld [vmem:[#allocation24_spill] sm:$0xff]  ;;  %v4807_v55 = vmul.f32 %v6797_v42, %v4789_v52 }
 0x657   :  { %v4814_v25 = vsel %vm4813_vm1, %v11215_v8, 0.0 }
 0x658   :  { %v5032_v2 = vsel %vm4809_vm2, %v4988_v48, 0.0  ;;  %v4853_v12 = vsel %vm4809_vm2, %v4807_v55, 0.0 }
 0x659   :  { %5033 = vadd.xlane.f32.xlu0 %v5032_v2 }
 0x65d   :  { %4821 = vadd.xlane.f32.xlu0 %v4820_v41 }
 0x661   :  { %4818 = vadd.xlane.f32.xlu0 %v4817_v37 }
 0x665   :  { %4827 = vadd.xlane.f32.xlu0 %v4826_v9 }
 0x666   :  { %5108 = vrot.lane.b32.xlu1 %v10818_v63, %s6803_s24 }
 0x669   :  { %4815 = vadd.xlane.f32.xlu0 %v4814_v25 }
 0x66d   :  { %4833 = vadd.xlane.f32.xlu0 %v4832_v62 }
 0x671   :  { %4811 = vadd.xlane.f32.xlu0 %v4810_v58 }
 0x675   :  { %4830 = vadd.xlane.f32.xlu0 %v4829_v18 }
 0x679   :  { %4839 = vadd.xlane.f32.xlu0 %v4838_v26 }
 0x67d   :  { %4836 = vadd.xlane.f32.xlu0 %v4835_v7 }
 0x681   :  { %4845 = vadd.xlane.f32.xlu0 %v4844_v43 }
 0x685   :  { %4842 = vadd.xlane.f32.xlu0 %v4841_v39 }
 0x686   :  { %v5001_v5 = vpop.xlane.xlu0 %5000 }
 0x687   :  { %v5046_v20 = vsel %vm4859_vm5, %v5001_v5, 0.0 }
 0x689   :  { %4851 = vadd.xlane.f32.xlu0 %v4850_v28  ;;  %v4998_v13 = vpop.xlane.xlu1 %4997 }
 0x68a   :  { %4824 = vadd.xlane.f32.xlu1 %v4823_v46  ;;  %v5007_v60 = vpop.xlane.xlu0 %5006  ;;  %v5047_v1 = vadd.f32 %v5046_v20, %v4998_v13 }
 0x68b   :  { %v5054_v50 = vsel %vm4859_vm5, %v5007_v60, 0.0 }
 0x68c   :  { %v5048_v36 = vrot.slane %v5047_v1, 4 }
 0x68d   :  { %4848 = vadd.xlane.f32.xlu0 %v4847_v56  ;;  %v5004_v38 = vpop.xlane.xlu1 %5003 }
 0x68e   :  { %4857 = vadd.xlane.f32.xlu1 %v4856_v44  ;;  %v4995_v35 = vpop.xlane.xlu0 %4994  ;;  %v5055_v4 = vadd.f32 %v5054_v50, %v5004_v38  ;;  %v5049_v32 = vadd.f32 %v5048_v36, %v5047_v1 }
 0x68f   :  { %v5038_v45 = vsel %vm4859_vm5, %v4995_v35, 0.0 }
 0x690   :  { %v5056_v30 = vrot.slane %v5055_v4, 4  ;;  %v5050_v37 = vrot.slane %v5049_v32, 2 }
 0x691   :  { %4854 = vadd.xlane.f32.xlu0 %v4853_v12  ;;  %v4992_v49 = vpop.xlane.xlu1 %4991 }
 0x692   :  { %v5013_v6 = vpop.xlane.xlu0 %5012  ;;  %v5039_v21 = vadd.f32 %v5038_v45, %v4992_v49  ;;  %v5057_v29 = vadd.f32 %v5056_v30, %v5055_v4  ;;  %v5051_v11 = vadd.f32 %v5050_v37, %v5049_v32 }
 0x693   :  { %v5062_v40 = vsel %vm4859_vm5, %v5013_v6, 0.0 }
 0x694   :  { %v5040_v53 = vrot.slane %v5039_v21, 4  ;;  %v5058_v57 = vrot.slane %v5057_v29, 2  ;;  %v5052_v39 = vrot.slane %v5051_v11, 1 }
 0x695   :  { %v5019_v15 = vpop.xlane.xlu1 %5018 }
 0x696   :  { %v5010_v27 = vpop.xlane.xlu0 %5009  ;;  %v5070_v3 = vsel %vm4859_vm5, %v5019_v15, 0.0  ;;  %v5041_v52 = vadd.f32 %v5040_v53, %v5039_v21  ;;  %v5059_v58 = vadd.f32 %v5058_v57, %v5057_v29  ;;  %v5053_v55 = vadd.f32 %v5052_v39, %v5051_v11 }
 0x697   :  { %v5063_v47 = vadd.f32 %v5062_v40, %v5010_v27 }
 0x698   :  { %v5042_v9 = vrot.slane %v5041_v52, 2  ;;  %v5060_v28 = vrot.slane %v5059_v58, 1 }
 0x699   :  { %v5025_v19 = vpop.xlane.xlu1 %5024  ;;  %v5064_v31 = vrot.slane %v5063_v47, 4 }
 0x69a   :  { %v5016_v51 = vpop.xlane.xlu0 %5015  ;;  %v5078_v61 = vsel %vm4859_vm5, %v5025_v19, 0.0  ;;  %v5043_v34 = vadd.f32 %v5042_v9, %v5041_v52  ;;  %v5061_v44 = vadd.f32 %v5060_v28, %v5059_v58 }
 0x69b   :  { %v5071_v24 = vadd.f32 %v5070_v3, %v5016_v51  ;;  %v5065_v2 = vadd.f32 %v5064_v31, %v5063_v47 }
 0x69c   :  { %v5044_v14 = vrot.slane %v5043_v34, 1 }
 0x69d   :  { %v5031_v23 = vpop.xlane.xlu1 %5030  ;;  %v5072_v48 = vrot.slane %v5071_v24, 4  ;;  %v5066_v25 = vrot.slane %v5065_v2, 2 }
 0x69e   :  { %v5022_v17 = vpop.xlane.xlu0 %5021  ;;  %v5086_v59 = vsel %vm4859_vm5, %v5031_v23, 0.0  ;;  %v5045_v12 = vadd.f32 %v5044_v14, %v5043_v34 }
 0x69f   :  { %v5079_v16 = vadd.f32 %v5078_v61, %v5022_v17  ;;  %v5073_v8 = vadd.f32 %v5072_v48, %v5071_v24  ;;  %v5067_v26 = vadd.f32 %v5066_v25, %v5065_v2 }
 0x6a1   :  { %v5080_v41 = vrot.slane %v5079_v16, 4  ;;  %v5074_v18 = vrot.slane %v5073_v8, 2  ;;  %v5068_v0 = vrot.slane %v5067_v26, 1 }
 0x6a2   :  { %v5028_v22 = vpop.xlane.xlu0 %5027 }
 0x6a3   :  { %v5087_v54 = vadd.f32 %v5086_v59, %v5028_v22  ;;  %v5081_v10 = vadd.f32 %v5080_v41, %v5079_v16  ;;  %v5075_v46 = vadd.f32 %v5074_v18, %v5073_v8  ;;  %v5069_v38 = vadd.f32 %v5068_v0, %v5067_v26 }
 0x6a5   :  { %v5088_v62 = vrot.slane %v5087_v54, 4  ;;  %v5082_v7 = vrot.slane %v5081_v10, 2  ;;  %v5076_v5 = vrot.slane %v5075_v46, 1 }
 0x6a7   :  { %v5089_v43 = vadd.f32 %v5088_v62, %v5087_v54  ;;  %v5083_v56 = vadd.f32 %v5082_v7, %v5081_v10  ;;  %v5077_v21 = vadd.f32 %v5076_v5, %v5075_v46 }
 0x6a9   :  { %v5090_v42 = vrot.slane %v5089_v43, 2  ;;  %v5084_v15 = vrot.slane %v5083_v56, 1 }
 0x6ab   :  { %v5091_v51 = vadd.f32 %v5090_v42, %v5089_v43  ;;  %v5085_v3 = vadd.f32 %v5084_v15, %v5083_v56 }
 0x6ad   :  { %v5092_v17 = vrot.slane %v5091_v51, 1 }
 0x6af   :  { %v5093_v32 = vadd.f32 %v5092_v17, %v5091_v51 }
 0x6e2   :  { %v5037_v33 = vpop.xlane.xlu1 %5036 }
 0x6e3   :  { %v5094_v60 = vsel %vm4859_vm5, %v5037_v33, 0.0 }
 0x6e6   :  { %v5034_v13 = vpop.xlane.xlu0 %5033  ;;  %v5109_v35 = vpop.permute.xlu1 %5108 }
 0x6e7   :  { %v5095_v6 = vadd.f32 %v5094_v60, %v5034_v13  ;;  %v5112_v49 = vadd.f32 %v5109_v35, %v5053_v55  ;;  %v5113_v27 = vadd.f32 %v5109_v35, %v5061_v44  ;;  %v5111_v20 = vadd.f32 %v5109_v35, %v5045_v12 }
 0x6e8   :  { %v5114_v4 = vadd.f32 %v5109_v35, %v5069_v38  ;;  %v5115_v36 = vadd.f32 %v5109_v35, %v5077_v21  ;;  %v5116_v23 = vadd.f32 %v5109_v35, %v5085_v3  ;;  %v5117_v48 = vadd.f32 %v5109_v35, %v5093_v32 }
 0x6e9   :  { %v5096_v50 = vrot.slane %v5095_v6, 4  ;;  %v5127_v1 = vrot.slane %v5112_v49, 7  ;;  %v5129_v45 = vrot.slane %v5113_v27, 6 }
 0x6ea   :  { %v4822_v40 = vpop.xlane.xlu0 %4821  ;;  %v5131_v24 = vrot.slane %v5114_v4, 5  ;;  %v5133_v29 = vrot.slane %v5115_v36, 4  ;;  %v5135_v41 = vrot.slane %v5116_v23, 3  ;;  %v5137_v9 = vrot.slane %v5117_v48, 2 }
 0x6eb   :  { %v5097_v19 = vadd.f32 %v5096_v50, %v5095_v6  ;;  %v5128_v47 = vsel %vm4948_vm6, %v5127_v1, %v5111_v20  ;;  %v4868_v34 = vsel %vm4859_vm5, %v4822_v40, 0.0 }
 0x6ec   :  { %v5130_v30 = vsel %vm4951_vm7, %v5129_v45, %v5128_v47 }
 0x6ed   :  { %v5098_v53 = vrot.slane %v5097_v19, 2  ;;  %v5132_v16 = vsel %vm4954_vm8, %v5131_v24, %v5130_v30 }
 0x6ee   :  { %v4819_v31 = vpop.xlane.xlu0 %4818  ;;  %v5134_v2 = vsel %vm4957_vm9, %v5133_v29, %v5132_v16 }
 0x6ef   :  { %v5099_v61 = vadd.f32 %v5098_v53, %v5097_v19  ;;  %v5136_v37 = vsel %vm4960_vm10, %v5135_v41, %v5134_v2  ;;  %v4869_v26 = vadd.f32 %v4868_v34, %v4819_v31 }
 0x6f0   :  { %v5138_v25 = vsel %vm4963_vm11, %v5137_v9, %v5136_v37 }
 0x6f1   :  { %v5100_v22 = vrot.slane %v5099_v61, 1  ;;  %v4870_v33 = vrot.slane %v4869_v26, 4 }
 0x6f2   :  { %v4828_v52 = vpop.xlane.xlu0 %4827 }
 0x6f3   :  { %v5101_v59 = vadd.f32 %v5100_v22, %v5099_v61  ;;  %v4871_v12 = vadd.f32 %v4870_v33, %v4869_v26  ;;  %v4876_v4 = vsel %vm4859_vm5, %v4828_v52, 0.0 }
 0x6f5   :  { %v5118_v54 = vadd.f32 %v5109_v35, %v5101_v59  ;;  %v4872_v6 = vrot.slane %v4871_v12, 2 }
 0x6f6   :  { %v4816_v57 = vpop.xlane.xlu0 %4815 }
 0x6f7   :  { %v5139_v8 = vrot.slane %v5118_v54, 1  ;;  %v4860_v7 = vsel %vm4859_vm5, %v4816_v57, 0.0  ;;  %v4873_v1 = vadd.f32 %v4872_v6, %v4871_v12 }
 0x6f9   :  { %v5140_v10 = vsel %vm4966_vm12, %v5139_v8, %v5138_v25  ;;  %v4874_v24 = vrot.slane %v4873_v1, 1 }
 0x6fa   :  { %v4834_v62 = vpop.xlane.xlu0 %4833  ;;  %5141 = vrot.lane.b32.xlu1 %v5140_v10, %s6804_s4 }
 0x6fb   :  { %v4884_v43 = vsel %vm4859_vm5, %v4834_v62, 0.0  ;;  %v4875_v41 = vadd.f32 %v4874_v24, %v4873_v1 }
 0x6fd   :  { %v4932_v34 = vadd.f32 %v10818_v63, %v4875_v41 }
 0x6fe   :  { %v4812_v11 = vpop.xlane.xlu0 %4811 }
 0x6ff   :  { %v4861_v39 = vadd.f32 %v4860_v7, %v4812_v11 }
 0x701   :  { %v4862_v56 = vrot.slane %v4861_v39, 4 }
 0x702   :  { %v4831_v58 = vpop.xlane.xlu0 %4830 }
 0x703   :  { %v4885_v28 = vadd.f32 %v4884_v43, %v4831_v58  ;;  %v4863_v5 = vadd.f32 %v4862_v56, %v4861_v39  ;;  %v4947_v56 = vrot.slane %v4932_v34, 7 }
 0x705   :  { %v4886_v42 = vrot.slane %v4885_v28, 4  ;;  %v4864_v27 = vrot.slane %v4863_v5, 2 }
 0x706   :  { %v4840_v18 = vpop.xlane.xlu0 %4839 }
 0x707   :  { %v4892_v14 = vsel %vm4859_vm5, %v4840_v18, 0.0  ;;  %v4887_v60 = vadd.f32 %v4886_v42, %v4885_v28  ;;  %v4865_v19 = vadd.f32 %v4864_v27, %v4863_v5 }
 0x709   :  { %v4888_v15 = vrot.slane %v4887_v60, 2  ;;  %v4866_v32 = vrot.slane %v4865_v19, 1 }
 0x70a   :  { %v4837_v46 = vpop.xlane.xlu0 %4836 }
 0x70b   :  { %v4893_v0 = vadd.f32 %v4892_v14, %v4837_v46  ;;  %v4889_v47 = vadd.f32 %v4888_v15, %v4887_v60  ;;  %v4867_v8 = vadd.f32 %v4866_v32, %v4865_v19 }
 0x70d   :  { %v4894_v55 = vrot.slane %v4893_v0, 4  ;;  %v4890_v29 = vrot.slane %v4889_v47, 1  ;;  %v4931_v39 = vadd.f32 %v10818_v63, %v4867_v8 }
 0x70e   :  { %v4846_v44 = vpop.xlane.xlu0 %4845 }
 0x70f   :  { %v4895_v13 = vadd.f32 %v4894_v55, %v4893_v0  ;;  %v4900_v35 = vsel %vm4859_vm5, %v4846_v44, 0.0  ;;  %v4891_v25 = vadd.f32 %v4890_v29, %v4889_v47  ;;  %v4949_v5 = vsel %vm4948_vm6, %v4947_v56, %v4931_v39 }
 0x711   :  { %v4896_v20 = vrot.slane %v4895_v13, 2  ;;  %v4934_v28 = vadd.f32 %v10818_v63, %v4891_v25 }
 0x712   :  { %v4843_v38 = vpop.xlane.xlu0 %4842 }
 0x713   :  { %v4901_v49 = vadd.f32 %v4900_v35, %v4843_v38  ;;  %v4897_v36 = vadd.f32 %v4896_v20, %v4895_v13  ;;  %v4953_v60 = vrot.slane %v4934_v28, 5 }
 0x715   :  { %v4902_v51 = vrot.slane %v4901_v49, 4  ;;  %v4898_v52 = vrot.slane %v4897_v36, 1 }
 0x716   :  { %v4852_v50 = vpop.xlane.xlu0 %4851 }
 0x717   :  { %v4903_v45 = vadd.f32 %v4902_v51, %v4901_v49  ;;  %v4825_v21 = vpop.xlane.xlu1 %4824  ;;  %v4908_v30 = vsel %vm4859_vm5, %v4852_v50, 0.0  ;;  %v4899_v11 = vadd.f32 %v4898_v52, %v4897_v36 }
 0x718   :  { %v4877_v40 = vadd.f32 %v4876_v4, %v4825_v21 }
 0x719   :  { %v4904_v17 = vrot.slane %v4903_v45, 2  ;;  %v4935_v33 = vadd.f32 %v10818_v63, %v4899_v11 }
 0x71a   :  { %v4878_v3 = vrot.slane %v4877_v40, 4  ;;  %v4849_v53 = vpop.xlane.xlu0 %4848 }
 0x71b   :  { %v4905_v31 = vadd.f32 %v4904_v17, %v4903_v45  ;;  %v4909_v61 = vadd.f32 %v4908_v30, %v4849_v53  ;;  %v4858_v23 = vpop.xlane.xlu1 %4857  ;;  %v4956_v38 = vrot.slane %v4935_v33, 4 }
 0x71c   :  { %v4879_v16 = vadd.f32 %v4878_v3, %v4877_v40  ;;  %v4916_v2 = vsel %vm4859_vm5, %v4858_v23, 0.0 }
 0x71d   :  { %v4910_v22 = vrot.slane %v4909_v61, 4  ;;  %v4906_v54 = vrot.slane %v4905_v31, 1 }
 0x71e   :  { %v4880_v48 = vrot.slane %v4879_v16, 2  ;;  %v4855_v59 = vpop.xlane.xlu0 %4854 }
 0x71f   :  { %v4911_v37 = vadd.f32 %v4910_v22, %v4909_v61  ;;  %v4917_v57 = vadd.f32 %v4916_v2, %v4855_v59  ;;  %v4907_v18 = vadd.f32 %v4906_v54, %v4905_v31 }
 0x720   :  { %v4881_v9 = vadd.f32 %v4880_v48, %v4879_v16 }
 0x721   :  { %v4912_v10 = vrot.slane %v4911_v37, 2  ;;  %v4918_v62 = vrot.slane %v4917_v57, 4  ;;  %v4936_v42 = vadd.f32 %v10818_v63, %v4907_v18 }
 0x722   :  { %v4882_v58 = vrot.slane %v4881_v9, 1 }
 0x723   :  { %v4913_v26 = vadd.f32 %v4912_v10, %v4911_v37  ;;  %v4919_v7 = vadd.f32 %v4918_v62, %v4917_v57  ;;  %v4959_v49 = vrot.slane %v4936_v42, 3 }
 0x724   :  { %v4883_v43 = vadd.f32 %v4882_v58, %v4881_v9 }
 0x725   :  { %v4914_v14 = vrot.slane %v4913_v26, 1  ;;  %v4920_v46 = vrot.slane %v4919_v7, 2 }
 0x726   :  { %v4933_v0 = vadd.f32 %v10818_v63, %v4883_v43 }
 0x727   :  { %v4915_v55 = vadd.f32 %v4914_v14, %v4913_v26  ;;  %v4921_v44 = vadd.f32 %v4920_v46, %v4919_v7 }
 0x728   :  { %v4950_v12 = vrot.slane %v4933_v0, 6 }
 0x729   :  { %v4937_v13 = vadd.f32 %v10818_v63, %v4915_v55  ;;  %v4922_v35 = vrot.slane %v4921_v44, 1 }
 0x72a   :  { %v4952_v6 = vsel %vm4951_vm7, %v4950_v12, %v4949_v5 }
 0x72b   :  { %v4955_v27 = vsel %vm4954_vm8, %v4953_v60, %v4952_v6  ;;  %v4923_v15 = vadd.f32 %v4922_v35, %v4921_v44  ;;  %v4962_v51 = vrot.slane %v4937_v13, 2 }
 0x72c   :  { %v4958_v20 = vsel %vm4957_vm9, %v4956_v38, %v4955_v27 }
 0x72d   :  { %v4938_v50 = vadd.f32 %v10818_v63, %v4923_v15  ;;  %v4961_v1 = vsel %vm4960_vm10, %v4959_v49, %v4958_v20 }
 0x72e   :  { %v4964_v45 = vsel %vm4963_vm11, %v4962_v51, %v4961_v1 }
 0x72f   :  { %v4965_v4 = vrot.slane %v4938_v50, 1 }
 0x731   :  { %v4967_v21 = vsel %vm4966_vm12, %v4965_v4, %v4964_v45 }
 0x732   :  { %4970 = vst.msk [vmem:[%s10903_s6] sm:$0xff] %vm4969_vm13, %v4967_v21 }
 0x76c   :  { %v5142_v40 = vpop.permute.xlu1 %5141 }
 0x76d   :  { %5145 = vst.msk [vmem:[%s10903_s6] sm:$0xff] %vm5144_vm14, %v5142_v40 }

</bundles_post_ra>
